<compile_context>
chip_gen: v7x
topology: tpu7x:2x2x1
jax: 0.10.0
libtpu: 0.0.40
codegen_flags: <defaults>
</compile_context>

<pallas_src>
import functools

import jax
import jax.numpy as jnp
from jax import lax
from jax.experimental import pallas as pl
from jax.experimental.pallas import tpu as pltpu

TIME_STEP = 8
DECAY = 0.2
V_TH = 0.5

IN_F, H1, H2, OUT_F = 784, 512, 256, 10
OUT_PAD = 128            # lane-dense padded fc3 output width (multiple of 128)


def _round_up(n, m):
    return ((n + m - 1) // m) * m


def snn_kernel(x_ref, w1_ref, b1_ref, w2_ref, b2_ref, w3_ref, b3_ref, out_ref,
               *, time_step):
    """One grid step == one batch block; the full T-step recurrence runs in-kernel."""
    x = x_ref[...]                                   # (BB, 784) f32, same every step

    # fc1 is time-invariant -> hoisted out of the time loop (computed once).
    i1 = jnp.dot(x, w1_ref[...], preferred_element_type=jnp.float32) + b1_ref[...]

    w2 = w2_ref[...]                                 # (512, 256) bf16
    b2 = b2_ref[...]                                 # (1, 256)   f32
    w3 = w3_ref[...]                                 # (256, 128) bf16 (zero-padded cols)
    b3 = b3_ref[...]                                 # (1, 128)   f32 (zero-padded cols)

    bb = x.shape[0]
    init = (jnp.zeros((bb, H1), jnp.float32),        # membrane layer 1
            jnp.zeros((bb, H2), jnp.float32),        # membrane layer 2
            jnp.zeros((bb, OUT_PAD), jnp.float32),   # membrane layer 3
            jnp.zeros((bb, OUT_PAD), jnp.float32))   # spike-count accumulator

    def step(_, carry):
        m1, m2, m3, acc = carry

        # ---- layer 1 (BoundEncodeLinear + BoundMemUpdate) ----
        v1 = DECAY * m1 + i1
        f1 = v1 > V_TH
        s1 = jnp.where(f1, 1.0, 0.0).astype(jnp.bfloat16)   # exact 0/1 -> lossless bf16
        m1 = jnp.where(f1, 0.0, v1)                          # hard reset, one compare

        # ---- layer 2 (BoundLinear 512->256 + BoundMemUpdate), bf16 MXU operands ----
        i2 = jnp.dot(s1, w2, preferred_element_type=jnp.float32) + b2
        v2 = DECAY * m2 + i2
        f2 = v2 > V_TH
        s2 = jnp.where(f2, 1.0, 0.0).astype(jnp.bfloat16)
        m2 = jnp.where(f2, 0.0, v2)

        # ---- layer 3 (BoundLinear 256->10, lane-padded to 128) + BoundMemUpdate ----
        i3 = jnp.dot(s2, w3, preferred_element_type=jnp.float32) + b3
        v3 = DECAY * m3 + i3
        f3 = v3 > V_TH
        s3 = jnp.where(f3, 1.0, 0.0)
        m3 = jnp.where(f3, 0.0, v3)

        return m1, m2, m3, acc + s3

    _, _, _, acc = lax.fori_loop(0, time_step, step, init, unroll=True)

    # classify (BoundLast): spike-rate readout; single lane-dense store.
    out_ref[...] = acc * jnp.float32(1.0 / time_step)


def mnist_fc_encode_forward(x_nchw, params, time_step=TIME_STEP, batch_block=128):
    w1t, b1, w2t, b2, w3t, b3 = params
    B = x_nchw.shape[0]
    x = x_nchw.reshape(B, -1).astype(jnp.float32)    # BoundFlatten -> (B, 784)

    # Lane-dense fc3: pad output dim 10 -> 128 with zeros (padded cols never spike).
    w3p = jnp.zeros((H2, OUT_PAD), jnp.float32).at[:, :OUT_F].set(w3t)
    b3p = jnp.zeros((1, OUT_PAD), jnp.float32).at[:, :OUT_F].set(b3)

    # bf16 MXU operands for the in-loop matmuls (f32 accumulation in-kernel).
    w2b = w2t.astype(jnp.bfloat16)
    w3b = w3p.astype(jnp.bfloat16)

    # Batch: pad to a sublane multiple (>=8) and tile over a parallel grid axis.
    bb = min(batch_block, _round_up(B, 8))
    b_pad = _round_up(B, bb)
    if b_pad != B:
        x = jnp.pad(x, ((0, b_pad - B), (0, 0)))
    grid = (b_pad // bb,)

    kernel = functools.partial(snn_kernel, time_step=time_step)

    out = pl.pallas_call(
        kernel,
        out_shape=jax.ShapeDtypeStruct((b_pad, OUT_PAD), jnp.float32),
        grid_spec=pltpu.PrefetchScalarGridSpec(
            num_scalar_prefetch=0,
            grid=grid,
            in_specs=[
                pl.BlockSpec((bb, IN_F), lambda i: (i, 0)),
                # Weights/biases: whole array, same block every grid step.  At these
                # sizes the default double-buffering is harmless; if the model scales
                # toward the VMEM limit, add pipeline_mode=pl.Buffered(1) here.
                pl.BlockSpec((IN_F, H1), lambda i: (0, 0)),
                pl.BlockSpec((1, H1), lambda i: (0, 0)),
                pl.BlockSpec((H1, H2), lambda i: (0, 0)),
                pl.BlockSpec((1, H2), lambda i: (0, 0)),
                pl.BlockSpec((H2, OUT_PAD), lambda i: (0, 0)),
                pl.BlockSpec((1, OUT_PAD), lambda i: (0, 0)),
            ],
            out_specs=pl.BlockSpec((bb, OUT_PAD), lambda i: (i, 0)),
        ),
        compiler_params=pltpu.CompilerParams(
            dimension_semantics=("parallel",)),   # batch blocks shard across TCs (v7x)
    )(x, w1t, b1, w2b, b2, w3b, b3p)

    return out[:B, :OUT_F]


def reference_forward(x_nchw, params, time_step=TIME_STEP):
    """Pure-JAX reference with matching numerics: fc1 in f32, fc2/fc3 with the same
    bf16-quantized weights and bf16 spikes (exact 0/1) and f32 accumulation."""
    w1t, b1, w2t, b2, w3t, b3 = params
    B = x_nchw.shape[0]
    x = x_nchw.reshape(B, -1).astype(jnp.float32)
    w2b = w2t.astype(jnp.bfloat16)
    w3b = w3t.astype(jnp.bfloat16)

    i1 = jnp.dot(x, w1t, preferred_element_type=jnp.float32) + b1
    m1 = jnp.zeros((B, H1), jnp.float32)
    m2 = jnp.zeros((B, H2), jnp.float32)
    m3 = jnp.zeros((B, OUT_F), jnp.float32)
    acc = jnp.zeros((B, OUT_F), jnp.float32)
    for _ in range(time_step):
        v1 = DECAY * m1 + i1
        f1 = v1 > V_TH
        s1 = jnp.where(f1, 1.0, 0.0).astype(jnp.bfloat16)
        m1 = jnp.where(f1, 0.0, v1)

        i2 = jnp.dot(s1, w2b, preferred_element_type=jnp.float32) + b2
        v2 = DECAY * m2 + i2
        f2 = v2 > V_TH
        s2 = jnp.where(f2, 1.0, 0.0).astype(jnp.bfloat16)
        m2 = jnp.where(f2, 0.0, v2)

        i3 = jnp.dot(s2, w3b, preferred_element_type=jnp.float32) + b3
        v3 = DECAY * m3 + i3
        f3 = v3 > V_TH
        s3 = jnp.where(f3, 1.0, 0.0)
        m3 = jnp.where(f3, 0.0, v3)

        acc = acc + s3
    return acc / float(time_step)


def init_params(key):
    """Deterministic init mimicking torch.nn.Linear defaults: U(-1/sqrt(in), 1/sqrt(in))."""
    ks = jax.random.split(key, 6)

    def lin(kw, kb, n_in, n_out):
        bound = 1.0 / jnp.sqrt(float(n_in))
        w_t = jax.random.uniform(kw, (n_in, n_out), jnp.float32, -bound, bound)  # W^T
        b = jax.random.uniform(kb, (1, n_out), jnp.float32, -bound, bound)
        return w_t, b

    w1t, b1 = lin(ks[0], ks[1], IN_F, H1)
    w2t, b2 = lin(ks[2], ks[3], H1, H2)
    w3t, b3 = lin(ks[4], ks[5], H2, OUT_F)
    return (w1t, b1, w2t, b2, w3t, b3)


if __name__ == "__main__":
    key = jax.random.PRNGKey(0)
    k_x, k_p = jax.random.split(key)

    # MNIST-like input, small batch: (B, 1, 28, 28), NCHW
    x_ = jax.random.uniform(k_x, (2, 1, 28, 28), jnp.float32)
    params = init_params(k_p)

    out = mnist_fc_encode_forward(x_, params)
    out = jax.block_until_ready(out)

    ref = reference_forward(x_, params)
    assert out.shape == (2, OUT_F)
    assert jnp.allclose(out, ref, atol=1e-5), (out, ref)

    print("KERNEL_OK")
</pallas_src>

<mosaic_0001>
module attributes {stable_mosaic.version = 11 : i64} {
  func.func @snn_kernel(%arg0: i32, %arg1: memref<8x784xf32, #tpu.memory_space<vmem>>, %arg2: memref<784x512xf32, #tpu.memory_space<vmem>>, %arg3: memref<1x512xf32, #tpu.memory_space<vmem>>, %arg4: memref<512x256xbf16, #tpu.memory_space<vmem>>, %arg5: memref<1x256xf32, #tpu.memory_space<vmem>>, %arg6: memref<256x128xbf16, #tpu.memory_space<vmem>>, %arg7: memref<1x128xf32, #tpu.memory_space<vmem>>, %arg8: memref<8x128xf32, #tpu.memory_space<vmem>>) attributes {dimension_semantics = [#tpu.dimension_semantics<parallel>], iteration_bounds = array<i64: 1>, scalar_prefetch = 0 : i64, scratch_operands = 0 : i64, tpu.core_type = #tpu.core_type<tc>, window_params = [{transform_indices = @transform_0, window_bounds = array<i64: 8, 784>}, {pipeline_mode = #tpu.pipeline_mode<synchronous>, transform_indices = @transform_1, window_bounds = array<i64: 784, 512>}, {pipeline_mode = #tpu.pipeline_mode<synchronous>, transform_indices = @transform_2, window_bounds = array<i64: 1, 512>}, {pipeline_mode = #tpu.pipeline_mode<synchronous>, transform_indices = @transform_3, window_bounds = array<i64: 512, 256>}, {pipeline_mode = #tpu.pipeline_mode<synchronous>, transform_indices = @transform_4, window_bounds = array<i64: 1, 256>}, {pipeline_mode = #tpu.pipeline_mode<synchronous>, transform_indices = @transform_5, window_bounds = array<i64: 256, 128>}, {pipeline_mode = #tpu.pipeline_mode<synchronous>, transform_indices = @transform_6, window_bounds = array<i64: 1, 128>}, {transform_indices = @transform_7, window_bounds = array<i64: 8, 128>}]} {
    %c0 = arith.constant 0 : index
    %c0_0 = arith.constant 0 : index
    %0 = vector.load %arg1[%c0, %c0_0] : memref<8x784xf32, #tpu.memory_space<vmem>>, vector<8x784xf32>
    %c0_1 = arith.constant 0 : index
    %c0_2 = arith.constant 0 : index
    %1 = vector.load %arg2[%c0_1, %c0_2] : memref<784x512xf32, #tpu.memory_space<vmem>>, vector<784x512xf32>
    %cst = arith.constant dense<0.000000e+00> : vector<8x512xf32>
    %2 = tpu.matmul %0, %1, %cst {dimension_numbers = #tpu.dot_dimension_numbers<[1], [0], [0], [1], [0, 0, 1, 1], [], []>} : vector<8x784xf32>, vector<784x512xf32>, vector<8x512xf32> -> vector<8x512xf32>
    %c0_3 = arith.constant 0 : index
    %c0_4 = arith.constant 0 : index
    %3 = vector.load %arg3[%c0_3, %c0_4] : memref<1x512xf32, #tpu.memory_space<vmem>>, vector<1x512xf32>
    %4 = vector.broadcast %3 : vector<1x512xf32> to vector<8x512xf32>
    %5 = arith.addf %2, %4 : vector<8x512xf32>
    %c0_5 = arith.constant 0 : index
    %c0_6 = arith.constant 0 : index
    %6 = vector.load %arg4[%c0_5, %c0_6] : memref<512x256xbf16, #tpu.memory_space<vmem>>, vector<512x256xbf16>
    %c0_7 = arith.constant 0 : index
    %c0_8 = arith.constant 0 : index
    %7 = vector.load %arg5[%c0_7, %c0_8] : memref<1x256xf32, #tpu.memory_space<vmem>>, vector<1x256xf32>
    %c0_9 = arith.constant 0 : index
    %c0_10 = arith.constant 0 : index
    %8 = vector.load %arg6[%c0_9, %c0_10] : memref<256x128xbf16, #tpu.memory_space<vmem>>, vector<256x128xbf16>
    %c0_11 = arith.constant 0 : index
    %c0_12 = arith.constant 0 : index
    %9 = vector.load %arg7[%c0_11, %c0_12] : memref<1x128xf32, #tpu.memory_space<vmem>>, vector<1x128xf32>
    %cst_13 = arith.constant 0.000000e+00 : f32
    %10 = vector.broadcast %cst_13 : f32 to vector<8x512xf32>
    %cst_14 = arith.constant 0.000000e+00 : f32
    %11 = vector.broadcast %cst_14 : f32 to vector<8x256xf32>
    %cst_15 = arith.constant 0.000000e+00 : f32
    %12 = vector.broadcast %cst_15 : f32 to vector<8x128xf32>
    %cst_16 = arith.constant 0.000000e+00 : f32
    %13 = vector.broadcast %cst_16 : f32 to vector<8x128xf32>
    %c0_i32 = arith.constant 0 : i32
    %cst_17 = arith.constant 2.000000e-01 : f32
    %14 = vector.broadcast %cst_17 : f32 to vector<8x512xf32>
    %15 = arith.mulf %14, %10 : vector<8x512xf32>
    %16 = arith.addf %15, %5 : vector<8x512xf32>
    %cst_18 = arith.constant 5.000000e-01 : f32
    %17 = vector.broadcast %cst_18 : f32 to vector<8x512xf32>
    %18 = arith.cmpf ogt, %16, %17 : vector<8x512xf32>
    %cst_19 = arith.constant 1.000000e+00 : f32
    %cst_20 = arith.constant 0.000000e+00 : f32
    %19 = vector.broadcast %cst_19 : f32 to vector<8x512xf32>
    %20 = vector.broadcast %cst_20 : f32 to vector<8x512xf32>
    %21 = arith.select %18, %19, %20 : vector<8x512xi1>, vector<8x512xf32>
    %22 = arith.truncf %21 : vector<8x512xf32> to vector<8x512xbf16>
    %cst_21 = arith.constant 0.000000e+00 : f32
    %23 = vector.broadcast %cst_21 : f32 to vector<8x512xf32>
    %24 = arith.select %18, %23, %16 : vector<8x512xi1>, vector<8x512xf32>
    %cst_22 = arith.constant dense<0.000000e+00> : vector<8x256xf32>
    %25 = tpu.matmul %22, %6, %cst_22 {dimension_numbers = #tpu.dot_dimension_numbers<[1], [0], [0], [1], [0, 0, 1, 1], [], []>} : vector<8x512xbf16>, vector<512x256xbf16>, vector<8x256xf32> -> vector<8x256xf32>
    %26 = vector.broadcast %7 : vector<1x256xf32> to vector<8x256xf32>
    %27 = arith.addf %25, %26 : vector<8x256xf32>
    %cst_23 = arith.constant 2.000000e-01 : f32
    %28 = vector.broadcast %cst_23 : f32 to vector<8x256xf32>
    %29 = arith.mulf %28, %11 : vector<8x256xf32>
    %30 = arith.addf %29, %27 : vector<8x256xf32>
    %cst_24 = arith.constant 5.000000e-01 : f32
    %31 = vector.broadcast %cst_24 : f32 to vector<8x256xf32>
    %32 = arith.cmpf ogt, %30, %31 : vector<8x256xf32>
    %cst_25 = arith.constant 1.000000e+00 : f32
    %cst_26 = arith.constant 0.000000e+00 : f32
    %33 = vector.broadcast %cst_25 : f32 to vector<8x256xf32>
    %34 = vector.broadcast %cst_26 : f32 to vector<8x256xf32>
    %35 = arith.select %32, %33, %34 : vector<8x256xi1>, vector<8x256xf32>
    %36 = arith.truncf %35 : vector<8x256xf32> to vector<8x256xbf16>
    %cst_27 = arith.constant 0.000000e+00 : f32
    %37 = vector.broadcast %cst_27 : f32 to vector<8x256xf32>
    %38 = arith.select %32, %37, %30 : vector<8x256xi1>, vector<8x256xf32>
    %cst_28 = arith.constant dense<0.000000e+00> : vector<8x128xf32>
    %39 = tpu.matmul %36, %8, %cst_28 {dimension_numbers = #tpu.dot_dimension_numbers<[1], [0], [0], [1], [0, 0, 1, 1], [], []>} : vector<8x256xbf16>, vector<256x128xbf16>, vector<8x128xf32> -> vector<8x128xf32>
    %40 = vector.broadcast %9 : vector<1x128xf32> to vector<8x128xf32>
    %41 = arith.addf %39, %40 : vector<8x128xf32>
    %cst_29 = arith.constant 2.000000e-01 : f32
    %42 = vector.broadcast %cst_29 : f32 to vector<8x128xf32>
    %43 = arith.mulf %42, %12 : vector<8x128xf32>
    %44 = arith.addf %43, %41 : vector<8x128xf32>
    %cst_30 = arith.constant 5.000000e-01 : f32
    %45 = vector.broadcast %cst_30 : f32 to vector<8x128xf32>
    %46 = arith.cmpf ogt, %44, %45 : vector<8x128xf32>
    %cst_31 = arith.constant 1.000000e+00 : f32
    %cst_32 = arith.constant 0.000000e+00 : f32
    %47 = vector.broadcast %cst_31 : f32 to vector<8x128xf32>
    %48 = vector.broadcast %cst_32 : f32 to vector<8x128xf32>
    %49 = arith.select %46, %47, %48 : vector<8x128xi1>, vector<8x128xf32>
    %cst_33 = arith.constant 0.000000e+00 : f32
    %50 = vector.broadcast %cst_33 : f32 to vector<8x128xf32>
    %51 = arith.select %46, %50, %44 : vector<8x128xi1>, vector<8x128xf32>
    %52 = arith.addf %13, %49 : vector<8x128xf32>
    %c1_i32 = arith.constant 1 : i32
    %cst_34 = arith.constant 2.000000e-01 : f32
    %53 = vector.broadcast %cst_34 : f32 to vector<8x512xf32>
    %54 = arith.mulf %53, %24 : vector<8x512xf32>
    %55 = arith.addf %54, %5 : vector<8x512xf32>
    %cst_35 = arith.constant 5.000000e-01 : f32
    %56 = vector.broadcast %cst_35 : f32 to vector<8x512xf32>
    %57 = arith.cmpf ogt, %55, %56 : vector<8x512xf32>
    %cst_36 = arith.constant 1.000000e+00 : f32
    %cst_37 = arith.constant 0.000000e+00 : f32
    %58 = vector.broadcast %cst_36 : f32 to vector<8x512xf32>
    %59 = vector.broadcast %cst_37 : f32 to vector<8x512xf32>
    %60 = arith.select %57, %58, %59 : vector<8x512xi1>, vector<8x512xf32>
    %61 = arith.truncf %60 : vector<8x512xf32> to vector<8x512xbf16>
    %cst_38 = arith.constant 0.000000e+00 : f32
    %62 = vector.broadcast %cst_38 : f32 to vector<8x512xf32>
    %63 = arith.select %57, %62, %55 : vector<8x512xi1>, vector<8x512xf32>
    %cst_39 = arith.constant dense<0.000000e+00> : vector<8x256xf32>
    %64 = tpu.matmul %61, %6, %cst_39 {dimension_numbers = #tpu.dot_dimension_numbers<[1], [0], [0], [1], [0, 0, 1, 1], [], []>} : vector<8x512xbf16>, vector<512x256xbf16>, vector<8x256xf32> -> vector<8x256xf32>
    %65 = vector.broadcast %7 : vector<1x256xf32> to vector<8x256xf32>
    %66 = arith.addf %64, %65 : vector<8x256xf32>
    %cst_40 = arith.constant 2.000000e-01 : f32
    %67 = vector.broadcast %cst_40 : f32 to vector<8x256xf32>
    %68 = arith.mulf %67, %38 : vector<8x256xf32>
    %69 = arith.addf %68, %66 : vector<8x256xf32>
    %cst_41 = arith.constant 5.000000e-01 : f32
    %70 = vector.broadcast %cst_41 : f32 to vector<8x256xf32>
    %71 = arith.cmpf ogt, %69, %70 : vector<8x256xf32>
    %cst_42 = arith.constant 1.000000e+00 : f32
    %cst_43 = arith.constant 0.000000e+00 : f32
    %72 = vector.broadcast %cst_42 : f32 to vector<8x256xf32>
    %73 = vector.broadcast %cst_43 : f32 to vector<8x256xf32>
    %74 = arith.select %71, %72, %73 : vector<8x256xi1>, vector<8x256xf32>
    %75 = arith.truncf %74 : vector<8x256xf32> to vector<8x256xbf16>
    %cst_44 = arith.constant 0.000000e+00 : f32
    %76 = vector.broadcast %cst_44 : f32 to vector<8x256xf32>
    %77 = arith.select %71, %76, %69 : vector<8x256xi1>, vector<8x256xf32>
    %cst_45 = arith.constant dense<0.000000e+00> : vector<8x128xf32>
    %78 = tpu.matmul %75, %8, %cst_45 {dimension_numbers = #tpu.dot_dimension_numbers<[1], [0], [0], [1], [0, 0, 1, 1], [], []>} : vector<8x256xbf16>, vector<256x128xbf16>, vector<8x128xf32> -> vector<8x128xf32>
    %79 = vector.broadcast %9 : vector<1x128xf32> to vector<8x128xf32>
    %80 = arith.addf %78, %79 : vector<8x128xf32>
    %cst_46 = arith.constant 2.000000e-01 : f32
    %81 = vector.broadcast %cst_46 : f32 to vector<8x128xf32>
    %82 = arith.mulf %81, %51 : vector<8x128xf32>
    %83 = arith.addf %82, %80 : vector<8x128xf32>
    %cst_47 = arith.constant 5.000000e-01 : f32
    %84 = vector.broadcast %cst_47 : f32 to vector<8x128xf32>
    %85 = arith.cmpf ogt, %83, %84 : vector<8x128xf32>
    %cst_48 = arith.constant 1.000000e+00 : f32
    %cst_49 = arith.constant 0.000000e+00 : f32
    %86 = vector.broadcast %cst_48 : f32 to vector<8x128xf32>
    %87 = vector.broadcast %cst_49 : f32 to vector<8x128xf32>
    %88 = arith.select %85, %86, %87 : vector<8x128xi1>, vector<8x128xf32>
    %cst_50 = arith.constant 0.000000e+00 : f32
    %89 = vector.broadcast %cst_50 : f32 to vector<8x128xf32>
    %90 = arith.select %85, %89, %83 : vector<8x128xi1>, vector<8x128xf32>
    %91 = arith.addf %52, %88 : vector<8x128xf32>
    %c2_i32 = arith.constant 2 : i32
    %cst_51 = arith.constant 2.000000e-01 : f32
    %92 = vector.broadcast %cst_51 : f32 to vector<8x512xf32>
    %93 = arith.mulf %92, %63 : vector<8x512xf32>
    %94 = arith.addf %93, %5 : vector<8x512xf32>
    %cst_52 = arith.constant 5.000000e-01 : f32
    %95 = vector.broadcast %cst_52 : f32 to vector<8x512xf32>
    %96 = arith.cmpf ogt, %94, %95 : vector<8x512xf32>
    %cst_53 = arith.constant 1.000000e+00 : f32
    %cst_54 = arith.constant 0.000000e+00 : f32
    %97 = vector.broadcast %cst_53 : f32 to vector<8x512xf32>
    %98 = vector.broadcast %cst_54 : f32 to vector<8x512xf32>
    %99 = arith.select %96, %97, %98 : vector<8x512xi1>, vector<8x512xf32>
    %100 = arith.truncf %99 : vector<8x512xf32> to vector<8x512xbf16>
    %cst_55 = arith.constant 0.000000e+00 : f32
    %101 = vector.broadcast %cst_55 : f32 to vector<8x512xf32>
    %102 = arith.select %96, %101, %94 : vector<8x512xi1>, vector<8x512xf32>
    %cst_56 = arith.constant dense<0.000000e+00> : vector<8x256xf32>
    %103 = tpu.matmul %100, %6, %cst_56 {dimension_numbers = #tpu.dot_dimension_numbers<[1], [0], [0], [1], [0, 0, 1, 1], [], []>} : vector<8x512xbf16>, vector<512x256xbf16>, vector<8x256xf32> -> vector<8x256xf32>
    %104 = vector.broadcast %7 : vector<1x256xf32> to vector<8x256xf32>
    %105 = arith.addf %103, %104 : vector<8x256xf32>
    %cst_57 = arith.constant 2.000000e-01 : f32
    %106 = vector.broadcast %cst_57 : f32 to vector<8x256xf32>
    %107 = arith.mulf %106, %77 : vector<8x256xf32>
    %108 = arith.addf %107, %105 : vector<8x256xf32>
    %cst_58 = arith.constant 5.000000e-01 : f32
    %109 = vector.broadcast %cst_58 : f32 to vector<8x256xf32>
    %110 = arith.cmpf ogt, %108, %109 : vector<8x256xf32>
    %cst_59 = arith.constant 1.000000e+00 : f32
    %cst_60 = arith.constant 0.000000e+00 : f32
    %111 = vector.broadcast %cst_59 : f32 to vector<8x256xf32>
    %112 = vector.broadcast %cst_60 : f32 to vector<8x256xf32>
    %113 = arith.select %110, %111, %112 : vector<8x256xi1>, vector<8x256xf32>
    %114 = arith.truncf %113 : vector<8x256xf32> to vector<8x256xbf16>
    %cst_61 = arith.constant 0.000000e+00 : f32
    %115 = vector.broadcast %cst_61 : f32 to vector<8x256xf32>
    %116 = arith.select %110, %115, %108 : vector<8x256xi1>, vector<8x256xf32>
    %cst_62 = arith.constant dense<0.000000e+00> : vector<8x128xf32>
    %117 = tpu.matmul %114, %8, %cst_62 {dimension_numbers = #tpu.dot_dimension_numbers<[1], [0], [0], [1], [0, 0, 1, 1], [], []>} : vector<8x256xbf16>, vector<256x128xbf16>, vector<8x128xf32> -> vector<8x128xf32>
    %118 = vector.broadcast %9 : vector<1x128xf32> to vector<8x128xf32>
    %119 = arith.addf %117, %118 : vector<8x128xf32>
    %cst_63 = arith.constant 2.000000e-01 : f32
    %120 = vector.broadcast %cst_63 : f32 to vector<8x128xf32>
    %121 = arith.mulf %120, %90 : vector<8x128xf32>
    %122 = arith.addf %121, %119 : vector<8x128xf32>
    %cst_64 = arith.constant 5.000000e-01 : f32
    %123 = vector.broadcast %cst_64 : f32 to vector<8x128xf32>
    %124 = arith.cmpf ogt, %122, %123 : vector<8x128xf32>
    %cst_65 = arith.constant 1.000000e+00 : f32
    %cst_66 = arith.constant 0.000000e+00 : f32
    %125 = vector.broadcast %cst_65 : f32 to vector<8x128xf32>
    %126 = vector.broadcast %cst_66 : f32 to vector<8x128xf32>
    %127 = arith.select %124, %125, %126 : vector<8x128xi1>, vector<8x128xf32>
    %cst_67 = arith.constant 0.000000e+00 : f32
    %128 = vector.broadcast %cst_67 : f32 to vector<8x128xf32>
    %129 = arith.select %124, %128, %122 : vector<8x128xi1>, vector<8x128xf32>
    %130 = arith.addf %91, %127 : vector<8x128xf32>
    %c3_i32 = arith.constant 3 : i32
    %cst_68 = arith.constant 2.000000e-01 : f32
    %131 = vector.broadcast %cst_68 : f32 to vector<8x512xf32>
    %132 = arith.mulf %131, %102 : vector<8x512xf32>
    %133 = arith.addf %132, %5 : vector<8x512xf32>
    %cst_69 = arith.constant 5.000000e-01 : f32
    %134 = vector.broadcast %cst_69 : f32 to vector<8x512xf32>
    %135 = arith.cmpf ogt, %133, %134 : vector<8x512xf32>
    %cst_70 = arith.constant 1.000000e+00 : f32
    %cst_71 = arith.constant 0.000000e+00 : f32
    %136 = vector.broadcast %cst_70 : f32 to vector<8x512xf32>
    %137 = vector.broadcast %cst_71 : f32 to vector<8x512xf32>
    %138 = arith.select %135, %136, %137 : vector<8x512xi1>, vector<8x512xf32>
    %139 = arith.truncf %138 : vector<8x512xf32> to vector<8x512xbf16>
    %cst_72 = arith.constant 0.000000e+00 : f32
    %140 = vector.broadcast %cst_72 : f32 to vector<8x512xf32>
    %141 = arith.select %135, %140, %133 : vector<8x512xi1>, vector<8x512xf32>
    %cst_73 = arith.constant dense<0.000000e+00> : vector<8x256xf32>
    %142 = tpu.matmul %139, %6, %cst_73 {dimension_numbers = #tpu.dot_dimension_numbers<[1], [0], [0], [1], [0, 0, 1, 1], [], []>} : vector<8x512xbf16>, vector<512x256xbf16>, vector<8x256xf32> -> vector<8x256xf32>
    %143 = vector.broadcast %7 : vector<1x256xf32> to vector<8x256xf32>
    %144 = arith.addf %142, %143 : vector<8x256xf32>
    %cst_74 = arith.constant 2.000000e-01 : f32
    %145 = vector.broadcast %cst_74 : f32 to vector<8x256xf32>
    %146 = arith.mulf %145, %116 : vector<8x256xf32>
    %147 = arith.addf %146, %144 : vector<8x256xf32>
    %cst_75 = arith.constant 5.000000e-01 : f32
    %148 = vector.broadcast %cst_75 : f32 to vector<8x256xf32>
    %149 = arith.cmpf ogt, %147, %148 : vector<8x256xf32>
    %cst_76 = arith.constant 1.000000e+00 : f32
    %cst_77 = arith.constant 0.000000e+00 : f32
    %150 = vector.broadcast %cst_76 : f32 to vector<8x256xf32>
    %151 = vector.broadcast %cst_77 : f32 to vector<8x256xf32>
    %152 = arith.select %149, %150, %151 : vector<8x256xi1>, vector<8x256xf32>
    %153 = arith.truncf %152 : vector<8x256xf32> to vector<8x256xbf16>
    %cst_78 = arith.constant 0.000000e+00 : f32
    %154 = vector.broadcast %cst_78 : f32 to vector<8x256xf32>
    %155 = arith.select %149, %154, %147 : vector<8x256xi1>, vector<8x256xf32>
    %cst_79 = arith.constant dense<0.000000e+00> : vector<8x128xf32>
    %156 = tpu.matmul %153, %8, %cst_79 {dimension_numbers = #tpu.dot_dimension_numbers<[1], [0], [0], [1], [0, 0, 1, 1], [], []>} : vector<8x256xbf16>, vector<256x128xbf16>, vector<8x128xf32> -> vector<8x128xf32>
    %157 = vector.broadcast %9 : vector<1x128xf32> to vector<8x128xf32>
    %158 = arith.addf %156, %157 : vector<8x128xf32>
    %cst_80 = arith.constant 2.000000e-01 : f32
    %159 = vector.broadcast %cst_80 : f32 to vector<8x128xf32>
    %160 = arith.mulf %159, %129 : vector<8x128xf32>
    %161 = arith.addf %160, %158 : vector<8x128xf32>
    %cst_81 = arith.constant 5.000000e-01 : f32
    %162 = vector.broadcast %cst_81 : f32 to vector<8x128xf32>
    %163 = arith.cmpf ogt, %161, %162 : vector<8x128xf32>
    %cst_82 = arith.constant 1.000000e+00 : f32
    %cst_83 = arith.constant 0.000000e+00 : f32
    %164 = vector.broadcast %cst_82 : f32 to vector<8x128xf32>
    %165 = vector.broadcast %cst_83 : f32 to vector<8x128xf32>
    %166 = arith.select %163, %164, %165 : vector<8x128xi1>, vector<8x128xf32>
    %cst_84 = arith.constant 0.000000e+00 : f32
    %167 = vector.broadcast %cst_84 : f32 to vector<8x128xf32>
    %168 = arith.select %163, %167, %161 : vector<8x128xi1>, vector<8x128xf32>
    %169 = arith.addf %130, %166 : vector<8x128xf32>
    %c4_i32 = arith.constant 4 : i32
    %cst_85 = arith.constant 2.000000e-01 : f32
    %170 = vector.broadcast %cst_85 : f32 to vector<8x512xf32>
    %171 = arith.mulf %170, %141 : vector<8x512xf32>
    %172 = arith.addf %171, %5 : vector<8x512xf32>
    %cst_86 = arith.constant 5.000000e-01 : f32
    %173 = vector.broadcast %cst_86 : f32 to vector<8x512xf32>
    %174 = arith.cmpf ogt, %172, %173 : vector<8x512xf32>
    %cst_87 = arith.constant 1.000000e+00 : f32
    %cst_88 = arith.constant 0.000000e+00 : f32
    %175 = vector.broadcast %cst_87 : f32 to vector<8x512xf32>
    %176 = vector.broadcast %cst_88 : f32 to vector<8x512xf32>
    %177 = arith.select %174, %175, %176 : vector<8x512xi1>, vector<8x512xf32>
    %178 = arith.truncf %177 : vector<8x512xf32> to vector<8x512xbf16>
    %cst_89 = arith.constant 0.000000e+00 : f32
    %179 = vector.broadcast %cst_89 : f32 to vector<8x512xf32>
    %180 = arith.select %174, %179, %172 : vector<8x512xi1>, vector<8x512xf32>
    %cst_90 = arith.constant dense<0.000000e+00> : vector<8x256xf32>
    %181 = tpu.matmul %178, %6, %cst_90 {dimension_numbers = #tpu.dot_dimension_numbers<[1], [0], [0], [1], [0, 0, 1, 1], [], []>} : vector<8x512xbf16>, vector<512x256xbf16>, vector<8x256xf32> -> vector<8x256xf32>
    %182 = vector.broadcast %7 : vector<1x256xf32> to vector<8x256xf32>
    %183 = arith.addf %181, %182 : vector<8x256xf32>
    %cst_91 = arith.constant 2.000000e-01 : f32
    %184 = vector.broadcast %cst_91 : f32 to vector<8x256xf32>
    %185 = arith.mulf %184, %155 : vector<8x256xf32>
    %186 = arith.addf %185, %183 : vector<8x256xf32>
    %cst_92 = arith.constant 5.000000e-01 : f32
    %187 = vector.broadcast %cst_92 : f32 to vector<8x256xf32>
    %188 = arith.cmpf ogt, %186, %187 : vector<8x256xf32>
    %cst_93 = arith.constant 1.000000e+00 : f32
    %cst_94 = arith.constant 0.000000e+00 : f32
    %189 = vector.broadcast %cst_93 : f32 to vector<8x256xf32>
    %190 = vector.broadcast %cst_94 : f32 to vector<8x256xf32>
    %191 = arith.select %188, %189, %190 : vector<8x256xi1>, vector<8x256xf32>
    %192 = arith.truncf %191 : vector<8x256xf32> to vector<8x256xbf16>
    %cst_95 = arith.constant 0.000000e+00 : f32
    %193 = vector.broadcast %cst_95 : f32 to vector<8x256xf32>
    %194 = arith.select %188, %193, %186 : vector<8x256xi1>, vector<8x256xf32>
    %cst_96 = arith.constant dense<0.000000e+00> : vector<8x128xf32>
    %195 = tpu.matmul %192, %8, %cst_96 {dimension_numbers = #tpu.dot_dimension_numbers<[1], [0], [0], [1], [0, 0, 1, 1], [], []>} : vector<8x256xbf16>, vector<256x128xbf16>, vector<8x128xf32> -> vector<8x128xf32>
    %196 = vector.broadcast %9 : vector<1x128xf32> to vector<8x128xf32>
    %197 = arith.addf %195, %196 : vector<8x128xf32>
    %cst_97 = arith.constant 2.000000e-01 : f32
    %198 = vector.broadcast %cst_97 : f32 to vector<8x128xf32>
    %199 = arith.mulf %198, %168 : vector<8x128xf32>
    %200 = arith.addf %199, %197 : vector<8x128xf32>
    %cst_98 = arith.constant 5.000000e-01 : f32
    %201 = vector.broadcast %cst_98 : f32 to vector<8x128xf32>
    %202 = arith.cmpf ogt, %200, %201 : vector<8x128xf32>
    %cst_99 = arith.constant 1.000000e+00 : f32
    %cst_100 = arith.constant 0.000000e+00 : f32
    %203 = vector.broadcast %cst_99 : f32 to vector<8x128xf32>
    %204 = vector.broadcast %cst_100 : f32 to vector<8x128xf32>
    %205 = arith.select %202, %203, %204 : vector<8x128xi1>, vector<8x128xf32>
    %cst_101 = arith.constant 0.000000e+00 : f32
    %206 = vector.broadcast %cst_101 : f32 to vector<8x128xf32>
    %207 = arith.select %202, %206, %200 : vector<8x128xi1>, vector<8x128xf32>
    %208 = arith.addf %169, %205 : vector<8x128xf32>
    %c5_i32 = arith.constant 5 : i32
    %cst_102 = arith.constant 2.000000e-01 : f32
    %209 = vector.broadcast %cst_102 : f32 to vector<8x512xf32>
    %210 = arith.mulf %209, %180 : vector<8x512xf32>
    %211 = arith.addf %210, %5 : vector<8x512xf32>
    %cst_103 = arith.constant 5.000000e-01 : f32
    %212 = vector.broadcast %cst_103 : f32 to vector<8x512xf32>
    %213 = arith.cmpf ogt, %211, %212 : vector<8x512xf32>
    %cst_104 = arith.constant 1.000000e+00 : f32
    %cst_105 = arith.constant 0.000000e+00 : f32
    %214 = vector.broadcast %cst_104 : f32 to vector<8x512xf32>
    %215 = vector.broadcast %cst_105 : f32 to vector<8x512xf32>
    %216 = arith.select %213, %214, %215 : vector<8x512xi1>, vector<8x512xf32>
    %217 = arith.truncf %216 : vector<8x512xf32> to vector<8x512xbf16>
    %cst_106 = arith.constant 0.000000e+00 : f32
    %218 = vector.broadcast %cst_106 : f32 to vector<8x512xf32>
    %219 = arith.select %213, %218, %211 : vector<8x512xi1>, vector<8x512xf32>
    %cst_107 = arith.constant dense<0.000000e+00> : vector<8x256xf32>
    %220 = tpu.matmul %217, %6, %cst_107 {dimension_numbers = #tpu.dot_dimension_numbers<[1], [0], [0], [1], [0, 0, 1, 1], [], []>} : vector<8x512xbf16>, vector<512x256xbf16>, vector<8x256xf32> -> vector<8x256xf32>
    %221 = vector.broadcast %7 : vector<1x256xf32> to vector<8x256xf32>
    %222 = arith.addf %220, %221 : vector<8x256xf32>
    %cst_108 = arith.constant 2.000000e-01 : f32
    %223 = vector.broadcast %cst_108 : f32 to vector<8x256xf32>
    %224 = arith.mulf %223, %194 : vector<8x256xf32>
    %225 = arith.addf %224, %222 : vector<8x256xf32>
    %cst_109 = arith.constant 5.000000e-01 : f32
    %226 = vector.broadcast %cst_109 : f32 to vector<8x256xf32>
    %227 = arith.cmpf ogt, %225, %226 : vector<8x256xf32>
    %cst_110 = arith.constant 1.000000e+00 : f32
    %cst_111 = arith.constant 0.000000e+00 : f32
    %228 = vector.broadcast %cst_110 : f32 to vector<8x256xf32>
    %229 = vector.broadcast %cst_111 : f32 to vector<8x256xf32>
    %230 = arith.select %227, %228, %229 : vector<8x256xi1>, vector<8x256xf32>
    %231 = arith.truncf %230 : vector<8x256xf32> to vector<8x256xbf16>
    %cst_112 = arith.constant 0.000000e+00 : f32
    %232 = vector.broadcast %cst_112 : f32 to vector<8x256xf32>
    %233 = arith.select %227, %232, %225 : vector<8x256xi1>, vector<8x256xf32>
    %cst_113 = arith.constant dense<0.000000e+00> : vector<8x128xf32>
    %234 = tpu.matmul %231, %8, %cst_113 {dimension_numbers = #tpu.dot_dimension_numbers<[1], [0], [0], [1], [0, 0, 1, 1], [], []>} : vector<8x256xbf16>, vector<256x128xbf16>, vector<8x128xf32> -> vector<8x128xf32>
    %235 = vector.broadcast %9 : vector<1x128xf32> to vector<8x128xf32>
    %236 = arith.addf %234, %235 : vector<8x128xf32>
    %cst_114 = arith.constant 2.000000e-01 : f32
    %237 = vector.broadcast %cst_114 : f32 to vector<8x128xf32>
    %238 = arith.mulf %237, %207 : vector<8x128xf32>
    %239 = arith.addf %238, %236 : vector<8x128xf32>
    %cst_115 = arith.constant 5.000000e-01 : f32
    %240 = vector.broadcast %cst_115 : f32 to vector<8x128xf32>
    %241 = arith.cmpf ogt, %239, %240 : vector<8x128xf32>
    %cst_116 = arith.constant 1.000000e+00 : f32
    %cst_117 = arith.constant 0.000000e+00 : f32
    %242 = vector.broadcast %cst_116 : f32 to vector<8x128xf32>
    %243 = vector.broadcast %cst_117 : f32 to vector<8x128xf32>
    %244 = arith.select %241, %242, %243 : vector<8x128xi1>, vector<8x128xf32>
    %cst_118 = arith.constant 0.000000e+00 : f32
    %245 = vector.broadcast %cst_118 : f32 to vector<8x128xf32>
    %246 = arith.select %241, %245, %239 : vector<8x128xi1>, vector<8x128xf32>
    %247 = arith.addf %208, %244 : vector<8x128xf32>
    %c6_i32 = arith.constant 6 : i32
    %cst_119 = arith.constant 2.000000e-01 : f32
    %248 = vector.broadcast %cst_119 : f32 to vector<8x512xf32>
    %249 = arith.mulf %248, %219 : vector<8x512xf32>
    %250 = arith.addf %249, %5 : vector<8x512xf32>
    %cst_120 = arith.constant 5.000000e-01 : f32
    %251 = vector.broadcast %cst_120 : f32 to vector<8x512xf32>
    %252 = arith.cmpf ogt, %250, %251 : vector<8x512xf32>
    %cst_121 = arith.constant 1.000000e+00 : f32
    %cst_122 = arith.constant 0.000000e+00 : f32
    %253 = vector.broadcast %cst_121 : f32 to vector<8x512xf32>
    %254 = vector.broadcast %cst_122 : f32 to vector<8x512xf32>
    %255 = arith.select %252, %253, %254 : vector<8x512xi1>, vector<8x512xf32>
    %256 = arith.truncf %255 : vector<8x512xf32> to vector<8x512xbf16>
    %cst_123 = arith.constant 0.000000e+00 : f32
    %257 = vector.broadcast %cst_123 : f32 to vector<8x512xf32>
    %258 = arith.select %252, %257, %250 : vector<8x512xi1>, vector<8x512xf32>
    %cst_124 = arith.constant dense<0.000000e+00> : vector<8x256xf32>
    %259 = tpu.matmul %256, %6, %cst_124 {dimension_numbers = #tpu.dot_dimension_numbers<[1], [0], [0], [1], [0, 0, 1, 1], [], []>} : vector<8x512xbf16>, vector<512x256xbf16>, vector<8x256xf32> -> vector<8x256xf32>
    %260 = vector.broadcast %7 : vector<1x256xf32> to vector<8x256xf32>
    %261 = arith.addf %259, %260 : vector<8x256xf32>
    %cst_125 = arith.constant 2.000000e-01 : f32
    %262 = vector.broadcast %cst_125 : f32 to vector<8x256xf32>
    %263 = arith.mulf %262, %233 : vector<8x256xf32>
    %264 = arith.addf %263, %261 : vector<8x256xf32>
    %cst_126 = arith.constant 5.000000e-01 : f32
    %265 = vector.broadcast %cst_126 : f32 to vector<8x256xf32>
    %266 = arith.cmpf ogt, %264, %265 : vector<8x256xf32>
    %cst_127 = arith.constant 1.000000e+00 : f32
    %cst_128 = arith.constant 0.000000e+00 : f32
    %267 = vector.broadcast %cst_127 : f32 to vector<8x256xf32>
    %268 = vector.broadcast %cst_128 : f32 to vector<8x256xf32>
    %269 = arith.select %266, %267, %268 : vector<8x256xi1>, vector<8x256xf32>
    %270 = arith.truncf %269 : vector<8x256xf32> to vector<8x256xbf16>
    %cst_129 = arith.constant 0.000000e+00 : f32
    %271 = vector.broadcast %cst_129 : f32 to vector<8x256xf32>
    %272 = arith.select %266, %271, %264 : vector<8x256xi1>, vector<8x256xf32>
    %cst_130 = arith.constant dense<0.000000e+00> : vector<8x128xf32>
    %273 = tpu.matmul %270, %8, %cst_130 {dimension_numbers = #tpu.dot_dimension_numbers<[1], [0], [0], [1], [0, 0, 1, 1], [], []>} : vector<8x256xbf16>, vector<256x128xbf16>, vector<8x128xf32> -> vector<8x128xf32>
    %274 = vector.broadcast %9 : vector<1x128xf32> to vector<8x128xf32>
    %275 = arith.addf %273, %274 : vector<8x128xf32>
    %cst_131 = arith.constant 2.000000e-01 : f32
    %276 = vector.broadcast %cst_131 : f32 to vector<8x128xf32>
    %277 = arith.mulf %276, %246 : vector<8x128xf32>
    %278 = arith.addf %277, %275 : vector<8x128xf32>
    %cst_132 = arith.constant 5.000000e-01 : f32
    %279 = vector.broadcast %cst_132 : f32 to vector<8x128xf32>
    %280 = arith.cmpf ogt, %278, %279 : vector<8x128xf32>
    %cst_133 = arith.constant 1.000000e+00 : f32
    %cst_134 = arith.constant 0.000000e+00 : f32
    %281 = vector.broadcast %cst_133 : f32 to vector<8x128xf32>
    %282 = vector.broadcast %cst_134 : f32 to vector<8x128xf32>
    %283 = arith.select %280, %281, %282 : vector<8x128xi1>, vector<8x128xf32>
    %cst_135 = arith.constant 0.000000e+00 : f32
    %284 = vector.broadcast %cst_135 : f32 to vector<8x128xf32>
    %285 = arith.select %280, %284, %278 : vector<8x128xi1>, vector<8x128xf32>
    %286 = arith.addf %247, %283 : vector<8x128xf32>
    %c7_i32 = arith.constant 7 : i32
    %cst_136 = arith.constant 2.000000e-01 : f32
    %287 = vector.broadcast %cst_136 : f32 to vector<8x512xf32>
    %288 = arith.mulf %287, %258 : vector<8x512xf32>
    %289 = arith.addf %288, %5 : vector<8x512xf32>
    %cst_137 = arith.constant 5.000000e-01 : f32
    %290 = vector.broadcast %cst_137 : f32 to vector<8x512xf32>
    %291 = arith.cmpf ogt, %289, %290 : vector<8x512xf32>
    %cst_138 = arith.constant 1.000000e+00 : f32
    %cst_139 = arith.constant 0.000000e+00 : f32
    %292 = vector.broadcast %cst_138 : f32 to vector<8x512xf32>
    %293 = vector.broadcast %cst_139 : f32 to vector<8x512xf32>
    %294 = arith.select %291, %292, %293 : vector<8x512xi1>, vector<8x512xf32>
    %295 = arith.truncf %294 : vector<8x512xf32> to vector<8x512xbf16>
    %cst_140 = arith.constant 0.000000e+00 : f32
    %296 = vector.broadcast %cst_140 : f32 to vector<8x512xf32>
    %297 = arith.select %291, %296, %289 : vector<8x512xi1>, vector<8x512xf32>
    %cst_141 = arith.constant dense<0.000000e+00> : vector<8x256xf32>
    %298 = tpu.matmul %295, %6, %cst_141 {dimension_numbers = #tpu.dot_dimension_numbers<[1], [0], [0], [1], [0, 0, 1, 1], [], []>} : vector<8x512xbf16>, vector<512x256xbf16>, vector<8x256xf32> -> vector<8x256xf32>
    %299 = vector.broadcast %7 : vector<1x256xf32> to vector<8x256xf32>
    %300 = arith.addf %298, %299 : vector<8x256xf32>
    %cst_142 = arith.constant 2.000000e-01 : f32
    %301 = vector.broadcast %cst_142 : f32 to vector<8x256xf32>
    %302 = arith.mulf %301, %272 : vector<8x256xf32>
    %303 = arith.addf %302, %300 : vector<8x256xf32>
    %cst_143 = arith.constant 5.000000e-01 : f32
    %304 = vector.broadcast %cst_143 : f32 to vector<8x256xf32>
    %305 = arith.cmpf ogt, %303, %304 : vector<8x256xf32>
    %cst_144 = arith.constant 1.000000e+00 : f32
    %cst_145 = arith.constant 0.000000e+00 : f32
    %306 = vector.broadcast %cst_144 : f32 to vector<8x256xf32>
    %307 = vector.broadcast %cst_145 : f32 to vector<8x256xf32>
    %308 = arith.select %305, %306, %307 : vector<8x256xi1>, vector<8x256xf32>
    %309 = arith.truncf %308 : vector<8x256xf32> to vector<8x256xbf16>
    %cst_146 = arith.constant 0.000000e+00 : f32
    %310 = vector.broadcast %cst_146 : f32 to vector<8x256xf32>
    %311 = arith.select %305, %310, %303 : vector<8x256xi1>, vector<8x256xf32>
    %cst_147 = arith.constant dense<0.000000e+00> : vector<8x128xf32>
    %312 = tpu.matmul %309, %8, %cst_147 {dimension_numbers = #tpu.dot_dimension_numbers<[1], [0], [0], [1], [0, 0, 1, 1], [], []>} : vector<8x256xbf16>, vector<256x128xbf16>, vector<8x128xf32> -> vector<8x128xf32>
    %313 = vector.broadcast %9 : vector<1x128xf32> to vector<8x128xf32>
    %314 = arith.addf %312, %313 : vector<8x128xf32>
    %cst_148 = arith.constant 2.000000e-01 : f32
    %315 = vector.broadcast %cst_148 : f32 to vector<8x128xf32>
    %316 = arith.mulf %315, %285 : vector<8x128xf32>
    %317 = arith.addf %316, %314 : vector<8x128xf32>
    %cst_149 = arith.constant 5.000000e-01 : f32
    %318 = vector.broadcast %cst_149 : f32 to vector<8x128xf32>
    %319 = arith.cmpf ogt, %317, %318 : vector<8x128xf32>
    %cst_150 = arith.constant 1.000000e+00 : f32
    %cst_151 = arith.constant 0.000000e+00 : f32
    %320 = vector.broadcast %cst_150 : f32 to vector<8x128xf32>
    %321 = vector.broadcast %cst_151 : f32 to vector<8x128xf32>
    %322 = arith.select %319, %320, %321 : vector<8x128xi1>, vector<8x128xf32>
    %cst_152 = arith.constant 0.000000e+00 : f32
    %323 = vector.broadcast %cst_152 : f32 to vector<8x128xf32>
    %324 = arith.select %319, %323, %317 : vector<8x128xi1>, vector<8x128xf32>
    %325 = arith.addf %286, %322 : vector<8x128xf32>
    %cst_153 = arith.constant 1.250000e-01 : f32
    %326 = vector.broadcast %cst_153 : f32 to vector<8x128xf32>
    %327 = arith.mulf %325, %326 : vector<8x128xf32>
    %c0_154 = arith.constant 0 : index
    %c0_155 = arith.constant 0 : index
    %328 = vector.load %arg8[%c0_154, %c0_155] : memref<8x128xf32, #tpu.memory_space<vmem>>, vector<8x128xf32>
    tpu.vector_store %arg8[%c0_154, %c0_155], %327 {strides = array<i32>} : memref<8x128xf32, #tpu.memory_space<vmem>>, vector<8x128xf32>,
    return
  }
  func.func @transform_0(%arg0: i32) -> (i32, i32) {
    %c0_i32 = arith.constant 0 : i32
    %c0_i32_0 = arith.constant 0 : i32
    return %arg0, %c0_i32 : i32, i32
  }
  func.func @transform_1(%arg0: i32) -> (i32, i32) {
    %c0_i32 = arith.constant 0 : i32
    %c0_i32_0 = arith.constant 0 : i32
    %c0_i32_1 = arith.constant 0 : i32
    return %c0_i32, %c0_i32_0 : i32, i32
  }
  func.func @transform_2(%arg0: i32) -> (i32, i32) {
    %c0_i32 = arith.constant 0 : i32
    %c0_i32_0 = arith.constant 0 : i32
    %c0_i32_1 = arith.constant 0 : i32
    return %c0_i32, %c0_i32_0 : i32, i32
  }
  func.func @transform_3(%arg0: i32) -> (i32, i32) {
    %c0_i32 = arith.constant 0 : i32
    %c0_i32_0 = arith.constant 0 : i32
    %c0_i32_1 = arith.constant 0 : i32
    return %c0_i32, %c0_i32_0 : i32, i32
  }
  func.func @transform_4(%arg0: i32) -> (i32, i32) {
    %c0_i32 = arith.constant 0 : i32
    %c0_i32_0 = arith.constant 0 : i32
    %c0_i32_1 = arith.constant 0 : i32
    return %c0_i32, %c0_i32_0 : i32, i32
  }
  func.func @transform_5(%arg0: i32) -> (i32, i32) {
    %c0_i32 = arith.constant 0 : i32
    %c0_i32_0 = arith.constant 0 : i32
    %c0_i32_1 = arith.constant 0 : i32
    return %c0_i32, %c0_i32_0 : i32, i32
  }
  func.func @transform_6(%arg0: i32) -> (i32, i32) {
    %c0_i32 = arith.constant 0 : i32
    %c0_i32_0 = arith.constant 0 : i32
    %c0_i32_1 = arith.constant 0 : i32
    return %c0_i32, %c0_i32_0 : i32, i32
  }
  func.func @transform_7(%arg0: i32) -> (i32, i32) {
    %c0_i32 = arith.constant 0 : i32
    %c0_i32_0 = arith.constant 0 : i32
    return %arg0, %c0_i32 : i32, i32
  }
}

</mosaic_0001>

<bundles_post_ra>
// kernel: tpu_custom_call.1
= control target key start
LH: loop header
LB: loop body
LE: loop exit
PB: predicated region body
PF: predicated region fallthrough
CT: control target
= control target key end

     0   :  { %12 = vsyncpa [#allocation3], 0  ;;  %s5736_s0 = inlined_call_operand.hbm [shape: f32[8,784], index: 0, kind: input, shape index: {}]   ;;  %s5737_s1 = inlined_call_operand.hbm [shape: f32[784,512], index: 1, kind: input, shape index: {}]   ;;  %s5738_s2 = inlined_call_operand.hbm [shape: f32[1,512], index: 2, kind: input, shape index: {}]   ;;  %s5739_s3 = inlined_call_operand.hbm [shape: bf16[512,256], index: 3, kind: input, shape index: {}]   ;;  %s5740_s4 = inlined_call_operand.hbm [shape: f32[1,256], index: 4, kind: input, shape index: {}]   ;;  %s5741_s5 = inlined_call_operand.hbm [shape: bf16[256,128], index: 5, kind: input, shape index: {}]   ;;  %s5742_s6 = inlined_call_operand.hbm [shape: f32[1,128], index: 6, kind: input, shape index: {}]   ;;  %s5743_s7 = inlined_call_operand.hbm [shape: f32[8,128], index: 7, kind: output, shape index: {}]  }
   0x1   :  { %13 = vsyncpa [#allocation6], 0 }
   0x2   :  { %14 = vsyncpa [#allocation9], 0 }
   0x3   :  { %15 = vsyncpa [#allocation12], 0 }
   0x4   :  { %16 = vsyncpa [#allocation4], 0  ;;  %s4121_s24 = smov [#allocation5]   ;;  %s3935_s28 = scalar_lea.hbm %s5737_s1, 50176 }
   0x5   :  { %s32_s25 = sshll.u32 %s4121_s24, 4  ;;  %p3936_p0 = scmp.ne.s32.totalorder %s5737_s1, %s3935_s28  ;;  %s33_s25 = int_to_ptr.vmem [resolvable:$true] %s32_s25 }
   0x6   :  { %p3939_p1 = scmp.lt.u32.totalorder %s3935_s28, %s5737_s1 }
   0x8   :  { %p3941_p2 = pnand %p3939_p1, %p3936_p0 }
   0xa   :  { %3944 = shalt.err (!%p3941_p2)
}
   0xb   :  { %s3945_s10 = scalar_lea.vmem %s33_s25, 50176  ;;  %p3950_p4 = scmp.lt.s32.totalorder %s33_s25, %s33_s25 }
   0xc   :  { %p3946_p3 = scmp.ne.s32.totalorder %s33_s25, %s3945_s10  ;;  %p3951_p5 = scmp.lt.s32.totalorder %s3945_s10, %s3945_s10 }
   0xe   :  { %p3952_p6 = por %p3951_p5, %p3950_p4 }
  0x10   :  { %p3953_p7 = pnand %p3952_p6, %p3946_p3 }
  0x12   :  { %3956 = shalt.err (!%p3953_p7)
}
  0x13   :  { %s4122_s11 = smov 512   ;;  %s4123_s12 = smov 32  }
  0x14   :  { %38 = dma.hbm_to_vmem [thread:$0]  %s5737_s1, 50176, %s33_s25, [#allocation6], %s4122_s11, %s4122_s11, %s4123_s12  }
  0x15   :  { %s4124_s15 = smov [#allocation8]   ;;  %s3957_s19 = scalar_lea.hbm %s5739_s3, 8192 }
  0x16   :  { %s54_s16 = sshll.u32 %s4124_s15, 4  ;;  %p3958_p8 = scmp.ne.s32.totalorder %s5739_s3, %s3957_s19  ;;  %s55_s16 = int_to_ptr.vmem [resolvable:$true] %s54_s16 }
  0x17   :  { %p3961_p9 = scmp.lt.u32.totalorder %s3957_s19, %s5739_s3 }
  0x19   :  { %p3963_p10 = pnand %p3961_p9, %p3958_p8 }
  0x1b   :  { %3966 = shalt.err (!%p3963_p10)
}
  0x1c   :  { %s3967_s24 = scalar_lea.vmem %s55_s16, 8192  ;;  %p3972_p12 = scmp.lt.s32.totalorder %s55_s16, %s55_s16 }
  0x1d   :  { %p3968_p11 = scmp.ne.s32.totalorder %s55_s16, %s3967_s24  ;;  %p3973_p13 = scmp.lt.s32.totalorder %s3967_s24, %s3967_s24 }
  0x1f   :  { %p3974_p0 = por %p3973_p13, %p3972_p12 }
  0x21   :  { %p3975_p1 = pnand %p3974_p0, %p3968_p11 }
  0x23   :  { %3978 = shalt.err (!%p3975_p1)
}
  0x24   :  { %s4125_s1 = smov 128   ;;  %s4126_s25 = smov 8  }
  0x25   :  { %60 = dma.hbm_to_vmem [thread:$0]  %s5739_s3, 8192, %s55_s16, [#allocation9], %s4125_s1, %s4125_s1, %s4126_s25  }
  0x26   :  { %s4127_s28 = smov [#allocation11]   ;;  %s3979_s9 = scalar_lea.hbm %s5741_s5, 2048 }
  0x27   :  { %s76_s29 = sshll.u32 %s4127_s28, 4  ;;  %p3980_p2 = scmp.ne.s32.totalorder %s5741_s5, %s3979_s9  ;;  %s77_s29 = int_to_ptr.vmem [resolvable:$true] %s76_s29 }
  0x28   :  { %p3983_p3 = scmp.lt.u32.totalorder %s3979_s9, %s5741_s5 }
  0x2a   :  { %p3985_p4 = pnand %p3983_p3, %p3980_p2 }
  0x2c   :  { %3988 = shalt.err (!%p3985_p4)
}
  0x2d   :  { %s3989_s14 = scalar_lea.vmem %s77_s29, 2048  ;;  %p3994_p6 = scmp.lt.s32.totalorder %s77_s29, %s77_s29 }
  0x2e   :  { %p3990_p5 = scmp.ne.s32.totalorder %s77_s29, %s3989_s14  ;;  %p3995_p7 = scmp.lt.s32.totalorder %s3989_s14, %s3989_s14 }
  0x30   :  { %p3996_p8 = por %p3995_p7, %p3994_p6 }
  0x32   :  { %p3997_p9 = pnand %p3996_p8, %p3990_p5 }
  0x34   :  { %4000 = shalt.err (!%p3997_p9)
}
  0x35   :  { %s4128_s3 = smov 64   ;;  %s4129_s15 = smov 4  }
  0x36   :  { %82 = dma.hbm_to_vmem [thread:$0]  %s5741_s5, 2048, %s77_s29, [#allocation12], %s4128_s3, %s4128_s3, %s4129_s15  }
  0x37   :  { %s4130_s18 = smov [#allocation2]   ;;  %s4131_s20 = smov [#allocation7]  }
  0x38   :  { %s23_s19 = sshll.u32 %s4130_s18, 4  ;;  %s45_s21 = sshll.u32 %s4131_s20, 4  ;;  %s24_s19 = int_to_ptr.vmem [resolvable:$true] %s23_s19  ;;  %s46_s21 = int_to_ptr.vmem [resolvable:$true] %s45_s21 }
  0x39   :  { %s4001_s24 = scalar_lea.hbm %s5736_s0, 896 }
  0x3a   :  { %p4002_p10 = scmp.ne.s32.totalorder %s5736_s0, %s4001_s24  ;;  %p4005_p11 = scmp.lt.u32.totalorder %s4001_s24, %s5736_s0 }
  0x3c   :  { %p4007_p12 = pnand %p4005_p11, %p4002_p10 }
  0x3e   :  { %4010 = shalt.err (!%p4007_p12)
}
  0x3f   :  { %s4011_s5 = scalar_lea.vmem %s24_s19, 896  ;;  %p4016_p0 = scmp.lt.s32.totalorder %s24_s19, %s24_s19 }
  0x40   :  { %p4012_p13 = scmp.ne.s32.totalorder %s24_s19, %s4011_s5  ;;  %p4017_p1 = scmp.lt.s32.totalorder %s4011_s5, %s4011_s5 }
  0x42   :  { %p4018_p2 = por %p4017_p1, %p4016_p0 }
  0x44   :  { %p4019_p3 = pnand %p4018_p2, %p4012_p13 }
  0x46   :  { %4022 = shalt.err (!%p4019_p3)
}
  0x47   :  { %26 = dma.hbm_to_vmem [thread:$0]  %s5736_s0, 896, %s24_s19, [#allocation3]  }
  0x48   :  { %s4023_s9 = scalar_lea.hbm %s5738_s2, 64 }
  0x49   :  { %p4024_p4 = scmp.ne.s32.totalorder %s5738_s2, %s4023_s9  ;;  %p4027_p5 = scmp.lt.u32.totalorder %s4023_s9, %s5738_s2 }
  0x4b   :  { %p4029_p6 = pnand %p4027_p5, %p4024_p4 }
  0x4d   :  { %4032 = shalt.err (!%p4029_p6)
}
  0x4e   :  { %s4033_s14 = scalar_lea.vmem %s46_s21, 64  ;;  %p4038_p8 = scmp.lt.s32.totalorder %s46_s21, %s46_s21 }
  0x4f   :  { %p4034_p7 = scmp.ne.s32.totalorder %s46_s21, %s4033_s14  ;;  %p4039_p9 = scmp.lt.s32.totalorder %s4033_s14, %s4033_s14 }
  0x51   :  { %p4040_p10 = por %p4039_p9, %p4038_p8 }
  0x53   :  { %p4041_p11 = pnand %p4040_p10, %p4034_p7 }
  0x55   :  { %4044 = shalt.err (!%p4041_p11)
}
  0x56   :  { %48 = dma.hbm_to_vmem [thread:$0]  %s5738_s2, 64, %s46_s21, [#allocation6]  }
  0x57   :  { %s4132_s15 = smov [#allocation10]   ;;  %s4133_s17 = smov [#allocation13]  }
  0x58   :  { %s67_s16 = sshll.u32 %s4132_s15, 4  ;;  %s89_s18 = sshll.u32 %s4133_s17, 4  ;;  %s68_s16 = int_to_ptr.vmem [resolvable:$true] %s67_s16  ;;  %s90_s18 = int_to_ptr.vmem [resolvable:$true] %s89_s18 }
  0x59   :  { %s4045_s22 = scalar_lea.hbm %s5740_s4, 32 }
  0x5a   :  { %p4046_p12 = scmp.ne.s32.totalorder %s5740_s4, %s4045_s22  ;;  %p4049_p13 = scmp.lt.u32.totalorder %s4045_s22, %s5740_s4 }
  0x5c   :  { %p4051_p0 = pnand %p4049_p13, %p4046_p12 }
  0x5e   :  { %4054 = shalt.err (!%p4051_p0)
}
  0x5f   :  { %s4055_s2 = scalar_lea.vmem %s68_s16, 32  ;;  %p4060_p2 = scmp.lt.s32.totalorder %s68_s16, %s68_s16 }
  0x60   :  { %p4056_p1 = scmp.ne.s32.totalorder %s68_s16, %s4055_s2  ;;  %p4061_p3 = scmp.lt.s32.totalorder %s4055_s2, %s4055_s2 }
  0x62   :  { %p4062_p4 = por %p4061_p3, %p4060_p2 }
  0x64   :  { %p4063_p5 = pnand %p4062_p4, %p4056_p1 }
  0x66   :  { %4066 = shalt.err (!%p4063_p5)
}
  0x67   :  { %70 = dma.hbm_to_vmem [thread:$0]  %s5740_s4, 32, %s68_s16, [#allocation9]  }
  0x68   :  { %s4067_s28 = scalar_lea.hbm %s5742_s6, 16 }
  0x69   :  { %p4068_p6 = scmp.ne.s32.totalorder %s5742_s6, %s4067_s28  ;;  %p4071_p7 = scmp.lt.u32.totalorder %s4067_s28, %s5742_s6 }
  0x6b   :  { %p4073_p8 = pnand %p4071_p7, %p4068_p6 }
  0x6d   :  { %4076 = shalt.err (!%p4073_p8)
}
  0x6e   :  { %s4077_s10 = scalar_lea.vmem %s90_s18, 16  ;;  %s4081_s11 = scalar_lea.vmem %s90_s18, 32 }
  0x6f   :  { %p4078_p9 = scmp.ne.s32.totalorder %s90_s18, %s4077_s10  ;;  %p4082_p10 = scmp.lt.s32.totalorder %s90_s18, %s90_s18 }
  0x70   :  { %p4083_p11 = scmp.lt.s32.totalorder %s4081_s11, %s4077_s10 }
  0x72   :  { %p4084_p12 = por %p4083_p11, %p4082_p10 }
  0x74   :  { %p4085_p13 = pnand %p4084_p12, %p4078_p9 }
  0x76   :  { %4088 = shalt.err (!%p4085_p13)
}
  0x77   :  { %92 = dma.hbm_to_vmem [thread:$0]  %s5742_s6, 16, %s90_s18, [#allocation12]  }
  0x78   :  { %4111 = dma.done.wait [#allocation3], 896  }
  0x79   :  { %4112 = vsyncadd [#allocation3], 4294966400 }
  0x7a   :  { %4113 = dma.done.wait [#allocation6], 50240  }
  0x7b   :  { %4114 = vsyncadd [#allocation6], 4294917056 }
  0x7c   :  { %4115 = dma.done.wait [#allocation9], 8224  }
  0x7d   :  { %4116 = vsyncadd [#allocation9], 4294959072 }
  0x7e   :  { %4117 = dma.done.wait [#allocation12], 2064  }
  0x7f   :  { %4118 = vsyncadd [#allocation12], 4294965232  ;;  %v123_v0 = vld [vmem:[#allocation5 + $0x8] sm:$0xff]  ;;  %v125_v2 = vld [vmem:[#allocation5 + $0x18] sm:$0xff]  ;;  %vm536_vm0 = vcmask 130048   ;;  %s4136_s6 = smov [#allocation14]  }
  0x80   :  { %v127_v1 = vld [vmem:[#allocation5 + $0x28] sm:$0xff]  ;;  %v129_v4 = vld [vmem:[#allocation5 + $0x38] sm:$0xff]  ;;  %v122_v5 = vld [vmem:[#allocation5] sm:$0xff]  ;;  %s2945_s13 = sshll.u32 %s4136_s6, 4  ;;  %s2946_s13 = int_to_ptr.vmem [resolvable:$true] %s2945_s13 }
  0x81   :  { %v3312_v3 = vpack.c.bf16 %v127_v1, %v123_v0  ;;  %v126_v6 = vld [vmem:[#allocation5 + $0x20] sm:$0xff]  ;;  %v3508_v7 = vpack.c.bf16 %v129_v4, %v125_v2  ;;  %v124_v9 = vld [vmem:[#allocation5 + $0x10] sm:$0xff]  ;;  %v131_v11 = vld [vmem:[#allocation5 + $0x48] sm:$0xff]  ;;  %s4089_s14 = scalar_lea.vmem %s2946_s13, 128  ;;  %p4094_p1 = scmp.lt.s32.totalorder %s2946_s13, %s2946_s13 }
  0x82   :  { %v3314_v8 = vpack.c.bf16 %v126_v6, %v122_v5  ;;  %v128_v10 = vld [vmem:[#allocation5 + $0x30] sm:$0xff]  ;;  %v135_v13 = vld [vmem:[#allocation5 + $0x68] sm:$0xff]  ;;  %v133_v14 = vld [vmem:[#allocation5 + $0x58] sm:$0xff]  ;;  %p4090_p0 = scmp.ne.s32.totalorder %s2946_s13, %s4089_s14  ;;  %p4095_p2 = scmp.lt.s32.totalorder %s4089_s14, %s4089_s14 }
  0x83   :  { %3313 = vmatprep.subr.bf16.mxu0 %v3312_v3  ;;  %v3510_v12 = vpack.c.bf16 %v128_v10, %v124_v9  ;;  %v137_v15 = vld [vmem:[#allocation5 + $0x78] sm:$0xff]  ;;  %3509 = vmatprep.subr.bf16.mxu1 %v3508_v7  ;;  %v3316_v16 = vpack.c.bf16 %v135_v13, %v131_v11  ;;  %v130_v18 = vld [vmem:[#allocation5 + $0x40] sm:$0xff]  ;;  %v132_v20 = vld [vmem:[#allocation5 + $0x50] sm:$0xff] }
  0x84   :  { %3315 = vmatpush1.bf16.msra.mxu0 %v3314_v8  ;;  %v3512_v17 = vpack.c.bf16 %v137_v15, %v133_v14  ;;  %v134_v19 = vld [vmem:[#allocation5 + $0x60] sm:$0xff]  ;;  %v136_v22 = vld [vmem:[#allocation5 + $0x70] sm:$0xff]  ;;  %v139_v23 = vld [vmem:[#allocation5 + $0x88] sm:$0xff]  ;;  %p4096_p3 = por %p4095_p2, %p4094_p1 }
  0x85   :  { %3511 = vmatpush1.bf16.msra.mxu1 %v3510_v12  ;;  %v3318_v21 = vpack.c.bf16 %v134_v19, %v130_v18  ;;  %v143_v24 = vld [vmem:[#allocation5 + $0xa8] sm:$0xff]  ;;  %3317 = vmatprep.subr.bf16.mxu0 %v3316_v16  ;;  %v3514_v25 = vpack.c.bf16 %v136_v22, %v132_v20  ;;  %v141_v27 = vld [vmem:[#allocation5 + $0x98] sm:$0xff]  ;;  %v138_v29 = vld [vmem:[#allocation5 + $0x80] sm:$0xff] }
  0x86   :  { %3513 = vmatprep.subr.bf16.mxu1 %v3512_v17  ;;  %v3320_v26 = vpack.c.bf16 %v143_v24, %v139_v23  ;;  %v145_v28 = vld [vmem:[#allocation5 + $0xb8] sm:$0xff]  ;;  %v142_v31 = vld [vmem:[#allocation5 + $0xa0] sm:$0xff]  ;;  %v140_v32 = vld [vmem:[#allocation5 + $0x90] sm:$0xff]  ;;  %p4097_p4 = pnand %p4096_p3, %p4090_p0 }
  0x87   :  { %v3516_v30 = vpack.c.bf16 %v145_v28, %v141_v27  ;;  %v144_v33 = vld [vmem:[#allocation5 + $0xb0] sm:$0xff]  ;;  %v3322_v34 = vpack.c.bf16 %v142_v31, %v138_v29  ;;  %v147_v35 = vld [vmem:[#allocation5 + $0xc8] sm:$0xff]  ;;  %v149_v37 = vld [vmem:[#allocation5 + $0xd8] sm:$0xff] }
  0x88   :  { %3319 = vmatpush1.bf16.msra.mxu0 %v3318_v21  ;;  %v151_v36 = vld [vmem:[#allocation5 + $0xe8] sm:$0xff]  ;;  %v3518_v38 = vpack.c.bf16 %v144_v33, %v140_v32  ;;  %v153_v40 = vld [vmem:[#allocation5 + $0xf8] sm:$0xff]  ;;  %v146_v41 = vld [vmem:[#allocation5 + $0xc0] sm:$0xff] }
  0x89   :  { %3515 = vmatpush1.bf16.msra.mxu1 %v3514_v25  ;;  %3321 = vmatprep.subr.bf16.mxu0 %v3320_v26  ;;  %v3324_v39 = vpack.c.bf16 %v151_v36, %v147_v35  ;;  %v150_v42 = vld [vmem:[#allocation5 + $0xe0] sm:$0xff]  ;;  %v3520_v43 = vpack.c.bf16 %v153_v40, %v149_v37  ;;  %v148_v44 = vld [vmem:[#allocation5 + $0xd0] sm:$0xff]  ;;  %v155_v46 = vld [vmem:[#allocation5 + $0x108] sm:$0xff] }
  0x8a   :  { %3517 = vmatprep.subr.bf16.mxu1 %v3516_v30  ;;  %v152_v45 = vld [vmem:[#allocation5 + $0xf0] sm:$0xff]  ;;  %v159_v47 = vld [vmem:[#allocation5 + $0x128] sm:$0xff]  ;;  %v157_v48 = vld [vmem:[#allocation5 + $0x118] sm:$0xff]  ;;  %v3326_v50 = vpack.c.bf16 %v150_v42, %v146_v41 }
  0x8b   :  { %v161_v49 = vld [vmem:[#allocation5 + $0x138] sm:$0xff]  ;;  %v3522_v51 = vpack.c.bf16 %v152_v45, %v148_v44  ;;  %v3328_v52 = vpack.c.bf16 %v159_v47, %v155_v46  ;;  %v154_v53 = vld [vmem:[#allocation5 + $0x100] sm:$0xff]  ;;  %v156_v55 = vld [vmem:[#allocation5 + $0x110] sm:$0xff] }
  0x8c   :  { %3323 = vmatpush1.bf16.msra.mxu0 %v3322_v34  ;;  %v158_v54 = vld [vmem:[#allocation5 + $0x120] sm:$0xff]  ;;  %v3524_v56 = vpack.c.bf16 %v161_v49, %v157_v48  ;;  %v160_v57 = vld [vmem:[#allocation5 + $0x130] sm:$0xff]  ;;  %v163_v58 = vld [vmem:[#allocation5 + $0x148] sm:$0xff] }
  0x8d   :  { %3519 = vmatpush1.bf16.msra.mxu1 %v3518_v38  ;;  %3325 = vmatprep.subr.bf16.mxu0 %v3324_v39  ;;  %v167_v59 = vld [vmem:[#allocation5 + $0x168] sm:$0xff]  ;;  %v165_v60 = vld [vmem:[#allocation5 + $0x158] sm:$0xff]  ;;  %v3330_v62 = vpack.c.bf16 %v158_v54, %v154_v53  ;;  %v3526_v63 = vpack.c.bf16 %v160_v57, %v156_v55  ;;  %v162_v1 = vld [vmem:[#allocation5 + $0x140] sm:$0xff] }
  0x8e   :  { %3521 = vmatprep.subr.bf16.mxu1 %v3520_v43  ;;  %v169_v61 = vld [vmem:[#allocation5 + $0x178] sm:$0xff]  ;;  %v3332_v0 = vpack.c.bf16 %v167_v59, %v163_v58  ;;  %v166_v2 = vld [vmem:[#allocation5 + $0x160] sm:$0xff]  ;;  %v164_v3 = vld [vmem:[#allocation5 + $0x150] sm:$0xff] }
  0x8f   :  { %v3528_v4 = vpack.c.bf16 %v169_v61, %v165_v60  ;;  %v168_v5 = vld [vmem:[#allocation5 + $0x170] sm:$0xff]  ;;  %v171_v6 = vld [vmem:[#allocation5 + $0x188] sm:$0xff]  ;;  %v173_v8 = vld [vmem:[#allocation5 + $0x198] sm:$0xff]  ;;  %v3334_v10 = vpack.c.bf16 %v166_v2, %v162_v1 }
  0x90   :  { %3327 = vmatpush1.bf16.msra.mxu0 %v3326_v50  ;;  %v175_v7 = vld [vmem:[#allocation5 + $0x1a8] sm:$0xff]  ;;  %v177_v9 = vld [vmem:[#allocation5 + $0x1b8] sm:$0xff]  ;;  %v3530_v11 = vpack.c.bf16 %v168_v5, %v164_v3  ;;  %v170_v13 = vld [vmem:[#allocation5 + $0x180] sm:$0xff] }
  0x91   :  { %3523 = vmatpush1.bf16.msra.mxu1 %v3522_v51  ;;  %3329 = vmatprep.subr.bf16.mxu0 %v3328_v52  ;;  %v3336_v12 = vpack.c.bf16 %v175_v7, %v171_v6  ;;  %v174_v14 = vld [vmem:[#allocation5 + $0x1a0] sm:$0xff]  ;;  %v172_v15 = vld [vmem:[#allocation5 + $0x190] sm:$0xff]  ;;  %v3532_v16 = vpack.c.bf16 %v177_v9, %v173_v8  ;;  %v179_v18 = vld [vmem:[#allocation5 + $0x1c8] sm:$0xff] }
  0x92   :  { %3525 = vmatprep.subr.bf16.mxu1 %v3524_v56  ;;  %v176_v17 = vld [vmem:[#allocation5 + $0x1b0] sm:$0xff]  ;;  %v183_v19 = vld [vmem:[#allocation5 + $0x1e8] sm:$0xff]  ;;  %v181_v20 = vld [vmem:[#allocation5 + $0x1d8] sm:$0xff]  ;;  %v3338_v22 = vpack.c.bf16 %v174_v14, %v170_v13 }
  0x93   :  { %v185_v21 = vld [vmem:[#allocation5 + $0x1f8] sm:$0xff]  ;;  %v3534_v23 = vpack.c.bf16 %v176_v17, %v172_v15  ;;  %v3340_v24 = vpack.c.bf16 %v183_v19, %v179_v18  ;;  %v178_v25 = vld [vmem:[#allocation5 + $0x1c0] sm:$0xff]  ;;  %v180_v27 = vld [vmem:[#allocation5 + $0x1d0] sm:$0xff] }
  0x94   :  { %3331 = vmatpush1.bf16.msra.mxu0 %v3330_v62  ;;  %v182_v26 = vld [vmem:[#allocation5 + $0x1e0] sm:$0xff]  ;;  %v3536_v28 = vpack.c.bf16 %v185_v21, %v181_v20  ;;  %v184_v29 = vld [vmem:[#allocation5 + $0x1f0] sm:$0xff]  ;;  %v187_v30 = vld [vmem:[#allocation5 + $0x208] sm:$0xff] }
  0x95   :  { %3527 = vmatpush1.bf16.msra.mxu1 %v3526_v63  ;;  %3333 = vmatprep.subr.bf16.mxu0 %v3332_v0  ;;  %v191_v31 = vld [vmem:[#allocation5 + $0x228] sm:$0xff]  ;;  %v189_v32 = vld [vmem:[#allocation5 + $0x218] sm:$0xff]  ;;  %v3342_v34 = vpack.c.bf16 %v182_v26, %v178_v25  ;;  %v3538_v35 = vpack.c.bf16 %v184_v29, %v180_v27  ;;  %v186_v37 = vld [vmem:[#allocation5 + $0x200] sm:$0xff] }
  0x96   :  { %3529 = vmatprep.subr.bf16.mxu1 %v3528_v4  ;;  %v193_v33 = vld [vmem:[#allocation5 + $0x238] sm:$0xff]  ;;  %v3344_v36 = vpack.c.bf16 %v191_v31, %v187_v30  ;;  %v190_v38 = vld [vmem:[#allocation5 + $0x220] sm:$0xff]  ;;  %v188_v39 = vld [vmem:[#allocation5 + $0x210] sm:$0xff] }
  0x97   :  { %v3540_v40 = vpack.c.bf16 %v193_v33, %v189_v32  ;;  %v192_v41 = vld [vmem:[#allocation5 + $0x230] sm:$0xff]  ;;  %v195_v42 = vld [vmem:[#allocation5 + $0x248] sm:$0xff]  ;;  %v197_v44 = vld [vmem:[#allocation5 + $0x258] sm:$0xff]  ;;  %v3346_v46 = vpack.c.bf16 %v190_v38, %v186_v37 }
  0x98   :  { %3335 = vmatpush1.bf16.msra.mxu0 %v3334_v10  ;;  %v199_v43 = vld [vmem:[#allocation5 + $0x268] sm:$0xff]  ;;  %v201_v45 = vld [vmem:[#allocation5 + $0x278] sm:$0xff]  ;;  %v3542_v47 = vpack.c.bf16 %v192_v41, %v188_v39  ;;  %v194_v49 = vld [vmem:[#allocation5 + $0x240] sm:$0xff] }
  0x99   :  { %3531 = vmatpush1.bf16.msra.mxu1 %v3530_v11  ;;  %3337 = vmatprep.subr.bf16.mxu0 %v3336_v12  ;;  %v3348_v48 = vpack.c.bf16 %v199_v43, %v195_v42  ;;  %v198_v50 = vld [vmem:[#allocation5 + $0x260] sm:$0xff]  ;;  %v196_v51 = vld [vmem:[#allocation5 + $0x250] sm:$0xff]  ;;  %v3544_v52 = vpack.c.bf16 %v201_v45, %v197_v44  ;;  %v203_v54 = vld [vmem:[#allocation5 + $0x288] sm:$0xff] }
  0x9a   :  { %3533 = vmatprep.subr.bf16.mxu1 %v3532_v16  ;;  %v200_v53 = vld [vmem:[#allocation5 + $0x270] sm:$0xff]  ;;  %v207_v55 = vld [vmem:[#allocation5 + $0x2a8] sm:$0xff]  ;;  %v205_v56 = vld [vmem:[#allocation5 + $0x298] sm:$0xff]  ;;  %v3350_v58 = vpack.c.bf16 %v198_v50, %v194_v49 }
  0x9b   :  { %v209_v57 = vld [vmem:[#allocation5 + $0x2b8] sm:$0xff]  ;;  %v3546_v59 = vpack.c.bf16 %v200_v53, %v196_v51  ;;  %v3352_v60 = vpack.c.bf16 %v207_v55, %v203_v54  ;;  %v202_v61 = vld [vmem:[#allocation5 + $0x280] sm:$0xff]  ;;  %v204_v63 = vld [vmem:[#allocation5 + $0x290] sm:$0xff] }
  0x9c   :  { %3339 = vmatpush1.bf16.msra.mxu0 %v3338_v22  ;;  %v206_v62 = vld [vmem:[#allocation5 + $0x2a0] sm:$0xff]  ;;  %v3548_v0 = vpack.c.bf16 %v209_v57, %v205_v56  ;;  %v208_v1 = vld [vmem:[#allocation5 + $0x2b0] sm:$0xff]  ;;  %v211_v2 = vld [vmem:[#allocation5 + $0x2c8] sm:$0xff] }
  0x9d   :  { %3535 = vmatpush1.bf16.msra.mxu1 %v3534_v23  ;;  %3341 = vmatprep.subr.bf16.mxu0 %v3340_v24  ;;  %v215_v3 = vld [vmem:[#allocation5 + $0x2e8] sm:$0xff]  ;;  %v213_v4 = vld [vmem:[#allocation5 + $0x2d8] sm:$0xff]  ;;  %v3354_v6 = vpack.c.bf16 %v206_v62, %v202_v61  ;;  %v210_v7 = vld [vmem:[#allocation5 + $0x2c0] sm:$0xff]  ;;  %v3550_v8 = vpack.c.bf16 %v208_v1, %v204_v63 }
  0x9e   :  { %3537 = vmatprep.subr.bf16.mxu1 %v3536_v28  ;;  %v217_v5 = vld [vmem:[#allocation5 + $0x2f8] sm:$0xff]  ;;  %v3356_v9 = vpack.c.bf16 %v215_v3, %v211_v2  ;;  %v214_v10 = vld [vmem:[#allocation5 + $0x2e0] sm:$0xff]  ;;  %v212_v11 = vld [vmem:[#allocation5 + $0x2d0] sm:$0xff] }
  0x9f   :  { %v216_v12 = vld [vmem:[#allocation5 + $0x2f0] sm:$0xff]  ;;  %v3552_v13 = vpack.c.bf16 %v217_v5, %v213_v4  ;;  %v219_v14 = vld [vmem:[#allocation5 + $0x308] sm:$0xff]  ;;  %v221_v17 = vld [vmem:[#allocation5 + $0x318] sm:$0xff]  ;;  %v3358_v19 = vpack.c.bf16 %v214_v10, %v210_v7 }
  0xa0   :  { %3343 = vmatpush1.bf16.msra.mxu0 %v3342_v34  ;;  %v223_v15 = vld [vmem:[#allocation5 + $0x328] sm:$0xff]  ;;  %v116_v16 = vld [vmem:[#allocation2 + $0x8] sm:$0xff]  ;;  %v225_v18 = vld [vmem:[#allocation5 + $0x338] sm:$0xff]  ;;  %v3554_v20 = vpack.c.bf16 %v216_v12, %v212_v11 }
  0xa1   :  { %3539 = vmatpush1.bf16.msra.mxu1 %v3538_v35  ;;  %3345 = vmatprep.subr.bf16.mxu0 %v3344_v36  ;;  %v3360_v21 = vpack.c.bf16 %v223_v15, %v219_v14  ;;  %v218_v22 = vld [vmem:[#allocation5 + $0x300] sm:$0xff]  ;;  %v220_v24 = vld [vmem:[#allocation5 + $0x310] sm:$0xff]  ;;  %v3556_v25 = vpack.c.bf16 %v225_v18, %v221_v17  ;;  %v227_v27 = vld [vmem:[#allocation5 + $0x348] sm:$0xff] }
  0xa2   :  { %3541 = vmatprep.subr.bf16.mxu1 %v3540_v40  ;;  %604 = vmatprep.mubr.f32.mxu0 %v116_v16  ;;  %v222_v23 = vld [vmem:[#allocation5 + $0x320] sm:$0xff]  ;;  %v224_v26 = vld [vmem:[#allocation5 + $0x330] sm:$0xff]  ;;  %v231_v28 = vld [vmem:[#allocation5 + $0x368] sm:$0xff] }
  0xa3   :  { %888 = vmatprep.mubr.f32.mxu1 %v116_v16  ;;  %v229_v29 = vld [vmem:[#allocation5 + $0x358] sm:$0xff]  ;;  %v3362_v31 = vpack.c.bf16 %v222_v23, %v218_v22  ;;  %v3558_v32 = vpack.c.bf16 %v224_v26, %v220_v24  ;;  %v3364_v33 = vpack.c.bf16 %v231_v28, %v227_v27  ;;  %v226_v34 = vld [vmem:[#allocation5 + $0x340] sm:$0xff]  ;;  %v228_v36 = vld [vmem:[#allocation5 + $0x350] sm:$0xff] }
  0xa4   :  { %3347 = vmatpush1.bf16.msra.mxu0 %v3346_v46  ;;  %v233_v30 = vld [vmem:[#allocation5 + $0x378] sm:$0xff]  ;;  %v230_v35 = vld [vmem:[#allocation5 + $0x360] sm:$0xff]  ;;  %v232_v38 = vld [vmem:[#allocation5 + $0x370] sm:$0xff] }
  0xa5   :  { %3543 = vmatpush1.bf16.msra.mxu1 %v3542_v47  ;;  %3349 = vmatprep.subr.bf16.mxu0 %v3348_v48  ;;  %v3560_v37 = vpack.c.bf16 %v233_v30, %v229_v29  ;;  %v235_v39 = vld [vmem:[#allocation5 + $0x388] sm:$0xff]  ;;  %v237_v41 = vld [vmem:[#allocation5 + $0x398] sm:$0xff]  ;;  %v3366_v43 = vpack.c.bf16 %v230_v35, %v226_v34  ;;  %v3562_v44 = vpack.c.bf16 %v232_v38, %v228_v36  ;;  %v234_v46 = vld [vmem:[#allocation5 + $0x380] sm:$0xff] }
  0xa6   :  { %3545 = vmatprep.subr.bf16.mxu1 %v3544_v52  ;;  %v239_v40 = vld [vmem:[#allocation5 + $0x3a8] sm:$0xff]  ;;  %v241_v42 = vld [vmem:[#allocation5 + $0x3b8] sm:$0xff]  ;;  %v238_v47 = vld [vmem:[#allocation5 + $0x3a0] sm:$0xff] }
  0xa7   :  { %v3368_v45 = vpack.c.bf16 %v239_v40, %v235_v39  ;;  %v236_v48 = vld [vmem:[#allocation5 + $0x390] sm:$0xff]  ;;  %v3564_v49 = vpack.c.bf16 %v241_v42, %v237_v41  ;;  %v243_v51 = vld [vmem:[#allocation5 + $0x3c8] sm:$0xff]  ;;  %v245_v53 = vld [vmem:[#allocation5 + $0x3d8] sm:$0xff]  ;;  %v3370_v55 = vpack.c.bf16 %v238_v47, %v234_v46 }
  0xa8   :  { %3351 = vmatpush1.bf16.msra.mxu0 %v3350_v58  ;;  %v240_v50 = vld [vmem:[#allocation5 + $0x3b0] sm:$0xff]  ;;  %v247_v52 = vld [vmem:[#allocation5 + $0x3e8] sm:$0xff]  ;;  %v249_v54 = vld [vmem:[#allocation5 + $0x3f8] sm:$0xff] }
  0xa9   :  { %3547 = vmatpush1.bf16.msra.mxu1 %v3546_v59  ;;  %3353 = vmatprep.subr.bf16.mxu0 %v3352_v60  ;;  %v3566_v56 = vpack.c.bf16 %v240_v50, %v236_v48  ;;  %v3372_v57 = vpack.c.bf16 %v247_v52, %v243_v51  ;;  %v242_v58 = vld [vmem:[#allocation5 + $0x3c0] sm:$0xff]  ;;  %v244_v60 = vld [vmem:[#allocation5 + $0x3d0] sm:$0xff]  ;;  %v3568_v61 = vpack.c.bf16 %v249_v54, %v245_v53  ;;  %v251_v63 = vld [vmem:[#allocation5 + $0x408] sm:$0xff] }
  0xaa   :  { %3549 = vmatprep.subr.bf16.mxu1 %v3548_v0  ;;  %v246_v59 = vld [vmem:[#allocation5 + $0x3e0] sm:$0xff]  ;;  %v248_v62 = vld [vmem:[#allocation5 + $0x3f0] sm:$0xff]  ;;  %v255_v0 = vld [vmem:[#allocation5 + $0x428] sm:$0xff] }
  0xab   :  { %v253_v1 = vld [vmem:[#allocation5 + $0x418] sm:$0xff]  ;;  %v3374_v3 = vpack.c.bf16 %v246_v59, %v242_v58  ;;  %v3570_v4 = vpack.c.bf16 %v248_v62, %v244_v60  ;;  %v3376_v5 = vpack.c.bf16 %v255_v0, %v251_v63  ;;  %v254_v7 = vld [vmem:[#allocation5 + $0x420] sm:$0xff]  ;;  %v256_v10 = vld [vmem:[#allocation5 + $0x430] sm:$0xff] }
  0xac   :  { %3355 = vmatpush1.bf16.msra.mxu0 %v3354_v6  ;;  %v257_v2 = vld [vmem:[#allocation5 + $0x438] sm:$0xff]  ;;  %v250_v6 = vld [vmem:[#allocation5 + $0x400] sm:$0xff]  ;;  %v259_v11 = vld [vmem:[#allocation5 + $0x448] sm:$0xff] }
  0xad   :  { %3551 = vmatpush1.bf16.msra.mxu1 %v3550_v8  ;;  %3357 = vmatprep.subr.bf16.mxu0 %v3356_v9  ;;  %v252_v8 = vld [vmem:[#allocation5 + $0x410] sm:$0xff]  ;;  %v3572_v9 = vpack.c.bf16 %v257_v2, %v253_v1  ;;  %v263_v12 = vld [vmem:[#allocation5 + $0x468] sm:$0xff]  ;;  %v265_v14 = vld [vmem:[#allocation5 + $0x478] sm:$0xff]  ;;  %v3378_v16 = vpack.c.bf16 %v254_v7, %v250_v6 }
  0xae   :  { %3553 = vmatprep.subr.bf16.mxu1 %v3552_v13  ;;  %v261_v13 = vld [vmem:[#allocation5 + $0x458] sm:$0xff]  ;;  %v115_v15 = vld [vmem:[#allocation2] sm:$0xff]  ;;  %v3574_v17 = vpack.c.bf16 %v256_v10, %v252_v8  ;;  %v3380_v18 = vpack.c.bf16 %v263_v12, %v259_v11  ;;  %v264_v23 = vld [vmem:[#allocation5 + $0x470] sm:$0xff] }
  0xaf   :  { %v3576_v22 = vpack.c.bf16 %v265_v14, %v261_v13  ;;  %v267_v24 = vld [vmem:[#allocation5 + $0x488] sm:$0xff]  ;;  %v269_v26 = vld [vmem:[#allocation5 + $0x498] sm:$0xff]  ;;  %v272_v35 = vld [vmem:[#allocation5 + $0x4b0] sm:$0xff] }
  0xb0   :  { %3359 = vmatpush1.bf16.msra.mxu0 %v3358_v19  ;;  %v258_v19 = vld [vmem:[#allocation5 + $0x440] sm:$0xff]  ;;  %v273_v27 = vld [vmem:[#allocation5 + $0x4b8] sm:$0xff]  ;;  %v275_v36 = vld [vmem:[#allocation5 + $0x4c8] sm:$0xff] }
  0xb1   :  { %3555 = vmatpush1.bf16.msra.mxu1 %v3554_v20  ;;  %3361 = vmatprep.subr.bf16.mxu0 %v3360_v21  ;;  %v262_v20 = vld [vmem:[#allocation5 + $0x460] sm:$0xff]  ;;  %v260_v21 = vld [vmem:[#allocation5 + $0x450] sm:$0xff]  ;;  %v3580_v34 = vpack.c.bf16 %v273_v27, %v269_v26  ;;  %v277_v38 = vld [vmem:[#allocation5 + $0x4d8] sm:$0xff] }
  0xb2   :  { %3557 = vmatprep.subr.bf16.mxu1 %v3556_v25  ;;  %v271_v25 = vld [vmem:[#allocation5 + $0x4a8] sm:$0xff]  ;;  %v3382_v28 = vpack.c.bf16 %v262_v20, %v258_v19  ;;  %v3578_v29 = vpack.c.bf16 %v264_v23, %v260_v21  ;;  %v281_v39 = vld [vmem:[#allocation5 + $0x4f8] sm:$0xff]  ;;  %v280_v47 = vld [vmem:[#allocation5 + $0x4f0] sm:$0xff] }
  0xb3   :  { %v3384_v30 = vpack.c.bf16 %v271_v25, %v267_v24  ;;  %v3584_v46 = vpack.c.bf16 %v281_v39, %v277_v38  ;;  %v283_v48 = vld [vmem:[#allocation5 + $0x508] sm:$0xff]  ;;  %v285_v50 = vld [vmem:[#allocation5 + $0x518] sm:$0xff]  ;;  %v288_v59 = vld [vmem:[#allocation5 + $0x530] sm:$0xff] }
  0xb4   :  { %3363 = vmatpush1.bf16.msra.mxu0 %v3362_v31  ;;  %v266_v31 = vld [vmem:[#allocation5 + $0x480] sm:$0xff]  ;;  %v289_v51 = vld [vmem:[#allocation5 + $0x538] sm:$0xff]  ;;  %v291_v60 = vld [vmem:[#allocation5 + $0x548] sm:$0xff] }
  0xb5   :  { %3559 = vmatpush1.bf16.msra.mxu1 %v3558_v32  ;;  %3365 = vmatprep.subr.bf16.mxu0 %v3364_v33  ;;  %v270_v32 = vld [vmem:[#allocation5 + $0x4a0] sm:$0xff]  ;;  %v268_v33 = vld [vmem:[#allocation5 + $0x490] sm:$0xff]  ;;  %v3588_v58 = vpack.c.bf16 %v289_v51, %v285_v50  ;;  %v293_v62 = vld [vmem:[#allocation5 + $0x558] sm:$0xff] }
  0xb6   :  { %3561 = vmatprep.subr.bf16.mxu1 %v3560_v37  ;;  %v279_v37 = vld [vmem:[#allocation5 + $0x4e8] sm:$0xff]  ;;  %v3386_v40 = vpack.c.bf16 %v270_v32, %v266_v31  ;;  %v3582_v41 = vpack.c.bf16 %v272_v35, %v268_v33  ;;  %v297_v63 = vld [vmem:[#allocation5 + $0x578] sm:$0xff]  ;;  %v296_v7 = vld [vmem:[#allocation5 + $0x570] sm:$0xff] }
  0xb7   :  { %v3388_v42 = vpack.c.bf16 %v279_v37, %v275_v36  ;;  %v3592_v6 = vpack.c.bf16 %v297_v63, %v293_v62  ;;  %v299_v8 = vld [vmem:[#allocation5 + $0x588] sm:$0xff]  ;;  %v301_v10 = vld [vmem:[#allocation5 + $0x598] sm:$0xff]  ;;  %v298_v13 = vld [vmem:[#allocation5 + $0x580] sm:$0xff] }
  0xb8   :  { %3367 = vmatpush1.bf16.msra.mxu0 %v3366_v43  ;;  %v274_v43 = vld [vmem:[#allocation5 + $0x4c0] sm:$0xff]  ;;  %v305_v11 = vld [vmem:[#allocation5 + $0x5b8] sm:$0xff]  ;;  %v307_v20 = vld [vmem:[#allocation5 + $0x5c8] sm:$0xff] }
  0xb9   :  { %3563 = vmatpush1.bf16.msra.mxu1 %v3562_v44  ;;  %3369 = vmatprep.subr.bf16.mxu0 %v3368_v45  ;;  %v278_v44 = vld [vmem:[#allocation5 + $0x4e0] sm:$0xff]  ;;  %v276_v45 = vld [vmem:[#allocation5 + $0x4d0] sm:$0xff]  ;;  %v3596_v19 = vpack.c.bf16 %v305_v11, %v301_v10  ;;  %v311_v21 = vld [vmem:[#allocation5 + $0x5e8] sm:$0xff] }
  0xba   :  { %3565 = vmatprep.subr.bf16.mxu1 %v3564_v49  ;;  %v287_v49 = vld [vmem:[#allocation5 + $0x528] sm:$0xff]  ;;  %v3390_v52 = vpack.c.bf16 %v278_v44, %v274_v43  ;;  %v3586_v53 = vpack.c.bf16 %v280_v47, %v276_v45  ;;  %v309_v23 = vld [vmem:[#allocation5 + $0x5d8] sm:$0xff]  ;;  %v3404_v27 = vpack.c.bf16 %v311_v21, %v307_v20  ;;  %v312_v32 = vld [vmem:[#allocation5 + $0x5f0] sm:$0xff] }
  0xbb   :  { %v3392_v54 = vpack.c.bf16 %v287_v49, %v283_v48  ;;  %v313_v24 = vld [vmem:[#allocation5 + $0x5f8] sm:$0xff]  ;;  %v315_v33 = vld [vmem:[#allocation5 + $0x608] sm:$0xff]  ;;  %v320_v44 = vld [vmem:[#allocation5 + $0x630] sm:$0xff] }
  0xbc   :  { %3371 = vmatpush1.bf16.msra.mxu0 %v3370_v55  ;;  %v282_v55 = vld [vmem:[#allocation5 + $0x500] sm:$0xff]  ;;  %v3600_v31 = vpack.c.bf16 %v313_v24, %v309_v23  ;;  %v317_v35 = vld [vmem:[#allocation5 + $0x618] sm:$0xff]  ;;  %v323_v45 = vld [vmem:[#allocation5 + $0x648] sm:$0xff] }
  0xbd   :  { %3567 = vmatpush1.bf16.msra.mxu1 %v3566_v56  ;;  %3373 = vmatprep.subr.bf16.mxu0 %v3372_v57  ;;  %v286_v56 = vld [vmem:[#allocation5 + $0x520] sm:$0xff]  ;;  %v284_v57 = vld [vmem:[#allocation5 + $0x510] sm:$0xff]  ;;  %v321_v36 = vld [vmem:[#allocation5 + $0x638] sm:$0xff] }
  0xbe   :  { %3569 = vmatprep.subr.bf16.mxu1 %v3568_v61  ;;  %v295_v61 = vld [vmem:[#allocation5 + $0x568] sm:$0xff]  ;;  %v3394_v0 = vpack.c.bf16 %v286_v56, %v282_v55  ;;  %v3590_v1 = vpack.c.bf16 %v288_v59, %v284_v57  ;;  %v3604_v43 = vpack.c.bf16 %v321_v36, %v317_v35  ;;  %v325_v47 = vld [vmem:[#allocation5 + $0x658] sm:$0xff]  ;;  %v328_v56 = vld [vmem:[#allocation5 + $0x670] sm:$0xff] }
  0xbf   :  { %v3396_v2 = vpack.c.bf16 %v295_v61, %v291_v60  ;;  %v329_v48 = vld [vmem:[#allocation5 + $0x678] sm:$0xff]  ;;  %v331_v57 = vld [vmem:[#allocation5 + $0x688] sm:$0xff]  ;;  %v346_v24 = vld [vmem:[#allocation5 + $0x700] sm:$0xff] }
  0xc0   :  { %3375 = vmatpush1.bf16.msra.mxu0 %v3374_v3  ;;  %v290_v3 = vld [vmem:[#allocation5 + $0x540] sm:$0xff]  ;;  %v3608_v55 = vpack.c.bf16 %v329_v48, %v325_v47  ;;  %v333_v59 = vld [vmem:[#allocation5 + $0x698] sm:$0xff] }
  0xc1   :  { %3571 = vmatpush1.bf16.msra.mxu1 %v3570_v4  ;;  %3377 = vmatprep.subr.bf16.mxu0 %v3376_v5  ;;  %v294_v4 = vld [vmem:[#allocation5 + $0x560] sm:$0xff]  ;;  %v292_v5 = vld [vmem:[#allocation5 + $0x550] sm:$0xff]  ;;  %v337_v60 = vld [vmem:[#allocation5 + $0x6b8] sm:$0xff] }
  0xc2   :  { %3573 = vmatprep.subr.bf16.mxu1 %v3572_v9  ;;  %v303_v9 = vld [vmem:[#allocation5 + $0x5a8] sm:$0xff]  ;;  %v3398_v12 = vpack.c.bf16 %v294_v4, %v290_v3  ;;  %v3594_v14 = vpack.c.bf16 %v296_v7, %v292_v5  ;;  %v3612_v3 = vpack.c.bf16 %v337_v60, %v333_v59  ;;  %v336_v4 = vld [vmem:[#allocation5 + $0x6b0] sm:$0xff]  ;;  %v341_v7 = vld [vmem:[#allocation5 + $0x6d8] sm:$0xff] }
  0xc3   :  { %605 = vmatmul.mubr.f32.vlgmr.msra.gmra.mrb[0].mxu0 %v115_v15  ;;  %v339_v5 = vld [vmem:[#allocation5 + $0x6c8] sm:$0xff]  ;;  %v353_v20 = vld [vmem:[#allocation5 + $0x738] sm:$0xff]  ;;  %v354_v36 = vld [vmem:[#allocation5 + $0x740] sm:$0xff] }
  0xc4   :  { %3379 = vmatpush1.bf16.msra.mxu0 %v3378_v16  ;;  %889 = vmatmul.mubr.f32.vlgmr.msra.gmra.mrb[0].mxu1 %v115_v15  ;;  %v3400_v15 = vpack.c.bf16 %v303_v9, %v299_v8  ;;  %v302_v16 = vld [vmem:[#allocation5 + $0x5a0] sm:$0xff]  ;;  %v345_v8 = vld [vmem:[#allocation5 + $0x6f8] sm:$0xff] }
  0xc5   :  { %3575 = vmatpush1.bf16.msra.mxu1 %v3574_v17  ;;  %3381 = vmatprep.subr.bf16.mxu0 %v3380_v18  ;;  %v300_v17 = vld [vmem:[#allocation5 + $0x590] sm:$0xff]  ;;  %v3402_v25 = vpack.c.bf16 %v302_v16, %v298_v13  ;;  %v342_v13 = vld [vmem:[#allocation5 + $0x6e0] sm:$0xff] }
  0xc6   :  { %3577 = vmatprep.subr.bf16.mxu1 %v3576_v22  ;;  %v304_v18 = vld [vmem:[#allocation5 + $0x5b0] sm:$0xff]  ;;  %v118_v22 = vld [vmem:[#allocation2 + $0x18] sm:$0xff] }
  0xc7   :  { %675 = vmatprep.mubr.f32.mxu0 %v118_v22  ;;  %959 = vmatprep.mubr.f32.mxu1 %v118_v22  ;;  %v3598_v26 = vpack.c.bf16 %v304_v18, %v300_v17  ;;  %v344_v16 = vld [vmem:[#allocation5 + $0x6f0] sm:$0xff]  ;;  %v347_v17 = vld [vmem:[#allocation5 + $0x708] sm:$0xff]  ;;  %v362_v48 = vld [vmem:[#allocation5 + $0x780] sm:$0xff] }
  0xc8   :  { %3383 = vmatpush1.bf16.msra.mxu0 %v3382_v28  ;;  %v306_v28 = vld [vmem:[#allocation5 + $0x5c0] sm:$0xff]  ;;  %v351_v18 = vld [vmem:[#allocation5 + $0x728] sm:$0xff] }
  0xc9   :  { %3579 = vmatpush1.bf16.msra.mxu1 %v3578_v29  ;;  %3385 = vmatprep.subr.bf16.mxu0 %v3384_v30  ;;  %v310_v29 = vld [vmem:[#allocation5 + $0x5e0] sm:$0xff]  ;;  %v308_v30 = vld [vmem:[#allocation5 + $0x5d0] sm:$0xff]  ;;  %v3424_v23 = vpack.c.bf16 %v351_v18, %v347_v17  ;;  %v117_v17 = vld [vmem:[#allocation2 + $0x10] sm:$0xff] }
  0xca   :  { %3581 = vmatprep.subr.bf16.mxu1 %v3580_v34  ;;  %v319_v34 = vld [vmem:[#allocation5 + $0x628] sm:$0xff]  ;;  %v3406_v37 = vpack.c.bf16 %v310_v29, %v306_v28  ;;  %v3602_v38 = vpack.c.bf16 %v312_v32, %v308_v30  ;;  %v352_v28 = vld [vmem:[#allocation5 + $0x730] sm:$0xff]  ;;  %v361_v32 = vld [vmem:[#allocation5 + $0x778] sm:$0xff] }
  0xcb   :  { %v3408_v39 = vpack.c.bf16 %v319_v34, %v315_v33  ;;  %v355_v29 = vld [vmem:[#allocation5 + $0x748] sm:$0xff]  ;;  %v370_v60 = vld [vmem:[#allocation5 + $0x7c0] sm:$0xff] }
  0xcc   :  { %3387 = vmatpush1.bf16.msra.mxu0 %v3386_v40  ;;  %v314_v40 = vld [vmem:[#allocation5 + $0x600] sm:$0xff]  ;;  %v359_v30 = vld [vmem:[#allocation5 + $0x768] sm:$0xff] }
  0xcd   :  { %3583 = vmatpush1.bf16.msra.mxu1 %v3582_v41  ;;  %3389 = vmatprep.subr.bf16.mxu0 %v3388_v42  ;;  %v318_v41 = vld [vmem:[#allocation5 + $0x620] sm:$0xff]  ;;  %v316_v42 = vld [vmem:[#allocation5 + $0x610] sm:$0xff]  ;;  %v3428_v35 = vpack.c.bf16 %v359_v30, %v355_v29  ;;  %v401_v29 = vld [vmem:[#allocation5 + $0x8b8] sm:$0xff] }
  0xce   :  { %3585 = vmatprep.subr.bf16.mxu1 %v3584_v46  ;;  %v327_v46 = vld [vmem:[#allocation5 + $0x668] sm:$0xff]  ;;  %v3410_v49 = vpack.c.bf16 %v318_v41, %v314_v40  ;;  %v3606_v50 = vpack.c.bf16 %v320_v44, %v316_v42  ;;  %v360_v40 = vld [vmem:[#allocation5 + $0x770] sm:$0xff]  ;;  %v369_v44 = vld [vmem:[#allocation5 + $0x7b8] sm:$0xff] }
  0xcf   :  { %v3412_v51 = vpack.c.bf16 %v327_v46, %v323_v45  ;;  %v363_v41 = vld [vmem:[#allocation5 + $0x788] sm:$0xff]  ;;  %v394_v30 = vld [vmem:[#allocation5 + $0x880] sm:$0xff] }
  0xd0   :  { %3391 = vmatpush1.bf16.msra.mxu0 %v3390_v52  ;;  %v322_v52 = vld [vmem:[#allocation5 + $0x640] sm:$0xff]  ;;  %v367_v42 = vld [vmem:[#allocation5 + $0x7a8] sm:$0xff] }
  0xd1   :  { %3587 = vmatpush1.bf16.msra.mxu1 %v3586_v53  ;;  %3393 = vmatprep.subr.bf16.mxu0 %v3392_v54  ;;  %v326_v53 = vld [vmem:[#allocation5 + $0x660] sm:$0xff]  ;;  %v324_v54 = vld [vmem:[#allocation5 + $0x650] sm:$0xff]  ;;  %v3432_v47 = vpack.c.bf16 %v367_v42, %v363_v41  ;;  %v409_v42 = vld [vmem:[#allocation5 + $0x8f8] sm:$0xff] }
  0xd2   :  { %3589 = vmatprep.subr.bf16.mxu1 %v3588_v58  ;;  %v335_v58 = vld [vmem:[#allocation5 + $0x6a8] sm:$0xff]  ;;  %v3414_v61 = vpack.c.bf16 %v326_v53, %v322_v52  ;;  %v3610_v62 = vpack.c.bf16 %v328_v56, %v324_v54  ;;  %v368_v52 = vld [vmem:[#allocation5 + $0x7b0] sm:$0xff]  ;;  %v377_v56 = vld [vmem:[#allocation5 + $0x7f8] sm:$0xff] }
  0xd3   :  { %v3416_v63 = vpack.c.bf16 %v335_v58, %v331_v57  ;;  %v371_v53 = vld [vmem:[#allocation5 + $0x7c8] sm:$0xff] }
  0xd4   :  { %3395 = vmatpush1.bf16.msra.mxu0 %v3394_v0  ;;  %v330_v0 = vld [vmem:[#allocation5 + $0x680] sm:$0xff]  ;;  %v375_v54 = vld [vmem:[#allocation5 + $0x7e8] sm:$0xff] }
  0xd5   :  { %3591 = vmatpush1.bf16.msra.mxu1 %v3590_v1  ;;  %3397 = vmatprep.subr.bf16.mxu0 %v3396_v2  ;;  %v334_v1 = vld [vmem:[#allocation5 + $0x6a0] sm:$0xff]  ;;  %v332_v2 = vld [vmem:[#allocation5 + $0x690] sm:$0xff]  ;;  %v3436_v59 = vpack.c.bf16 %v375_v54, %v371_v53  ;;  %v417_v54 = vld [vmem:[#allocation5 + $0x938] sm:$0xff] }
  0xd6   :  { %3593 = vmatprep.subr.bf16.mxu1 %v3592_v6  ;;  %v343_v6 = vld [vmem:[#allocation5 + $0x6e8] sm:$0xff]  ;;  %v3418_v9 = vpack.c.bf16 %v334_v1, %v330_v0  ;;  %v3614_v10 = vpack.c.bf16 %v336_v4, %v332_v2  ;;  %v376_v0 = vld [vmem:[#allocation5 + $0x7f0] sm:$0xff]  ;;  %v385_v4 = vld [vmem:[#allocation5 + $0x838] sm:$0xff] }
  0xd7   :  { %v3420_v11 = vpack.c.bf16 %v343_v6, %v339_v5  ;;  %v379_v1 = vld [vmem:[#allocation5 + $0x808] sm:$0xff] }
  0xd8   :  { %3399 = vmatpush1.bf16.msra.mxu0 %v3398_v12  ;;  %v338_v12 = vld [vmem:[#allocation5 + $0x6c0] sm:$0xff]  ;;  %v383_v2 = vld [vmem:[#allocation5 + $0x828] sm:$0xff] }
  0xd9   :  { %3595 = vmatpush1.bf16.msra.mxu1 %v3594_v14  ;;  %3401 = vmatprep.subr.bf16.mxu0 %v3400_v15  ;;  %v340_v14 = vld [vmem:[#allocation5 + $0x6d0] sm:$0xff]  ;;  %v3616_v15 = vpack.c.bf16 %v345_v8, %v341_v7  ;;  %v3422_v21 = vpack.c.bf16 %v342_v13, %v338_v12  ;;  %v3440_v7 = vpack.c.bf16 %v383_v2, %v379_v1  ;;  %v378_v8 = vld [vmem:[#allocation5 + $0x800] sm:$0xff]  ;;  %v387_v13 = vld [vmem:[#allocation5 + $0x848] sm:$0xff] }
  0xda   :  { %3597 = vmatprep.subr.bf16.mxu1 %v3596_v19  ;;  %v349_v19 = vld [vmem:[#allocation5 + $0x718] sm:$0xff]  ;;  %v3618_v22 = vpack.c.bf16 %v344_v16, %v340_v14  ;;  %v384_v12 = vld [vmem:[#allocation5 + $0x830] sm:$0xff]  ;;  %v391_v14 = vld [vmem:[#allocation5 + $0x868] sm:$0xff] }
  0xdb   :  { %v393_v16 = vld [vmem:[#allocation5 + $0x878] sm:$0xff] }
  0xdc   :  { %3403 = vmatpush1.bf16.msra.mxu0 %v3402_v25  ;;  %v350_v25 = vld [vmem:[#allocation5 + $0x720] sm:$0xff]  ;;  %v425_v2 = vld [vmem:[#allocation5 + $0x978] sm:$0xff] }
  0xdd   :  { %3599 = vmatpush1.bf16.msra.mxu1 %v3598_v26  ;;  %3405 = vmatprep.subr.bf16.mxu0 %v3404_v27  ;;  %v348_v26 = vld [vmem:[#allocation5 + $0x710] sm:$0xff]  ;;  %v3620_v27 = vpack.c.bf16 %v353_v20, %v349_v19  ;;  %v3426_v33 = vpack.c.bf16 %v350_v25, %v346_v24  ;;  %v386_v19 = vld [vmem:[#allocation5 + $0x840] sm:$0xff]  ;;  %v395_v25 = vld [vmem:[#allocation5 + $0x888] sm:$0xff] }
  0xde   :  { %3601 = vmatprep.subr.bf16.mxu1 %v3600_v31  ;;  %v357_v31 = vld [vmem:[#allocation5 + $0x758] sm:$0xff]  ;;  %v3622_v34 = vpack.c.bf16 %v352_v28, %v348_v26  ;;  %v390_v20 = vld [vmem:[#allocation5 + $0x860] sm:$0xff]  ;;  %v392_v24 = vld [vmem:[#allocation5 + $0x870] sm:$0xff] }
  0xdf   :  { %v397_v28 = vld [vmem:[#allocation5 + $0x898] sm:$0xff] }
  0xe0   :  { %3407 = vmatpush1.bf16.msra.mxu0 %v3406_v37  ;;  %v358_v37 = vld [vmem:[#allocation5 + $0x760] sm:$0xff]  ;;  %v3644_v41 = vpack.c.bf16 %v401_v29, %v397_v28 }
  0xe1   :  { %3603 = vmatpush1.bf16.msra.mxu1 %v3602_v38  ;;  %3409 = vmatprep.subr.bf16.mxu0 %v3408_v39  ;;  %v356_v38 = vld [vmem:[#allocation5 + $0x750] sm:$0xff]  ;;  %v3624_v39 = vpack.c.bf16 %v361_v32, %v357_v31  ;;  %v3430_v45 = vpack.c.bf16 %v358_v37, %v354_v36  ;;  %v398_v31 = vld [vmem:[#allocation5 + $0x8a0] sm:$0xff]  ;;  %v403_v36 = vld [vmem:[#allocation5 + $0x8c8] sm:$0xff] }
  0xe2   :  { %3605 = vmatprep.subr.bf16.mxu1 %v3604_v43  ;;  %v365_v43 = vld [vmem:[#allocation5 + $0x798] sm:$0xff]  ;;  %v3626_v46 = vpack.c.bf16 %v360_v40, %v356_v38  ;;  %v120_v32 = vld [vmem:[#allocation2 + $0x28] sm:$0xff]  ;;  %v407_v37 = vld [vmem:[#allocation5 + $0x8e8] sm:$0xff] }
  0xe3   :  { %v405_v40 = vld [vmem:[#allocation5 + $0x8d8] sm:$0xff]  ;;  %v438_v28 = vld [vmem:[#allocation5 + $0x9e0] sm:$0xff] }
  0xe4   :  { %3411 = vmatpush1.bf16.msra.mxu0 %v3410_v49  ;;  %v366_v49 = vld [vmem:[#allocation5 + $0x7a0] sm:$0xff]  ;;  %v3648_v53 = vpack.c.bf16 %v409_v42, %v405_v40  ;;  %v444_v42 = vld [vmem:[#allocation5 + $0xa10] sm:$0xff] }
  0xe5   :  { %3607 = vmatpush1.bf16.msra.mxu1 %v3606_v50  ;;  %3413 = vmatprep.subr.bf16.mxu0 %v3412_v51  ;;  %v364_v50 = vld [vmem:[#allocation5 + $0x790] sm:$0xff]  ;;  %v3628_v51 = vpack.c.bf16 %v369_v44, %v365_v43  ;;  %v3434_v57 = vpack.c.bf16 %v366_v49, %v362_v48  ;;  %v402_v43 = vld [vmem:[#allocation5 + $0x8c0] sm:$0xff]  ;;  %v411_v48 = vld [vmem:[#allocation5 + $0x908] sm:$0xff] }
  0xe6   :  { %3609 = vmatprep.subr.bf16.mxu1 %v3608_v55  ;;  %v373_v55 = vld [vmem:[#allocation5 + $0x7d8] sm:$0xff]  ;;  %v3630_v58 = vpack.c.bf16 %v368_v52, %v364_v50  ;;  %v406_v44 = vld [vmem:[#allocation5 + $0x8e0] sm:$0xff]  ;;  %v415_v49 = vld [vmem:[#allocation5 + $0x928] sm:$0xff] }
  0xe7   :  { %v413_v52 = vld [vmem:[#allocation5 + $0x918] sm:$0xff]  ;;  %v446_v40 = vld [vmem:[#allocation5 + $0xa20] sm:$0xff] }
  0xe8   :  { %3415 = vmatpush1.bf16.msra.mxu0 %v3414_v61  ;;  %v374_v61 = vld [vmem:[#allocation5 + $0x7e0] sm:$0xff]  ;;  %v3652_v1 = vpack.c.bf16 %v417_v54, %v413_v52  ;;  %v452_v54 = vld [vmem:[#allocation5 + $0xa50] sm:$0xff] }
  0xe9   :  { %3611 = vmatpush1.bf16.msra.mxu1 %v3610_v62  ;;  %3417 = vmatprep.subr.bf16.mxu0 %v3416_v63  ;;  %v372_v62 = vld [vmem:[#allocation5 + $0x7d0] sm:$0xff]  ;;  %v3632_v63 = vpack.c.bf16 %v377_v56, %v373_v55  ;;  %v3438_v5 = vpack.c.bf16 %v374_v61, %v370_v60  ;;  %v410_v55 = vld [vmem:[#allocation5 + $0x900] sm:$0xff]  ;;  %v419_v60 = vld [vmem:[#allocation5 + $0x948] sm:$0xff] }
  0xea   :  { %3613 = vmatprep.subr.bf16.mxu1 %v3612_v3  ;;  %v381_v3 = vld [vmem:[#allocation5 + $0x818] sm:$0xff]  ;;  %v3634_v6 = vpack.c.bf16 %v376_v0, %v372_v62  ;;  %v414_v56 = vld [vmem:[#allocation5 + $0x920] sm:$0xff]  ;;  %v423_v61 = vld [vmem:[#allocation5 + $0x968] sm:$0xff] }
  0xeb   :  { %v421_v0 = vld [vmem:[#allocation5 + $0x958] sm:$0xff]  ;;  %v454_v52 = vld [vmem:[#allocation5 + $0xa60] sm:$0xff] }
  0xec   :  { %3419 = vmatpush1.bf16.msra.mxu0 %v3418_v9  ;;  %v382_v9 = vld [vmem:[#allocation5 + $0x820] sm:$0xff] }
  0xed   :  { %3615 = vmatpush1.bf16.msra.mxu1 %v3614_v10  ;;  %3421 = vmatprep.subr.bf16.mxu0 %v3420_v11  ;;  %v380_v10 = vld [vmem:[#allocation5 + $0x810] sm:$0xff]  ;;  %v3636_v11 = vpack.c.bf16 %v385_v4, %v381_v3  ;;  %v3442_v18 = vpack.c.bf16 %v382_v9, %v378_v8  ;;  %v418_v3 = vld [vmem:[#allocation5 + $0x940] sm:$0xff]  ;;  %v427_v8 = vld [vmem:[#allocation5 + $0x988] sm:$0xff] }
  0xee   :  { %3617 = vmatprep.subr.bf16.mxu1 %v3616_v15  ;;  %v389_v15 = vld [vmem:[#allocation5 + $0x858] sm:$0xff]  ;;  %v422_v4 = vld [vmem:[#allocation5 + $0x960] sm:$0xff]  ;;  %v431_v9 = vld [vmem:[#allocation5 + $0x9a8] sm:$0xff] }
  0xef   :  { %v3640_v26 = vpack.c.bf16 %v393_v16, %v389_v15  ;;  %v426_v15 = vld [vmem:[#allocation5 + $0x980] sm:$0xff] }
  0xf0   :  { %3423 = vmatpush1.bf16.msra.mxu0 %v3422_v21  ;;  %v3638_v21 = vpack.c.bf16 %v384_v12, %v380_v10  ;;  %v429_v12 = vld [vmem:[#allocation5 + $0x998] sm:$0xff]  ;;  %v430_v16 = vld [vmem:[#allocation5 + $0x9a0] sm:$0xff] }
  0xf1   :  { %3619 = vmatpush1.bf16.msra.mxu1 %v3618_v22  ;;  %3425 = vmatprep.subr.bf16.mxu0 %v3424_v23  ;;  %v3444_v22 = vpack.c.bf16 %v391_v14, %v387_v13  ;;  %v388_v23 = vld [vmem:[#allocation5 + $0x850] sm:$0xff]  ;;  %v3656_v13 = vpack.c.bf16 %v425_v2, %v421_v0  ;;  %v433_v14 = vld [vmem:[#allocation5 + $0x9b8] sm:$0xff]  ;;  %v3466_v29 = vpack.c.bf16 %v430_v16, %v426_v15  ;;  %v462_v0 = vld [vmem:[#allocation5 + $0xaa0] sm:$0xff] }
  0xf2   :  { %3621 = vmatprep.subr.bf16.mxu1 %v3620_v27  ;;  %v399_v27 = vld [vmem:[#allocation5 + $0x8a8] sm:$0xff]  ;;  %v3642_v38 = vpack.c.bf16 %v392_v24, %v388_v23  ;;  %v3464_v23 = vpack.c.bf16 %v431_v9, %v427_v8  ;;  %v437_v24 = vld [vmem:[#allocation5 + $0x9d8] sm:$0xff]  ;;  %v460_v2 = vld [vmem:[#allocation5 + $0xa90] sm:$0xff] }
  0xf3   :  { %v469_v8 = vld [vmem:[#allocation5 + $0xad8] sm:$0xff]  ;;  %v472_v15 = vld [vmem:[#allocation5 + $0xaf0] sm:$0xff]  ;;  %v475_v16 = vld [vmem:[#allocation5 + $0xb08] sm:$0xff] }
  0xf4   :  { %3427 = vmatpush1.bf16.msra.mxu0 %v3426_v33  ;;  %v3446_v33 = vpack.c.bf16 %v390_v20, %v386_v19  ;;  %v432_v19 = vld [vmem:[#allocation5 + $0x9b0] sm:$0xff]  ;;  %v435_v20 = vld [vmem:[#allocation5 + $0x9c8] sm:$0xff]  ;;  %v473_v9 = vld [vmem:[#allocation5 + $0xaf8] sm:$0xff] }
  0xf5   :  { %3623 = vmatpush1.bf16.msra.mxu1 %v3622_v34  ;;  %3429 = vmatprep.subr.bf16.mxu0 %v3428_v35  ;;  %v396_v34 = vld [vmem:[#allocation5 + $0x890] sm:$0xff] }
  0xf6   :  { %3625 = vmatprep.subr.bf16.mxu1 %v3624_v39  ;;  %v400_v35 = vld [vmem:[#allocation5 + $0x8b0] sm:$0xff]  ;;  %v3448_v39 = vpack.c.bf16 %v399_v27, %v395_v25  ;;  %v3660_v25 = vpack.c.bf16 %v433_v14, %v429_v12  ;;  %v434_v27 = vld [vmem:[#allocation5 + $0x9c0] sm:$0xff] }
  0xf7   :  { %v3646_v50 = vpack.c.bf16 %v400_v35, %v396_v34  ;;  %v470_v12 = vld [vmem:[#allocation5 + $0xae0] sm:$0xff]  ;;  %v468_v14 = vld [vmem:[#allocation5 + $0xad0] sm:$0xff] }
  0xf8   :  { %3431 = vmatpush1.bf16.msra.mxu0 %v3430_v45  ;;  %v3450_v45 = vpack.c.bf16 %v398_v31, %v394_v30  ;;  %v436_v30 = vld [vmem:[#allocation5 + $0x9d0] sm:$0xff] }
  0xf9   :  { %3627 = vmatpush1.bf16.msra.mxu1 %v3626_v46  ;;  %3433 = vmatprep.subr.bf16.mxu0 %v3432_v47  ;;  %v404_v46 = vld [vmem:[#allocation5 + $0x8d0] sm:$0xff] }
  0xfa   :  { %3629 = vmatprep.subr.bf16.mxu1 %v3628_v51  ;;  %v408_v47 = vld [vmem:[#allocation5 + $0x8f0] sm:$0xff]  ;;  %v3452_v51 = vpack.c.bf16 %v407_v37, %v403_v36  ;;  %v445_v36 = vld [vmem:[#allocation5 + $0xa18] sm:$0xff] }
  0xfb   :  { %v3650_v62 = vpack.c.bf16 %v408_v47, %v404_v46  ;;  %v440_v31 = vld [vmem:[#allocation5 + $0x9f0] sm:$0xff]  ;;  %v449_v37 = vld [vmem:[#allocation5 + $0xa38] sm:$0xff] }
  0xfc   :  { %3435 = vmatpush1.bf16.msra.mxu0 %v3434_v57  ;;  %v3454_v57 = vpack.c.bf16 %v406_v44, %v402_v43  ;;  %v448_v43 = vld [vmem:[#allocation5 + $0xa30] sm:$0xff]  ;;  %v451_v44 = vld [vmem:[#allocation5 + $0xa48] sm:$0xff]  ;;  %v3666_v46 = vpack.c.bf16 %v440_v31, %v436_v30  ;;  %v3682_v30 = vpack.c.bf16 %v472_v15, %v468_v14 }
  0xfd   :  { %3631 = vmatpush1.bf16.msra.mxu1 %v3630_v58  ;;  %3437 = vmatprep.subr.bf16.mxu0 %v3436_v59  ;;  %v412_v58 = vld [vmem:[#allocation5 + $0x910] sm:$0xff]  ;;  %v119_v15 = vld [vmem:[#allocation2 + $0x20] sm:$0xff] }
  0xfe   :  { %3633 = vmatprep.subr.bf16.mxu1 %v3632_v63  ;;  %v416_v59 = vld [vmem:[#allocation5 + $0x930] sm:$0xff]  ;;  %v3456_v63 = vpack.c.bf16 %v415_v49, %v411_v48  ;;  %v453_v48 = vld [vmem:[#allocation5 + $0xa58] sm:$0xff] }
  0xff   :  { %v3654_v10 = vpack.c.bf16 %v416_v59, %v412_v58  ;;  %v457_v49 = vld [vmem:[#allocation5 + $0xa78] sm:$0xff]  ;;  %v3670_v58 = vpack.c.bf16 %v448_v43, %v444_v42  ;;  %v488_v42 = vld [vmem:[#allocation5 + $0xb70] sm:$0xff]  ;;  %v491_v43 = vld [vmem:[#allocation5 + $0xb88] sm:$0xff] }
 0x100   :  { %3439 = vmatpush1.bf16.msra.mxu0 %v3438_v5  ;;  %v3458_v5 = vpack.c.bf16 %v414_v56, %v410_v55  ;;  %v456_v55 = vld [vmem:[#allocation5 + $0xa70] sm:$0xff]  ;;  %v459_v56 = vld [vmem:[#allocation5 + $0xa88] sm:$0xff] }
 0x101   :  { %3635 = vmatpush1.bf16.msra.mxu1 %v3634_v6  ;;  %3441 = vmatprep.subr.bf16.mxu0 %v3440_v7  ;;  %v420_v6 = vld [vmem:[#allocation5 + $0x950] sm:$0xff] }
 0x102   :  { %3637 = vmatprep.subr.bf16.mxu1 %v3636_v11  ;;  %v424_v7 = vld [vmem:[#allocation5 + $0x970] sm:$0xff]  ;;  %v3460_v11 = vpack.c.bf16 %v423_v61, %v419_v60  ;;  %v461_v60 = vld [vmem:[#allocation5 + $0xa98] sm:$0xff] }
 0x103   :  { %676 = vmatmul.mubr.f32.vlgmr.msra.gmra.mrb[0].mxu0 %v117_v17  ;;  %v465_v61 = vld [vmem:[#allocation5 + $0xab8] sm:$0xff]  ;;  %v512_v14 = vld [vmem:[#allocation5 + $0xc30] sm:$0xff] }
 0x104   :  { %3443 = vmatpush1.bf16.msra.mxu0 %v3442_v18  ;;  %960 = vmatmul.mubr.f32.vlgmr.msra.gmra.mrb[0].mxu1 %v117_v17  ;;  %v3462_v17 = vpack.c.bf16 %v422_v4, %v418_v3  ;;  %v428_v18 = vld [vmem:[#allocation5 + $0x990] sm:$0xff]  ;;  %v467_v4 = vld [vmem:[#allocation5 + $0xac8] sm:$0xff] }
 0x105   :  { %3639 = vmatpush1.bf16.msra.mxu1 %v3638_v21  ;;  %3445 = vmatprep.subr.bf16.mxu0 %v3444_v22  ;;  %v439_v21 = vld [vmem:[#allocation5 + $0x9e8] sm:$0xff]  ;;  %v3658_v22 = vpack.c.bf16 %v424_v7, %v420_v6  ;;  %v3662_v34 = vpack.c.bf16 %v432_v19, %v428_v18  ;;  %v464_v3 = vld [vmem:[#allocation5 + $0xab0] sm:$0xff]  ;;  %v3674_v6 = vpack.c.bf16 %v456_v55, %v452_v54 }
 0x106   :  { %3641 = vmatprep.subr.bf16.mxu1 %v3640_v26  ;;  %746 = vmatprep.mubr.f32.mxu0 %v120_v32  ;;  %v441_v26 = vld [vmem:[#allocation5 + $0x9f8] sm:$0xff]  ;;  %v3468_v35 = vpack.c.bf16 %v439_v21, %v435_v20  ;;  %v3678_v18 = vpack.c.bf16 %v464_v3, %v460_v2  ;;  %v496_v54 = vld [vmem:[#allocation5 + $0xbb0] sm:$0xff]  ;;  %v499_v55 = vld [vmem:[#allocation5 + $0xbc8] sm:$0xff] }
 0x107   :  { %1030 = vmatprep.mubr.f32.mxu1 %v120_v32  ;;  %v443_v32 = vld [vmem:[#allocation5 + $0xa08] sm:$0xff]  ;;  %v477_v20 = vld [vmem:[#allocation5 + $0xb18] sm:$0xff]  ;;  %v504_v2 = vld [vmem:[#allocation5 + $0xbf0] sm:$0xff] }
 0x108   :  { %3447 = vmatpush1.bf16.msra.mxu0 %v3446_v33  ;;  %v447_v33 = vld [vmem:[#allocation5 + $0xa28] sm:$0xff]  ;;  %v481_v21 = vld [vmem:[#allocation5 + $0xb38] sm:$0xff] }
 0x109   :  { %3643 = vmatpush1.bf16.msra.mxu1 %v3642_v38  ;;  %3449 = vmatprep.subr.bf16.mxu0 %v3448_v39  ;;  %v3664_v38 = vpack.c.bf16 %v441_v26, %v437_v24  ;;  %v442_v39 = vld [vmem:[#allocation5 + $0xa00] sm:$0xff]  ;;  %v3472_v47 = vpack.c.bf16 %v447_v33, %v443_v32  ;;  %v476_v26 = vld [vmem:[#allocation5 + $0xb10] sm:$0xff]  ;;  %v3684_v32 = vpack.c.bf16 %v481_v21, %v477_v20  ;;  %v485_v33 = vld [vmem:[#allocation5 + $0xb58] sm:$0xff] }
 0x10a   :  { %3645 = vmatprep.subr.bf16.mxu1 %v3644_v41  ;;  %v3470_v41 = vpack.c.bf16 %v438_v28, %v434_v27  ;;  %v478_v24 = vld [vmem:[#allocation5 + $0xb20] sm:$0xff]  ;;  %v480_v27 = vld [vmem:[#allocation5 + $0xb30] sm:$0xff]  ;;  %v483_v28 = vld [vmem:[#allocation5 + $0xb48] sm:$0xff] }
 0x10b   :  { %v507_v3 = vld [vmem:[#allocation5 + $0xc08] sm:$0xff]  ;;  %v121_v20 = vld [vmem:[#allocation2 + $0x30] sm:$0xff] }
 0x10c   :  { %3451 = vmatpush1.bf16.msra.mxu0 %v3450_v45  ;;  %v455_v45 = vld [vmem:[#allocation5 + $0xa68] sm:$0xff] }
 0x10d   :  { %3647 = vmatpush1.bf16.msra.mxu1 %v3646_v50  ;;  %3453 = vmatprep.subr.bf16.mxu0 %v3452_v51  ;;  %v3668_v50 = vpack.c.bf16 %v449_v37, %v445_v36  ;;  %v450_v51 = vld [vmem:[#allocation5 + $0xa40] sm:$0xff]  ;;  %v3476_v59 = vpack.c.bf16 %v455_v45, %v451_v44  ;;  %v3686_v36 = vpack.c.bf16 %v480_v27, %v476_v26  ;;  %v495_v44 = vld [vmem:[#allocation5 + $0xba8] sm:$0xff]  ;;  %v493_v45 = vld [vmem:[#allocation5 + $0xb98] sm:$0xff] }
 0x10e   :  { %3649 = vmatprep.subr.bf16.mxu1 %v3648_v53  ;;  %v3474_v53 = vpack.c.bf16 %v446_v40, %v442_v39  ;;  %v486_v39 = vld [vmem:[#allocation5 + $0xb60] sm:$0xff]  ;;  %v484_v40 = vld [vmem:[#allocation5 + $0xb50] sm:$0xff] }
 0x10f   :  { %v4266_v21 = vld [vmem:[#allocation8] ss:$8 sps:$4 sm:$0xff]   ;;  %v4280_v26 = vld [vmem:[#allocation8 + $0x34] ss:$8 sps:$4 sm:$0xff]   ;;  %v4283_v27 = vld [vmem:[#allocation8 + $0x30] ss:$8 sps:$4 sm:$0xff]  }
 0x110   :  { %3455 = vmatpush1.bf16.msra.mxu0 %v3454_v57  ;;  %v463_v57 = vld [vmem:[#allocation5 + $0xaa8] sm:$0xff] }
 0x111   :  { %3651 = vmatpush1.bf16.msra.mxu1 %v3650_v62  ;;  %3457 = vmatprep.subr.bf16.mxu0 %v3456_v63  ;;  %v3672_v62 = vpack.c.bf16 %v457_v49, %v453_v48  ;;  %v458_v63 = vld [vmem:[#allocation5 + $0xa80] sm:$0xff]  ;;  %v3480_v7 = vpack.c.bf16 %v463_v57, %v459_v56  ;;  %v3690_v48 = vpack.c.bf16 %v488_v42, %v484_v40  ;;  %v503_v56 = vld [vmem:[#allocation5 + $0xbe8] sm:$0xff]  ;;  %v501_v57 = vld [vmem:[#allocation5 + $0xbd8] sm:$0xff] }
 0x112   :  { %3653 = vmatprep.subr.bf16.mxu1 %v3652_v1  ;;  %v3478_v1 = vpack.c.bf16 %v454_v52, %v450_v51  ;;  %v3496_v49 = vpack.c.bf16 %v495_v44, %v491_v43  ;;  %v494_v51 = vld [vmem:[#allocation5 + $0xba0] sm:$0xff]  ;;  %v492_v52 = vld [vmem:[#allocation5 + $0xb90] sm:$0xff] }
 0x113   :  { %v4322_v40 = vld [vmem:[#allocation8 + $0xa4] ss:$8 sps:$4 sm:$0xff]   ;;  %v4328_v42 = vld [vmem:[#allocation8 + $0xb4] ss:$8 sps:$4 sm:$0xff]   ;;  %v4331_v43 = vld [vmem:[#allocation8 + $0xb0] ss:$8 sps:$4 sm:$0xff]  }
 0x114   :  { %3459 = vmatpush1.bf16.msra.mxu0 %v3458_v5  ;;  %v471_v5 = vld [vmem:[#allocation5 + $0xae8] sm:$0xff] }
 0x115   :  { %3655 = vmatpush1.bf16.msra.mxu1 %v3654_v10  ;;  %3461 = vmatprep.subr.bf16.mxu0 %v3460_v11  ;;  %v3676_v10 = vpack.c.bf16 %v465_v61, %v461_v60  ;;  %v466_v11 = vld [vmem:[#allocation5 + $0xac0] sm:$0xff]  ;;  %v3484_v19 = vpack.c.bf16 %v471_v5, %v467_v4  ;;  %v3694_v60 = vpack.c.bf16 %v496_v54, %v492_v52  ;;  %v511_v4 = vld [vmem:[#allocation5 + $0xc28] sm:$0xff]  ;;  %v509_v5 = vld [vmem:[#allocation5 + $0xc18] sm:$0xff] }
 0x116   :  { %3657 = vmatprep.subr.bf16.mxu1 %v3656_v13  ;;  %v3482_v13 = vpack.c.bf16 %v462_v0, %v458_v63  ;;  %v3500_v61 = vpack.c.bf16 %v503_v56, %v499_v55  ;;  %v502_v63 = vld [vmem:[#allocation5 + $0xbe0] sm:$0xff]  ;;  %v500_v0 = vld [vmem:[#allocation5 + $0xbd0] sm:$0xff] }
 0x117   :  { %v4334_v44 = vld [vmem:[#allocation8 + $0xc4] ss:$8 sps:$4 sm:$0xff]  }
 0x118   :  { %3463 = vmatpush1.bf16.msra.mxu0 %v3462_v17  ;;  %v479_v17 = vld [vmem:[#allocation5 + $0xb28] sm:$0xff] }
 0x119   :  { %3659 = vmatpush1.bf16.msra.mxu1 %v3658_v22  ;;  %3465 = vmatprep.subr.bf16.mxu0 %v3464_v23  ;;  %v3680_v22 = vpack.c.bf16 %v473_v9, %v469_v8  ;;  %v474_v23 = vld [vmem:[#allocation5 + $0xb00] sm:$0xff]  ;;  %v3488_v31 = vpack.c.bf16 %v479_v17, %v475_v16  ;;  %v3698_v8 = vpack.c.bf16 %v504_v2, %v500_v0  ;;  %v4359_v52 = vld [vmem:[#allocation8 + $0x104] ss:$8 sps:$4 sm:$0xff]   ;;  %v4400_v2 = vld [vmem:[#allocation11 + $0x30] sm:$0xff]  }
 0x11a   :  { %3661 = vmatprep.subr.bf16.mxu1 %v3660_v25  ;;  %v3486_v25 = vpack.c.bf16 %v470_v12, %v466_v11  ;;  %v3504_v9 = vpack.c.bf16 %v511_v4, %v507_v3  ;;  %v510_v11 = vld [vmem:[#allocation5 + $0xc20] sm:$0xff]  ;;  %5985 = vst [vmem:[#allocation23_spill] sm:$0xff] %v4359_v52  ;;  %v4366_v55 = vld [vmem:[#allocation11 + $0x48] sm:$0xff]   ;;  %5999 = vst [vmem:[#allocation37_spill] sm:$0xff] %v4400_v2  ;;  %v516_v3 = vlaneseq }
 0x11b   :  { %v4364_v54 = vld [vmem:[#allocation11] sm:$0xff]   ;;  %5988 = vst [vmem:[#allocation26_spill] sm:$0xff] %v4366_v55  ;;  %v4370_v56 = vld [vmem:[#allocation11 + $0x8] sm:$0xff]  }
 0x11c   :  { %3467 = vmatpush1.bf16.msra.mxu0 %v3466_v29  ;;  %v487_v29 = vld [vmem:[#allocation5 + $0xb68] sm:$0xff]  ;;  %5987 = vst [vmem:[#allocation25_spill] sm:$0xff] %v4364_v54  ;;  %5989 = vst [vmem:[#allocation27_spill] sm:$0xff] %v4370_v56  ;;  %v4404_v4 = vshrl.u32 %v516_v3, 7 }
 0x11d   :  { %3663 = vmatpush1.bf16.msra.mxu1 %v3662_v34  ;;  %3469 = vmatprep.subr.bf16.mxu0 %v3468_v35  ;;  %v489_v34 = vld [vmem:[#allocation5 + $0xb78] sm:$0xff]  ;;  %v3490_v35 = vpack.c.bf16 %v478_v24, %v474_v23  ;;  %v3492_v37 = vpack.c.bf16 %v487_v29, %v483_v28  ;;  %v4274_v24 = vld [vmem:[#allocation8 + $0x24] ss:$8 sps:$4 sm:$0xff]   ;;  %v4289_v29 = vld [vmem:[#allocation8 + $0x40] ss:$8 sps:$4 sm:$0xff]  }
 0x11e   :  { %3665 = vmatprep.subr.bf16.mxu1 %v3664_v38  ;;  %v482_v38 = vld [vmem:[#allocation5 + $0xb40] sm:$0xff]  ;;  %v4271_v23 = vld [vmem:[#allocation8 + $0x10] ss:$8 sps:$4 sm:$0xff]   ;;  %v4286_v28 = vld [vmem:[#allocation8 + $0x44] ss:$8 sps:$4 sm:$0xff]  }
 0x11f   :  { %v4394_v0 = vld [vmem:[#allocation11 + $0x28] sm:$0xff]  }
 0x120   :  { %3471 = vmatpush1.bf16.msra.mxu0 %v3470_v41  ;;  %v3688_v41 = vpack.c.bf16 %v489_v34, %v485_v33  ;;  %v4301_v33 = vld [vmem:[#allocation8 + $0x60] ss:$8 sps:$4 sm:$0xff]   ;;  %v4304_v34 = vld [vmem:[#allocation8 + $0x74] ss:$8 sps:$4 sm:$0xff]   ;;  %5997 = vst [vmem:[#allocation35_spill] sm:$0xff] %v4394_v0 }
 0x121   :  { %3667 = vmatpush1.bf16.msra.mxu1 %v3666_v46  ;;  %3473 = vmatprep.subr.bf16.mxu0 %v3472_v47  ;;  %v497_v46 = vld [vmem:[#allocation5 + $0xbb8] sm:$0xff]  ;;  %v3494_v47 = vpack.c.bf16 %v486_v39, %v482_v38 }
 0x122   :  { %3669 = vmatprep.subr.bf16.mxu1 %v3668_v50  ;;  %v490_v50 = vld [vmem:[#allocation5 + $0xb80] sm:$0xff]  ;;  %v4319_v39 = vld [vmem:[#allocation8 + $0x90] ss:$8 sps:$4 sm:$0xff]  }
 0x123   :  { %v4316_v38 = vld [vmem:[#allocation8 + $0x94] ss:$8 sps:$4 sm:$0xff]  }
 0x124   :  { %3475 = vmatpush1.bf16.msra.mxu0 %v3474_v53  ;;  %v3692_v53 = vpack.c.bf16 %v497_v46, %v493_v45  ;;  %v4337_v45 = vld [vmem:[#allocation8 + $0xc0] ss:$8 sps:$4 sm:$0xff]   ;;  %v4340_v46 = vld [vmem:[#allocation8 + $0xd4] ss:$8 sps:$4 sm:$0xff]  }
 0x125   :  { %3671 = vmatpush1.bf16.msra.mxu1 %v3670_v58  ;;  %3477 = vmatprep.subr.bf16.mxu0 %v3476_v59  ;;  %v505_v58 = vld [vmem:[#allocation5 + $0xbf8] sm:$0xff]  ;;  %v3498_v59 = vpack.c.bf16 %v494_v51, %v490_v50 }
 0x126   :  { %3673 = vmatprep.subr.bf16.mxu1 %v3672_v62  ;;  %v498_v62 = vld [vmem:[#allocation5 + $0xbc0] sm:$0xff]  ;;  %v4355_v51 = vld [vmem:[#allocation8 + $0xf0] ss:$8 sps:$4 sm:$0xff]  }
 0x127   :  { %v4353_v50 = vld [vmem:[#allocation8 + $0xf4] ss:$8 sps:$4 sm:$0xff]   ;;  %5984 = vst [vmem:[#allocation22_spill] sm:$0xff] %v4355_v51 }
 0x128   :  { %3479 = vmatpush1.bf16.msra.mxu0 %v3478_v1  ;;  %v3696_v1 = vpack.c.bf16 %v505_v58, %v501_v57  ;;  %5983 = vst [vmem:[#allocation21_spill] sm:$0xff] %v4353_v50  ;;  %v4373_v57 = vld [vmem:[#allocation11 + $0x50] sm:$0xff]  }
 0x129   :  { %3675 = vmatpush1.bf16.msra.mxu1 %v3674_v6  ;;  %3481 = vmatprep.subr.bf16.mxu0 %v3480_v7  ;;  %v513_v6 = vld [vmem:[#allocation5 + $0xc38] sm:$0xff]  ;;  %v3502_v7 = vpack.c.bf16 %v502_v63, %v498_v62  ;;  %5990 = vst [vmem:[#allocation28_spill] sm:$0xff] %v4373_v57  ;;  %v4388_v62 = vld [vmem:[#allocation11 + $0x20] sm:$0xff]   ;;  %v4391_v63 = vld [vmem:[#allocation11 + $0x68] sm:$0xff]  }
 0x12a   :  { %3677 = vmatprep.subr.bf16.mxu1 %v3676_v10  ;;  %v506_v10 = vld [vmem:[#allocation5 + $0xc00] sm:$0xff]  ;;  %v3700_v12 = vpack.c.bf16 %v513_v6, %v509_v5  ;;  %v4376_v58 = vld [vmem:[#allocation11 + $0x10] sm:$0xff]   ;;  %5995 = vst [vmem:[#allocation33_spill] sm:$0xff] %v4388_v62  ;;  %5996 = vst [vmem:[#allocation34_spill] sm:$0xff] %v4391_v63  ;;  %v5748_v5 = vsub.s32 0, %v4404_v4 }
 0x12b   :  { %v3506_v16 = vpack.c.bf16 %v510_v11, %v506_v10  ;;  %5991 = vst [vmem:[#allocation29_spill] sm:$0xff] %v4376_v58  ;;  %v514_v6 = vld [vmem:[#allocation7] sm:$0xf] }
 0x12c   :  { %3483 = vmatpush1.bf16.msra.mxu0 %v3482_v13  ;;  %v508_v13 = vld [vmem:[#allocation5 + $0xc10] sm:$0xff]  ;;  %v519_v10 = vrot.slane %v514_v6, %v5748_v5  ;;  %v4423_v5 = vld [vmem:[#allocation8 + $0x100] ss:$8 sps:$4 sm:$0xff]  }
 0x12d   :  { %3679 = vmatpush1.bf16.msra.mxu1 %v3678_v18  ;;  %3485 = vmatprep.subr.bf16.mxu0 %v3484_v19  ;;  %v3702_v17 = vpack.c.bf16 %v512_v14, %v508_v13  ;;  %v4261_v18 = vld [vmem:[#allocation8 + $0x4] ss:$8 sps:$4 sm:$0xff]   ;;  %v5744_v19 = vmov 0.0   ;;  %6000 = vst [vmem:[#allocation38_spill] sm:$0xff] %v4423_v5 }
 0x12e   :  { %3681 = vmatprep.subr.bf16.mxu1 %v3680_v22  ;;  %v4268_v22 = vld [vmem:[#allocation8 + $0x14] ss:$8 sps:$4 sm:$0xff]  }
 0x130   :  { %3487 = vmatpush1.bf16.msra.mxu0 %v3486_v25  ;;  %v4277_v25 = vld [vmem:[#allocation8 + $0x20] ss:$8 sps:$4 sm:$0xff]  }
 0x131   :  { %3683 = vmatpush1.bf16.msra.mxu1 %v3682_v30  ;;  %3489 = vmatprep.subr.bf16.mxu0 %v3488_v31  ;;  %v4292_v30 = vld [vmem:[#allocation8 + $0x54] ss:$8 sps:$4 sm:$0xff]   ;;  %v4295_v31 = vld [vmem:[#allocation8 + $0x50] ss:$8 sps:$4 sm:$0xff]  }
 0x132   :  { %3685 = vmatprep.subr.bf16.mxu1 %v3684_v32  ;;  %v4298_v32 = vld [vmem:[#allocation8 + $0x64] ss:$8 sps:$4 sm:$0xff]  }
 0x134   :  { %3491 = vmatpush1.bf16.msra.mxu0 %v3490_v35  ;;  %v4307_v35 = vld [vmem:[#allocation8 + $0x70] ss:$8 sps:$4 sm:$0xff]  }
 0x135   :  { %3687 = vmatpush1.bf16.msra.mxu1 %v3686_v36  ;;  %3493 = vmatprep.subr.bf16.mxu0 %v3492_v37  ;;  %v4310_v36 = vld [vmem:[#allocation8 + $0x84] ss:$8 sps:$4 sm:$0xff]   ;;  %v4313_v37 = vld [vmem:[#allocation8 + $0x80] ss:$8 sps:$4 sm:$0xff]  }
 0x136   :  { %3689 = vmatprep.subr.bf16.mxu1 %v3688_v41  ;;  %v4325_v41 = vld [vmem:[#allocation8 + $0xa0] ss:$8 sps:$4 sm:$0xff]  }
 0x138   :  { %3495 = vmatpush1.bf16.msra.mxu0 %v3494_v47  ;;  %v4343_v47 = vld [vmem:[#allocation8 + $0xd0] ss:$8 sps:$4 sm:$0xff]  }
 0x139   :  { %3691 = vmatpush1.bf16.msra.mxu1 %v3690_v48  ;;  %3497 = vmatprep.subr.bf16.mxu0 %v3496_v49  ;;  %v4346_v48 = vld [vmem:[#allocation8 + $0xe4] ss:$8 sps:$4 sm:$0xff]   ;;  %v4349_v49 = vld [vmem:[#allocation8 + $0xe0] ss:$8 sps:$4 sm:$0xff]  }
 0x13a   :  { %3693 = vmatprep.subr.bf16.mxu1 %v3692_v53  ;;  %5982 = vst [vmem:[#allocation20_spill] sm:$0xff] %v4349_v49  ;;  %v4362_v53 = vld [vmem:[#allocation11 + $0x40] sm:$0xff]  }
 0x13b   :  { %5986 = vst [vmem:[#allocation24_spill] sm:$0xff] %v4362_v53 }
 0x13c   :  { %3499 = vmatpush1.bf16.msra.mxu0 %v3498_v59  ;;  %v4379_v59 = vld [vmem:[#allocation11 + $0x58] sm:$0xff]  }
 0x13d   :  { %3695 = vmatpush1.bf16.msra.mxu1 %v3694_v60  ;;  %3501 = vmatprep.subr.bf16.mxu0 %v3500_v61  ;;  %5992 = vst [vmem:[#allocation30_spill] sm:$0xff] %v4379_v59  ;;  %v4382_v60 = vld [vmem:[#allocation11 + $0x18] sm:$0xff]   ;;  %v4385_v61 = vld [vmem:[#allocation11 + $0x60] sm:$0xff]  }
 0x13e   :  { %3697 = vmatprep.subr.bf16.mxu1 %v3696_v1  ;;  %5993 = vst [vmem:[#allocation31_spill] sm:$0xff] %v4382_v60  ;;  %5994 = vst [vmem:[#allocation32_spill] sm:$0xff] %v4385_v61  ;;  %v4397_v1 = vld [vmem:[#allocation11 + $0x70] sm:$0xff]  }
 0x13f   :  { %5998 = vst [vmem:[#allocation36_spill] sm:$0xff] %v4397_v1 }
 0x140   :  { %3503 = vmatpush1.bf16.msra.mxu0 %v3502_v7  ;;  %v526_v7 = vsub.s32 2, %v4404_v4 }
 0x141   :  { %3699 = vmatpush1.bf16.msra.mxu1 %v3698_v8  ;;  %3505 = vmatprep.subr.bf16.mxu0 %v3504_v9  ;;  %v5749_v8 = vsub.s32 1, %v4404_v4  ;;  %v530_v9 = vsub.s32 3, %v4404_v4 }
 0x142   :  { %3701 = vmatprep.subr.bf16.mxu1 %v3700_v12  ;;  %v527_v11 = vrot.slane %v514_v6, %v526_v7  ;;  %v4427_v7 = vld [vmem:[#allocation8 + $0x114] ss:$8 sps:$4 sm:$0xff]  }
 0x143   :  { %747 = vmatmul.mubr.f32.vlgmr.msra.gmra.mrb[0].mxu0 %v119_v15  ;;  %v523_v12 = vrot.slane %v514_v6, %v5749_v8  ;;  %v531_v13 = vrot.slane %v514_v6, %v530_v9  ;;  %6001 = vst [vmem:[#allocation39_spill] sm:$0xff] %v4427_v7 }
 0x144   :  { %1031 = vmatmul.mubr.f32.vlgmr.msra.gmra.mrb[0].mxu1 %v119_v15  ;;  %3507 = vmatpush1.bf16.msra.mxu0 %v3506_v16 }
 0x145   :  { %3703 = vmatpush1.bf16.msra.mxu1 %v3702_v17  ;;  %817 = vmatprep.mubr.f32.mxu0 %v5744_v19 }
 0x146   :  { %1101 = vmatprep.mubr.f32.mxu1 %v5744_v19  ;;  %1557 = vmatprep.subr.bf16.mxu0 %v4261_v18 }
 0x147   :  { %3136 = vmatprep.subr.bf16.mxu1 %v4362_v53 }
 0x14b   :  { %2957 = vmatmul.mubr.msk.f32.vlgmr.msra.gmra.mrb[0].mxu0 %vm536_vm0, %v121_v20 }
 0x14c   :  { %2958 = vmatmul.mubr.msk.f32.vlgmr.msra.gmra.mrb[0].mxu1 %vm536_vm0, %v121_v20  ;;  %1558 = vmatpush1.bf16.msra.mxu0 %v4266_v21 }
 0x14d   :  { %1559 = vmatprep.subr.bf16.mxu0 %v4268_v22  ;;  %3137 = vmatpush3.bf16.msra.mxu1 %v4364_v54 }
 0x14e   :  { %3138 = vmatprep.subr.bf16.mxu1 %v4366_v55 }
 0x150   :  { %1560 = vmatpush1.bf16.msra.mxu0 %v4271_v23 }
 0x151   :  { %1561 = vmatprep.subr.bf16.mxu0 %v4274_v24  ;;  %3139 = vmatpush3.bf16.msra.mxu1 %v4370_v56 }
 0x152   :  { %3140 = vmatprep.subr.bf16.mxu1 %v4373_v57 }
 0x154   :  { %1562 = vmatpush1.bf16.msra.mxu0 %v4277_v25 }
 0x155   :  { %1563 = vmatprep.subr.bf16.mxu0 %v4280_v26  ;;  %3141 = vmatpush3.bf16.msra.mxu1 %v4376_v58 }
 0x156   :  { %3142 = vmatprep.subr.bf16.mxu1 %v4379_v59 }
 0x158   :  { %1564 = vmatpush1.bf16.msra.mxu0 %v4283_v27 }
 0x159   :  { %1565 = vmatprep.subr.bf16.mxu0 %v4286_v28  ;;  %3143 = vmatpush3.bf16.msra.mxu1 %v4382_v60 }
 0x15a   :  { %3144 = vmatprep.subr.bf16.mxu1 %v4385_v61 }
 0x15c   :  { %1566 = vmatpush1.bf16.msra.mxu0 %v4289_v29 }
 0x15d   :  { %1567 = vmatprep.subr.bf16.mxu0 %v4292_v30  ;;  %3145 = vmatpush3.bf16.msra.mxu1 %v4388_v62 }
 0x15e   :  { %3146 = vmatprep.subr.bf16.mxu1 %v4391_v63 }
 0x160   :  { %1568 = vmatpush1.bf16.msra.mxu0 %v4295_v31 }
 0x161   :  { %1569 = vmatprep.subr.bf16.mxu0 %v4298_v32  ;;  %3147 = vmatpush3.bf16.msra.mxu1 %v4394_v0 }
 0x162   :  { %3148 = vmatprep.subr.bf16.mxu1 %v4397_v1 }
 0x164   :  { %1570 = vmatpush1.bf16.msra.mxu0 %v4301_v33 }
 0x165   :  { %1571 = vmatprep.subr.bf16.mxu0 %v4304_v34  ;;  %3149 = vmatpush3.bf16.msra.mxu1 %v4400_v2 }
 0x168   :  { %1572 = vmatpush1.bf16.msra.mxu0 %v4307_v35 }
 0x169   :  { %1573 = vmatprep.subr.bf16.mxu0 %v4310_v36 }
 0x16c   :  { %1574 = vmatpush1.bf16.msra.mxu0 %v4313_v37 }
 0x16d   :  { %1575 = vmatprep.subr.bf16.mxu0 %v4316_v38 }
 0x170   :  { %1576 = vmatpush1.bf16.msra.mxu0 %v4319_v39 }
 0x171   :  { %1577 = vmatprep.subr.bf16.mxu0 %v4322_v40 }
 0x174   :  { %1578 = vmatpush1.bf16.msra.mxu0 %v4325_v41 }
 0x175   :  { %1579 = vmatprep.subr.bf16.mxu0 %v4328_v42 }
 0x178   :  { %1580 = vmatpush1.bf16.msra.mxu0 %v4331_v43 }
 0x179   :  { %1581 = vmatprep.subr.bf16.mxu0 %v4334_v44 }
 0x17c   :  { %1582 = vmatpush1.bf16.msra.mxu0 %v4337_v45 }
 0x17d   :  { %1583 = vmatprep.subr.bf16.mxu0 %v4340_v46 }
 0x180   :  { %1584 = vmatpush1.bf16.msra.mxu0 %v4343_v47 }
 0x181   :  { %1585 = vmatprep.subr.bf16.mxu0 %v4346_v48 }
 0x184   :  { %1586 = vmatpush1.bf16.msra.mxu0 %v4349_v49 }
 0x185   :  { %1587 = vmatprep.subr.bf16.mxu0 %v4353_v50 }
 0x188   :  { %1588 = vmatpush1.bf16.msra.mxu0 %v4355_v51  ;;  %v4477_v51 = vld [vmem:[#allocation8 + $0x134] ss:$8 sps:$4 sm:$0xff]  }
 0x189   :  { %1598 = vmatprep.subr.bf16.mxu0 %v4359_v52  ;;  %6008 = vst [vmem:[#allocation46_spill] sm:$0xff] %v4477_v51 }
 0x21e   :  { %v819_v14 = vpop.f32.mrb[0].mxu0 }
 0x21f   :  { %v4414_v15 = vadd.f32 %v819_v14, %v519_v10  ;;  %v1103_v16 = vpop.f32.mrb[0].mxu1  ;;  %v821_v17 = vpop.f32.mrb[1].mxu0 }
 0x220   :  { %v4416_v20 = vadd.f32 %v1103_v16, %v527_v11  ;;  %v4418_v3 = vadd.f32 %v821_v17, %v523_v12  ;;  %v1105_v19 = vpop.f32.mrb[1].mxu1  ;;  %v5750_v11 = vmov 1.0|1.0  }
 0x221   :  { %v4420_v52 = vadd.f32 %v1105_v19, %v531_v13  ;;  %vm1210_vm1 = vcmp.gt.f32.partialorder %v4414_v15, 0.5 }
 0x222   :  { %vm1211_vm2 = vcmp.gt.f32.partialorder %v4418_v3, 0.5  ;;  %v1222_v6 = vsel %vm1210_vm1, 0.0, %v4414_v15  ;;  %vm1212_vm3 = vcmp.gt.f32.partialorder %v4416_v20, 0.5  ;;  %vm3025_vm6 = vmpackc.low %vm1210_vm1, %vm1210_vm1 }
 0x223   :  { %v1223_v9 = vsel %vm1211_vm2, 0.0, %v4418_v3  ;;  %vm3023_vm4 = vmpackc.low %vm1211_vm2, %vm1211_vm2  ;;  %v1796_v10 = vmul.f32 0.2, %v1222_v6  ;;  %vm1213_vm5 = vcmp.gt.f32.partialorder %v4420_v52, 0.5  ;;  %v1224_v19 = vsel %vm1212_vm3, 0.0, %v4416_v20 }
 0x224   :  { %3024 = vmatprep.mubr.msk.bf16.mxu0 %vm3023_vm4, %v5750_v11  ;;  %v1797_v12 = vmul.f32 0.2, %v1223_v9  ;;  %v1225_v13 = vsel %vm1213_vm5, 0.0, %v4420_v52  ;;  %v1798_v14 = vmul.f32 0.2, %v1224_v19  ;;  %vm3027_vm7 = vmpackc.low %vm1213_vm5, %vm1213_vm5 }
 0x225   :  { %3026 = vmatmul.mubr.msk.bf16.vlgmr.msra.gmra.mrb[4].mxu0 %vm3025_vm6, %v5750_v11  ;;  %v1799_v16 = vmul.f32 0.2, %v1225_v13  ;;  %v4439_v17 = vadd.f32 %v4414_v15, %v1796_v10  ;;  %v4443_v6 = vld [vmem:[#allocation8 + $0x110] ss:$8 sps:$4 sm:$0xff]   ;;  %v4452_v19 = vld [vmem:[#allocation8 + $0x124] ss:$8 sps:$4 sm:$0xff]  }
 0x226   :  { %1599 = vmatpush1.bf16.msra.mxu0 %v4423_v5  ;;  %3028 = vmatprep.mubr.msk.bf16.mxu0 %vm3027_vm7, %v5750_v11  ;;  %6003 = vst [vmem:[#allocation41_spill] sm:$0xff] %v4443_v6  ;;  %v4446_v8 = vadd.f32 %v4418_v3, %v1797_v12  ;;  %v4449_v9 = vadd.f32 %v4416_v20, %v1798_v14  ;;  %6005 = vst [vmem:[#allocation43_spill] sm:$0xff] %v4452_v19  ;;  %v4458_v13 = vld [vmem:[#allocation8 + $0x120] ss:$8 sps:$4 sm:$0xff]  }
 0x227   :  { %6002 = vst [vmem:[#allocation40_spill] sm:$0xff] %v4439_v17  ;;  %1600 = vmatprep.subr.bf16.mxu0 %v4427_v7  ;;  %vm1804_vm8 = vcmp.gt.f32.partialorder %v4439_v17, 0.5  ;;  %v4456_v10 = vadd.f32 %v4420_v52, %v1799_v16  ;;  %6007 = vst [vmem:[#allocation45_spill] sm:$0xff] %v4458_v13 }
 0x228   :  { %6004 = vst [vmem:[#allocation42_spill] sm:$0xff] %v4449_v9  ;;  %vm1805_vm9 = vcmp.gt.f32.partialorder %v4446_v8, 0.5  ;;  %v1816_v12 = vsel %vm1804_vm8, 0.0, %v4439_v17  ;;  %vm1806_vm10 = vcmp.gt.f32.partialorder %v4449_v9, 0.5 }
 0x229   :  { %6006 = vst [vmem:[#allocation44_spill] sm:$0xff] %v4456_v10  ;;  %v1817_v14 = vsel %vm1805_vm9, 0.0, %v4446_v8  ;;  %v1960_v11 = vmul.f32 0.2, %v1816_v12  ;;  %vm1807_vm11 = vcmp.gt.f32.partialorder %v4456_v10, 0.5  ;;  %v1818_v16 = vsel %vm1806_vm10, 0.0, %v4449_v9 }
 0x22a   :  { %1601 = vmatpush1.bf16.msra.mxu0 %v4443_v6  ;;  %v1961_v7 = vmul.f32 0.2, %v1817_v14  ;;  %v1819_v5 = vsel %vm1807_vm11, 0.0, %v4456_v10  ;;  %v1962_v17 = vmul.f32 0.2, %v1818_v16  ;;  %v6073_v8 = vld [vmem:[#allocation38_spill] sm:$0xff] }
 0x22b   :  { %1602 = vmatprep.subr.bf16.mxu0 %v4452_v19  ;;  %v4480_v12 = vadd.f32 %v4414_v15, %v1960_v11  ;;  %v1963_v50 = vmul.f32 0.2, %v1819_v5  ;;  %v4488_v14 = vld [vmem:[#allocation8 + $0x130] ss:$8 sps:$4 sm:$0xff]   ;;  %v4495_v16 = vld [vmem:[#allocation8 + $0x144] ss:$8 sps:$4 sm:$0xff]  }
 0x22c   :  { %v4483_v49 = vadd.f32 %v4418_v3, %v1961_v7  ;;  %v4486_v9 = vadd.f32 %v4416_v20, %v1962_v17  ;;  %6012 = vst [vmem:[#allocation50_spill] sm:$0xff] %v4488_v14  ;;  %6014 = vst [vmem:[#allocation52_spill] sm:$0xff] %v4495_v16  ;;  %v4517_v10 = vld [vmem:[#allocation8 + $0x140] ss:$8 sps:$4 sm:$0xff]  }
 0x22d   :  { %6009 = vst [vmem:[#allocation47_spill] sm:$0xff] %v4480_v12  ;;  %v4491_v6 = vadd.f32 %v4420_v52, %v1963_v50  ;;  %vm1968_vm12 = vcmp.gt.f32.partialorder %v4480_v12, 0.5  ;;  %6016 = vst [vmem:[#allocation54_spill] sm:$0xff] %v4517_v10 }
 0x22e   :  { %6010 = vst [vmem:[#allocation48_spill] sm:$0xff] %v4483_v49  ;;  %6011 = vst [vmem:[#allocation49_spill] sm:$0xff] %v4486_v9  ;;  %1603 = vmatpush1.bf16.msra.mxu0 %v4458_v13  ;;  %vm1970_vm13 = vcmp.gt.f32.partialorder %v4486_v9, 0.5  ;;  %vm1969_vm14 = vcmp.gt.f32.partialorder %v4483_v49, 0.5  ;;  %v1980_v5 = vsel %vm1968_vm12, 0.0, %v4480_v12 }
 0x22f   :  { %6013 = vst [vmem:[#allocation51_spill] sm:$0xff] %v4491_v6  ;;  %1604 = vmatprep.subr.bf16.mxu0 %v4477_v51  ;;  %vm1971_vm15 = vcmp.gt.f32.partialorder %v4491_v6, 0.5  ;;  %v1982_v50 = vsel %vm1970_vm13, 0.0, %v4486_v9  ;;  %v1981_v7 = vsel %vm1969_vm14, 0.0, %v4483_v49  ;;  %v2124_v11 = vmul.f32 0.2, %v1980_v5 }
 0x230   :  { %v1983_v17 = vsel %vm1971_vm15, 0.0, %v4491_v6  ;;  %v2126_v13 = vmul.f32 0.2, %v1982_v50  ;;  %v2125_v19 = vmul.f32 0.2, %v1981_v7 }
 0x231   :  { %v2127_v12 = vmul.f32 0.2, %v1983_v17  ;;  %v4514_v51 = vadd.f32 %v4414_v15, %v2124_v11  ;;  %v4526_v5 = vld [vmem:[#allocation8 + $0x154] ss:$8 sps:$4 sm:$0xff]   ;;  %v4532_v7 = vld [vmem:[#allocation8 + $0x150] ss:$8 sps:$4 sm:$0xff]  }
 0x232   :  { %1605 = vmatpush1.bf16.msra.mxu0 %v4488_v14  ;;  %v4520_v9 = vadd.f32 %v4418_v3, %v2125_v19  ;;  %v4523_v49 = vadd.f32 %v4416_v20, %v2126_v13  ;;  %6019 = vst [vmem:[#allocation57_spill] sm:$0xff] %v4526_v5  ;;  %6021 = vst [vmem:[#allocation59_spill] sm:$0xff] %v4532_v7 }
 0x233   :  { %6015 = vst [vmem:[#allocation53_spill] sm:$0xff] %v4514_v51  ;;  %1606 = vmatprep.subr.bf16.mxu0 %v4495_v16  ;;  %vm2132_vm0 = vcmp.gt.f32.partialorder %v4514_v51, 0.5  ;;  %v4530_v50 = vadd.f32 %v4420_v52, %v2127_v12  ;;  %v4551_v16 = vld [vmem:[#allocation8 + $0x164] ss:$8 sps:$4 sm:$0xff]  }
 0x234   :  { %6017 = vst [vmem:[#allocation55_spill] sm:$0xff] %v4520_v9  ;;  %6018 = vst [vmem:[#allocation56_spill] sm:$0xff] %v4523_v49  ;;  %vm2133_vm1 = vcmp.gt.f32.partialorder %v4520_v9, 0.5  ;;  %v2144_v19 = vsel %vm2132_vm0, 0.0, %v4514_v51  ;;  %vm5785_vm2 = vcmp.gt.f32.partialorder %v4523_v49, 0.5 }
 0x235   :  { %6020 = vst [vmem:[#allocation58_spill] sm:$0xff] %v4530_v50  ;;  %v2145_v13 = vsel %vm2133_vm1, 0.0, %v4520_v9  ;;  %v2288_v11 = vmul.f32 0.2, %v2144_v19  ;;  %vm2135_vm4 = vcmp.gt.f32.partialorder %v4530_v50, 0.5  ;;  %v2146_v12 = vsel %vm5785_vm2, 0.0, %v4523_v49 }
 0x236   :  { %1607 = vmatpush1.bf16.msra.mxu0 %v4517_v10  ;;  %v2289_v17 = vmul.f32 0.2, %v2145_v13  ;;  %v2147_v51 = vsel %vm2135_vm4, 0.0, %v4530_v50  ;;  %v2290_v6 = vmul.f32 0.2, %v2146_v12  ;;  %6022 = vst [vmem:[#allocation60_spill] sm:$0xff] %v4551_v16 }
 0x237   :  { %1608 = vmatprep.subr.bf16.mxu0 %v4526_v5  ;;  %v2291_v9 = vmul.f32 0.2, %v2147_v51  ;;  %v4554_v19 = vadd.f32 %v4414_v15, %v2288_v11  ;;  %v4562_v13 = vld [vmem:[#allocation8 + $0x160] ss:$8 sps:$4 sm:$0xff]   ;;  %v4569_v50 = vld [vmem:[#allocation8 + $0x174] ss:$8 sps:$4 sm:$0xff]  }
 0x238   :  { %v4557_v14 = vadd.f32 %v4418_v3, %v2289_v17  ;;  %v4560_v49 = vadd.f32 %v4416_v20, %v2290_v6  ;;  %6026 = vst [vmem:[#allocation64_spill] sm:$0xff] %v4562_v13  ;;  %6028 = vst [vmem:[#allocation66_spill] sm:$0xff] %v4569_v50 }
 0x239   :  { %6023 = vst [vmem:[#allocation61_spill] sm:$0xff] %v4554_v19  ;;  %vm5798_vm5 = vcmp.gt.f32.partialorder %v4554_v19, 0.5  ;;  %v4566_v12 = vadd.f32 %v4420_v52, %v2291_v9 }
 0x23a   :  { %6024 = vst [vmem:[#allocation62_spill] sm:$0xff] %v4557_v14  ;;  %6025 = vst [vmem:[#allocation63_spill] sm:$0xff] %v4560_v49  ;;  %1609 = vmatpush1.bf16.msra.mxu0 %v4532_v7  ;;  %vm5799_vm6 = vcmp.gt.f32.partialorder %v4557_v14, 0.5  ;;  %v2308_v51 = vsel %vm5798_vm5, 0.0, %v4554_v19  ;;  %vm5796_vm7 = vcmp.gt.f32.partialorder %v4560_v49, 0.5 }
 0x23b   :  { %6027 = vst [vmem:[#allocation65_spill] sm:$0xff] %v4566_v12  ;;  %1610 = vmatprep.subr.bf16.mxu0 %v4551_v16  ;;  %v2309_v6 = vsel %vm5799_vm6, 0.0, %v4557_v14  ;;  %v2452_v9 = vmul.f32 0.2, %v2308_v51  ;;  %vm5797_vm2 = vcmp.gt.f32.partialorder %v4566_v12, 0.5  ;;  %v2310_v11 = vsel %vm5796_vm7, 0.0, %v4560_v49 }
 0x23c   :  { %v2453_v17 = vmul.f32 0.2, %v2309_v6  ;;  %v2311_v19 = vsel %vm5797_vm2, 0.0, %v4566_v12  ;;  %v2454_v7 = vmul.f32 0.2, %v2310_v11 }
 0x23d   :  { %v2455_v5 = vmul.f32 0.2, %v2311_v19  ;;  %v4588_v16 = vadd.f32 %v4414_v15, %v2452_v9  ;;  %v4591_v14 = vld [vmem:[#allocation8 + $0x170] ss:$8 sps:$4 sm:$0xff]   ;;  %v4600_v6 = vld [vmem:[#allocation8 + $0x184] ss:$8 sps:$4 sm:$0xff]  }
 0x23e   :  { %1611 = vmatpush1.bf16.msra.mxu0 %v4562_v13  ;;  %6030 = vst [vmem:[#allocation68_spill] sm:$0xff] %v4591_v14  ;;  %v4594_v51 = vadd.f32 %v4418_v3, %v2453_v17  ;;  %v4597_v10 = vadd.f32 %v4416_v20, %v2454_v7  ;;  %6033 = vst [vmem:[#allocation71_spill] sm:$0xff] %v4600_v6  ;;  %v4606_v9 = vld [vmem:[#allocation8 + $0x180] ss:$8 sps:$4 sm:$0xff]  }
 0x23f   :  { %6029 = vst [vmem:[#allocation67_spill] sm:$0xff] %v4588_v16  ;;  %1612 = vmatprep.subr.bf16.mxu0 %v4569_v50  ;;  %vm5812_vm7 = vcmp.gt.f32.partialorder %v4588_v16, 0.5  ;;  %v4604_v19 = vadd.f32 %v4420_v52, %v2455_v5  ;;  %6035 = vst [vmem:[#allocation73_spill] sm:$0xff] %v4606_v9  ;;  %v4625_v50 = vld [vmem:[#allocation8 + $0x194] ss:$8 sps:$4 sm:$0xff]  }
 0x240   :  { %6031 = vst [vmem:[#allocation69_spill] sm:$0xff] %v4594_v51  ;;  %6032 = vst [vmem:[#allocation70_spill] sm:$0xff] %v4597_v10  ;;  %vm5813_vm2 = vcmp.gt.f32.partialorder %v4594_v51, 0.5  ;;  %v2472_v11 = vsel %vm5812_vm7, 0.0, %v4588_v16  ;;  %vm5809_vm5 = vcmp.gt.f32.partialorder %v4597_v10, 0.5 }
 0x241   :  { %6034 = vst [vmem:[#allocation72_spill] sm:$0xff] %v4604_v19  ;;  %v2473_v7 = vsel %vm5813_vm2, 0.0, %v4594_v51  ;;  %v2616_v17 = vmul.f32 0.2, %v2472_v11  ;;  %vm5811_vm6 = vcmp.gt.f32.partialorder %v4604_v19, 0.5  ;;  %v2474_v5 = vsel %vm5809_vm5, 0.0, %v4597_v10 }
 0x242   :  { %1613 = vmatpush1.bf16.msra.mxu0 %v4591_v14  ;;  %v2617_v49 = vmul.f32 0.2, %v2473_v7  ;;  %v2475_v16 = vsel %vm5811_vm6, 0.0, %v4604_v19  ;;  %v2618_v12 = vmul.f32 0.2, %v2474_v5  ;;  %6036 = vst [vmem:[#allocation74_spill] sm:$0xff] %v4625_v50 }
 0x243   :  { %1614 = vmatprep.subr.bf16.mxu0 %v4600_v6  ;;  %v2619_v51 = vmul.f32 0.2, %v2475_v16  ;;  %v4628_v11 = vadd.f32 %v4414_v15, %v2616_v17  ;;  %v4636_v7 = vld [vmem:[#allocation8 + $0x190] ss:$8 sps:$4 sm:$0xff]   ;;  %v4643_v19 = vld [vmem:[#allocation8 + $0x1a4] ss:$8 sps:$4 sm:$0xff]  }
 0x244   :  { %v4631_v13 = vadd.f32 %v4418_v3, %v2617_v49  ;;  %v4634_v10 = vadd.f32 %v4416_v20, %v2618_v12  ;;  %6040 = vst [vmem:[#allocation78_spill] sm:$0xff] %v4636_v7  ;;  %6042 = vst [vmem:[#allocation80_spill] sm:$0xff] %v4643_v19 }
 0x245   :  { %6037 = vst [vmem:[#allocation75_spill] sm:$0xff] %v4628_v11  ;;  %vm5848_vm5 = vcmp.gt.f32.partialorder %v4628_v11, 0.5  ;;  %v4640_v5 = vadd.f32 %v4420_v52, %v2619_v51 }
 0x246   :  { %6038 = vst [vmem:[#allocation76_spill] sm:$0xff] %v4631_v13  ;;  %6039 = vst [vmem:[#allocation77_spill] sm:$0xff] %v4634_v10  ;;  %1615 = vmatpush1.bf16.msra.mxu0 %v4606_v9  ;;  %vm5849_vm6 = vcmp.gt.f32.partialorder %v4631_v13, 0.5  ;;  %v2636_v49 = vsel %vm5848_vm5, 0.0, %v4628_v11  ;;  %vm5824_vm7 = vcmp.gt.f32.partialorder %v4634_v10, 0.5 }
 0x247   :  { %6041 = vst [vmem:[#allocation79_spill] sm:$0xff] %v4640_v5  ;;  %1616 = vmatprep.subr.bf16.mxu0 %v4625_v50  ;;  %v2637_v16 = vsel %vm5849_vm6, 0.0, %v4631_v13  ;;  %v2780_v12 = vmul.f32 0.2, %v2636_v49  ;;  %vm5847_vm2 = vcmp.gt.f32.partialorder %v4640_v5, 0.5  ;;  %v2638_v51 = vsel %vm5824_vm7, 0.0, %v4634_v10  ;;  %vm3029_vm7 = vmpackc.low %vm1212_vm3, %vm1212_vm3 }
 0x248   :  { %v2781_v17 = vmul.f32 0.2, %v2637_v16  ;;  %v2639_v11 = vsel %vm5847_vm2, 0.0, %v4640_v5  ;;  %v2782_v9 = vmul.f32 0.2, %v2638_v51  ;;  %vm3052_vm6 = vmpackc.low %vm1805_vm9, %vm1805_vm9 }
 0x249   :  { %v2783_v6 = vmul.f32 0.2, %v2639_v11  ;;  %v4662_v50 = vadd.f32 %v4414_v15, %v2780_v12  ;;  %v4665_v13 = vld [vmem:[#allocation8 + $0x1a0] ss:$8 sps:$4 sm:$0xff]   ;;  %v4674_v16 = vld [vmem:[#allocation8 + $0x1b4] ss:$8 sps:$4 sm:$0xff]   ;;  %vm3054_vm9 = vmpackc.low %vm1804_vm8, %vm1804_vm8 }
 0x24a   :  { %1617 = vmatpush1.bf16.msra.mxu0 %v4636_v7  ;;  %6044 = vst [vmem:[#allocation82_spill] sm:$0xff] %v4665_v13  ;;  %v4668_v49 = vadd.f32 %v4418_v3, %v2781_v17  ;;  %v4671_v14 = vadd.f32 %v4416_v20, %v2782_v9  ;;  %6047 = vst [vmem:[#allocation85_spill] sm:$0xff] %v4674_v16  ;;  %v4680_v15 = vld [vmem:[#allocation8 + $0x1b0] ss:$8 sps:$4 sm:$0xff]   ;;  %v4683_v11 = vld [vmem:[#allocation8 + $0x1c4] ss:$8 sps:$4 sm:$0xff]  }
 0x24b   :  { %6043 = vst [vmem:[#allocation81_spill] sm:$0xff] %v4662_v50  ;;  %1618 = vmatprep.subr.bf16.mxu0 %v4643_v19  ;;  %v4677_v51 = vadd.f32 %v4420_v52, %v2783_v6  ;;  %6049 = vst [vmem:[#allocation87_spill] sm:$0xff] %v4680_v15  ;;  %v4686_v3 = vld [vmem:[#allocation8 + $0x1c0] ss:$8 sps:$4 sm:$0xff]   ;;  %v4689_v9 = vld [vmem:[#allocation8 + $0x1d4] ss:$8 sps:$4 sm:$0xff]  }
 0x24c   :  { %6045 = vst [vmem:[#allocation83_spill] sm:$0xff] %v4668_v49  ;;  %6046 = vst [vmem:[#allocation84_spill] sm:$0xff] %v4671_v14  ;;  %v4692_v52 = vld [vmem:[#allocation8 + $0x1d0] ss:$8 sps:$4 sm:$0xff]   ;;  %v4695_v6 = vld [vmem:[#allocation8 + $0x1e4] ss:$8 sps:$4 sm:$0xff]  }
 0x24d   :  { %6048 = vst [vmem:[#allocation86_spill] sm:$0xff] %v4677_v51  ;;  %6050 = vst [vmem:[#allocation88_spill] sm:$0xff] %v4683_v11  ;;  %v4698_v12 = vld [vmem:[#allocation8 + $0x1e0] ss:$8 sps:$4 sm:$0xff]   ;;  %v4701_v17 = vld [vmem:[#allocation8 + $0x1f4] ss:$8 sps:$4 sm:$0xff]  }
 0x24e   :  { %1619 = vmatpush1.bf16.msra.mxu0 %v4665_v13  ;;  %6051 = vst [vmem:[#allocation89_spill] sm:$0xff] %v4686_v3  ;;  %6052 = vst [vmem:[#allocation90_spill] sm:$0xff] %v4689_v9  ;;  %v4704_v14 = vld [vmem:[#allocation8 + $0x1f0] ss:$8 sps:$4 sm:$0xff]   ;;  %v6058_v51 = vmov 1.0|1.0  }
 0x24f   :  { %1620 = vmatprep.subr.bf16.mxu0 %v4674_v16  ;;  %6053 = vst [vmem:[#allocation91_spill] sm:$0xff] %v4692_v52  ;;  %6054 = vst [vmem:[#allocation92_spill] sm:$0xff] %v4695_v6  ;;  %v4726_v20 = vld [vmem:[#allocation11 + $0x78] sm:$0xff]   ;;  %v6061_v49 = vsub.s32 0, %v4404_v4 }
 0x250   :  { %6055 = vst [vmem:[#allocation93_spill] sm:$0xff] %v4698_v12  ;;  %6056 = vst [vmem:[#allocation94_spill] sm:$0xff] %v4701_v17  ;;  %v4728_v50 = vld [vmem:[#allocation11 + $0x38] sm:$0xff]   ;;  %3150 = vmatprep.subr.bf16.mxu1 %v4726_v20 }
 0x251   :  { %6057 = vst [vmem:[#allocation95_spill] sm:$0xff] %v4704_v14  ;;  %6059 = vst [vmem:[#allocation96_spill] sm:$0xff] %v4726_v20  ;;  %3151 = vmatpush3.bf16.msra.mxu1 %v4728_v50  ;;  %v1172_v10 = vld [vmem:[#allocation10] sm:$0x3] }
 0x252   :  { %1621 = vmatpush1.bf16.msra.mxu0 %v4680_v15  ;;  %6060 = vst [vmem:[#allocation97_spill] sm:$0xff] %v4728_v50  ;;  %1820 = vmatprep.subr.bf16.mxu1 %v4261_v18  ;;  %v4738_v5 = vrot.slane %v1172_v10, %v6061_v49  ;;  %v6076_v49 = vld [vmem:[#allocation43_spill] sm:$0xff]  ;;  %vm3058_vm8 = vmpackc.low %vm1806_vm10, %vm1806_vm10 }
 0x253   :  { %1622 = vmatprep.subr.bf16.mxu0 %v4683_v11  ;;  %vm3070_vm10 = vmpackc.low %vm1970_vm13, %vm1970_vm13 }
 0x254   :  { %6062 = vst [vmem:[#allocation98_spill] sm:$0xff] %v4738_v5  ;;  %vm3078_vm13 = vmpackc.low %vm2132_vm0, %vm2132_vm0 }
 0x256   :  { %1623 = vmatpush1.bf16.msra.mxu0 %v4686_v3 }
 0x257   :  { %1624 = vmatprep.subr.bf16.mxu0 %v4689_v9 }
 0x25a   :  { %1625 = vmatpush1.bf16.msra.mxu0 %v4692_v52 }
 0x25b   :  { %1626 = vmatprep.subr.bf16.mxu0 %v4695_v6 }
 0x25e   :  { %1627 = vmatpush1.bf16.msra.mxu0 %v4698_v12 }
 0x25f   :  { %1628 = vmatprep.subr.bf16.mxu0 %v4701_v17 }
 0x262   :  { %1629 = vmatpush1.bf16.msra.mxu0 %v4704_v14 }
 0x263   :  { %3158 = vmatprep.subr.bf16.mxu0 %v4362_v53  ;;  %v6089_v53 = vld [vmem:[#allocation73_spill] sm:$0xff] }
 0x265   :  { %3030 = vmatmul.mubr.msk.bf16.vlgmr.msra.gmra.mrb[4].mxu0 %vm3029_vm7, %v6058_v51 }
 0x266   :  { %3159 = vmatpush3.bf16.msra.mxu0 %v4364_v54  ;;  %v6088_v54 = vld [vmem:[#allocation71_spill] sm:$0xff] }
 0x267   :  { %3160 = vmatprep.subr.bf16.mxu0 %v4366_v55  ;;  %v6087_v55 = vld [vmem:[#allocation68_spill] sm:$0xff] }
 0x26a   :  { %3161 = vmatpush3.bf16.msra.mxu0 %v4370_v56  ;;  %v6086_v56 = vld [vmem:[#allocation66_spill] sm:$0xff] }
 0x26b   :  { %3162 = vmatprep.subr.bf16.mxu0 %v4373_v57  ;;  %v6085_v57 = vld [vmem:[#allocation64_spill] sm:$0xff] }
 0x26e   :  { %3163 = vmatpush3.bf16.msra.mxu0 %v4376_v58  ;;  %v6084_v58 = vld [vmem:[#allocation60_spill] sm:$0xff] }
 0x26f   :  { %3164 = vmatprep.subr.bf16.mxu0 %v4379_v59 }
 0x272   :  { %3165 = vmatpush3.bf16.msra.mxu0 %v4382_v60 }
 0x273   :  { %3166 = vmatprep.subr.bf16.mxu0 %v4385_v61 }
 0x276   :  { %3167 = vmatpush3.bf16.msra.mxu0 %v4388_v62 }
 0x277   :  { %3168 = vmatprep.subr.bf16.mxu0 %v4391_v63 }
 0x27a   :  { %3169 = vmatpush3.bf16.msra.mxu0 %v4394_v0 }
 0x27b   :  { %3170 = vmatprep.subr.bf16.mxu0 %v4397_v1 }
 0x27e   :  { %3171 = vmatpush3.bf16.msra.mxu0 %v4400_v2  ;;  %v6063_v2 = vsub.s32 1, %v4404_v4  ;;  %v6081_v4 = vld [vmem:[#allocation54_spill] sm:$0xff] }
 0x27f   :  { %3172 = vmatprep.subr.bf16.mxu0 %v4726_v20 }
 0x280   :  { %v4742_v1 = vrot.slane %v1172_v10, %v6063_v2  ;;  %v6074_v10 = vld [vmem:[#allocation39_spill] sm:$0xff]  ;;  %v6078_v2 = vld [vmem:[#allocation46_spill] sm:$0xff] }
 0x282   :  { %3173 = vmatpush3.bf16.msra.mxu0 %v4728_v50  ;;  %6064 = vst [vmem:[#allocation99_spill] sm:$0xff] %v4742_v1 }
 0x283   :  { %1984 = vmatprep.subr.bf16.mxu0 %v4261_v18 }
 0x338   :  { %v1632_v0 = vpop.f32.mrb[4].mxu0 }
 0x339   :  { %v3708_v20 = vadd.f32 %v1632_v0, %v4738_v5  ;;  %v1634_v63 = vpop.f32.mrb[5].mxu0  ;;  %v6070_v0 = vld [vmem:[#allocation23_spill] sm:$0xff] }
 0x33a   :  { %v3709_v62 = vadd.f32 %v1634_v63, %v4742_v1  ;;  %v1636_v50 = vpop.f32.mrb[6].mxu0  ;;  %v6069_v63 = vld [vmem:[#allocation22_spill] sm:$0xff]  ;;  %v6082_v1 = vld [vmem:[#allocation57_spill] sm:$0xff]  ;;  %v6083_v5 = vld [vmem:[#allocation59_spill] sm:$0xff] }
 0x33b   :  { %vm1641_vm3 = vcmp.gt.f32.partialorder %v3708_v20, 0.5  ;;  %v1637_v61 = vpop.f32.mrb[7].mxu0  ;;  %v6075_v50 = vld [vmem:[#allocation41_spill] sm:$0xff] }
 0x33c   :  { %v4746_v60 = vsel %vm1641_vm3, 0.0, %v3708_v20  ;;  %vm1642_vm7 = vcmp.gt.f32.partialorder %v3709_v62, 0.5  ;;  %vm3050_vm5 = vmpackc.low %vm1641_vm3, %vm1641_vm3  ;;  %v6067_v61 = vld [vmem:[#allocation20_spill] sm:$0xff]  ;;  %v6077_v20 = vld [vmem:[#allocation45_spill] sm:$0xff] }
 0x33d   :  { %6065 = vst [vmem:[#allocation100_spill] sm:$0xff] %v4746_v60  ;;  %v4748_v59 = vsel %vm1642_vm7, 0.0, %v3709_v62  ;;  %vm3048_vm2 = vmpackc.low %vm1642_vm7, %vm1642_vm7  ;;  %v6068_v62 = vld [vmem:[#allocation21_spill] sm:$0xff]  ;;  %v6080_v60 = vld [vmem:[#allocation52_spill] sm:$0xff] }
 0x33e   :  { %6066 = vst [vmem:[#allocation101_spill] sm:$0xff] %v4748_v59  ;;  %3049 = vmatprep.mubr.msk.bf16.mxu1 %vm3048_vm2, %v6058_v51  ;;  %vm3056_vm2 = vmpackc.low %vm1807_vm11, %vm1807_vm11  ;;  %v6079_v59 = vld [vmem:[#allocation50_spill] sm:$0xff] }
 0x33f   :  { %3051 = vmatmul.mubr.msk.bf16.vlgmr.msra.gmra.mrb[4].mxu1 %vm3050_vm5, %v6058_v51  ;;  %vm3068_vm11 = vmpackc.low %vm1971_vm15, %vm1971_vm15 }
 0x340   :  { %1821 = vmatpush1.bf16.msra.mxu1 %v4266_v21  ;;  %3053 = vmatprep.mubr.msk.bf16.mxu1 %vm3052_vm6, %v6058_v51  ;;  %vm3076_vm15 = vmpackc.low %vm2133_vm1, %vm2133_vm1 }
 0x341   :  { %1822 = vmatprep.subr.bf16.mxu1 %v4268_v22  ;;  %vm3064_vm3 = vmpackc.low %vm1969_vm14, %vm1969_vm14 }
 0x342   :  { %vm3066_vm14 = vmpackc.low %vm1968_vm12, %vm1968_vm12 }
 0x344   :  { %1823 = vmatpush1.bf16.msra.mxu1 %v4271_v23 }
 0x345   :  { %1824 = vmatprep.subr.bf16.mxu1 %v4274_v24 }
 0x348   :  { %1825 = vmatpush1.bf16.msra.mxu1 %v4277_v25 }
 0x349   :  { %1826 = vmatprep.subr.bf16.mxu1 %v4280_v26 }
 0x34c   :  { %1827 = vmatpush1.bf16.msra.mxu1 %v4283_v27 }
 0x34d   :  { %1828 = vmatprep.subr.bf16.mxu1 %v4286_v28 }
 0x350   :  { %1829 = vmatpush1.bf16.msra.mxu1 %v4289_v29 }
 0x351   :  { %1830 = vmatprep.subr.bf16.mxu1 %v4292_v30 }
 0x354   :  { %1831 = vmatpush1.bf16.msra.mxu1 %v4295_v31 }
 0x355   :  { %1832 = vmatprep.subr.bf16.mxu1 %v4298_v32 }
 0x358   :  { %1833 = vmatpush1.bf16.msra.mxu1 %v4301_v33 }
 0x359   :  { %1834 = vmatprep.subr.bf16.mxu1 %v4304_v34 }
 0x35c   :  { %1835 = vmatpush1.bf16.msra.mxu1 %v4307_v35 }
 0x35d   :  { %1836 = vmatprep.subr.bf16.mxu1 %v4310_v36 }
 0x360   :  { %1837 = vmatpush1.bf16.msra.mxu1 %v4313_v37 }
 0x361   :  { %1838 = vmatprep.subr.bf16.mxu1 %v4316_v38 }
 0x364   :  { %1839 = vmatpush1.bf16.msra.mxu1 %v4319_v39 }
 0x365   :  { %1840 = vmatprep.subr.bf16.mxu1 %v4322_v40 }
 0x368   :  { %1841 = vmatpush1.bf16.msra.mxu1 %v4325_v41 }
 0x369   :  { %1842 = vmatprep.subr.bf16.mxu1 %v4328_v42 }
 0x36c   :  { %1843 = vmatpush1.bf16.msra.mxu1 %v4331_v43 }
 0x36d   :  { %1844 = vmatprep.subr.bf16.mxu1 %v4334_v44 }
 0x370   :  { %1845 = vmatpush1.bf16.msra.mxu1 %v4337_v45 }
 0x371   :  { %1846 = vmatprep.subr.bf16.mxu1 %v4340_v46 }
 0x374   :  { %1847 = vmatpush1.bf16.msra.mxu1 %v4343_v47 }
 0x375   :  { %1848 = vmatprep.subr.bf16.mxu1 %v4346_v48 }
 0x378   :  { %1849 = vmatpush1.bf16.msra.mxu1 %v6067_v61 }
 0x379   :  { %1850 = vmatprep.subr.bf16.mxu1 %v6068_v62  ;;  %v6106_v62 = vld [vmem:[#allocation31_spill] sm:$0xff] }
 0x37c   :  { %1851 = vmatpush1.bf16.msra.mxu1 %v6069_v63  ;;  %v6090_v63 = vld [vmem:[#allocation74_spill] sm:$0xff] }
 0x37d   :  { %1861 = vmatprep.subr.bf16.mxu1 %v6070_v0 }
 0x37f   :  { %3055 = vmatmul.mubr.msk.bf16.vlgmr.msra.gmra.mrb[8].mxu1 %vm3054_vm9, %v6058_v51 }
 0x380   :  { %1862 = vmatpush1.bf16.msra.mxu1 %v6073_v8  ;;  %3057 = vmatprep.mubr.msk.bf16.mxu1 %vm3056_vm2, %v6058_v51 }
 0x381   :  { %1863 = vmatprep.subr.bf16.mxu1 %v6074_v10 }
 0x384   :  { %1864 = vmatpush1.bf16.msra.mxu1 %v6075_v50 }
 0x385   :  { %1865 = vmatprep.subr.bf16.mxu1 %v6076_v49 }
 0x388   :  { %1866 = vmatpush1.bf16.msra.mxu1 %v6077_v20 }
 0x389   :  { %1867 = vmatprep.subr.bf16.mxu1 %v6078_v2 }
 0x38c   :  { %1868 = vmatpush1.bf16.msra.mxu1 %v6079_v59 }
 0x38d   :  { %1869 = vmatprep.subr.bf16.mxu1 %v6080_v60 }
 0x390   :  { %1870 = vmatpush1.bf16.msra.mxu1 %v6081_v4 }
 0x391   :  { %1871 = vmatprep.subr.bf16.mxu1 %v6082_v1 }
 0x394   :  { %1872 = vmatpush1.bf16.msra.mxu1 %v6083_v5 }
 0x395   :  { %1873 = vmatprep.subr.bf16.mxu1 %v6084_v58 }
 0x398   :  { %1874 = vmatpush1.bf16.msra.mxu1 %v6085_v57 }
 0x399   :  { %1875 = vmatprep.subr.bf16.mxu1 %v6086_v56 }
 0x39c   :  { %1876 = vmatpush1.bf16.msra.mxu1 %v6087_v55 }
 0x39d   :  { %1877 = vmatprep.subr.bf16.mxu1 %v6088_v54 }
 0x3a0   :  { %1878 = vmatpush1.bf16.msra.mxu1 %v6089_v53 }
 0x3a1   :  { %1879 = vmatprep.subr.bf16.mxu1 %v6090_v63 }
 0x3a4   :  { %1880 = vmatpush1.bf16.msra.mxu1 %v4636_v7 }
 0x3a5   :  { %1881 = vmatprep.subr.bf16.mxu1 %v4643_v19 }
 0x3a8   :  { %1882 = vmatpush1.bf16.msra.mxu1 %v4665_v13 }
 0x3a9   :  { %1883 = vmatprep.subr.bf16.mxu1 %v4674_v16 }
 0x3ac   :  { %1884 = vmatpush1.bf16.msra.mxu1 %v4680_v15 }
 0x3ad   :  { %1885 = vmatprep.subr.bf16.mxu1 %v4683_v11 }
 0x3b0   :  { %1886 = vmatpush1.bf16.msra.mxu1 %v4686_v3 }
 0x3b1   :  { %1887 = vmatprep.subr.bf16.mxu1 %v4689_v9 }
 0x3b4   :  { %1888 = vmatpush1.bf16.msra.mxu1 %v4692_v52 }
 0x3b5   :  { %1889 = vmatprep.subr.bf16.mxu1 %v4695_v6 }
 0x3b8   :  { %1890 = vmatpush1.bf16.msra.mxu1 %v4698_v12 }
 0x3b9   :  { %1891 = vmatprep.subr.bf16.mxu1 %v4701_v17 }
 0x3bc   :  { %1892 = vmatpush1.bf16.msra.mxu1 %v4704_v14 }
 0x3bd   :  { %2025 = vmatprep.subr.bf16.mxu1 %v6070_v0 }
 0x3bf   :  { %3059 = vmatmul.mubr.msk.bf16.vlgmr.msra.gmra.mrb[12].mxu1 %vm3058_vm8, %v6058_v51 }
 0x3c0   :  { %2026 = vmatpush1.bf16.msra.mxu1 %v6073_v8  ;;  %3069 = vmatprep.mubr.msk.bf16.mxu1 %vm3068_vm11, %v6058_v51 }
 0x3c1   :  { %2027 = vmatprep.subr.bf16.mxu1 %v6074_v10 }
 0x3c4   :  { %2028 = vmatpush1.bf16.msra.mxu1 %v6075_v50 }
 0x3c5   :  { %2029 = vmatprep.subr.bf16.mxu1 %v6076_v49 }
 0x3c8   :  { %2030 = vmatpush1.bf16.msra.mxu1 %v6077_v20 }
 0x3c9   :  { %2031 = vmatprep.subr.bf16.mxu1 %v6078_v2 }
 0x3cc   :  { %2032 = vmatpush1.bf16.msra.mxu1 %v6079_v59 }
 0x3cd   :  { %2033 = vmatprep.subr.bf16.mxu1 %v6080_v60 }
 0x3d0   :  { %2034 = vmatpush1.bf16.msra.mxu1 %v6081_v4 }
 0x3d1   :  { %2035 = vmatprep.subr.bf16.mxu1 %v6082_v1 }
 0x3d4   :  { %2036 = vmatpush1.bf16.msra.mxu1 %v6083_v5 }
 0x3d5   :  { %2037 = vmatprep.subr.bf16.mxu1 %v6084_v58 }
 0x3d8   :  { %2038 = vmatpush1.bf16.msra.mxu1 %v6085_v57 }
 0x3d9   :  { %2039 = vmatprep.subr.bf16.mxu1 %v6086_v56 }
 0x3dc   :  { %2040 = vmatpush1.bf16.msra.mxu1 %v6087_v55 }
 0x3dd   :  { %2041 = vmatprep.subr.bf16.mxu1 %v6088_v54 }
 0x3e0   :  { %2042 = vmatpush1.bf16.msra.mxu1 %v6089_v53 }
 0x3e1   :  { %2043 = vmatprep.subr.bf16.mxu1 %v6090_v63 }
 0x3e4   :  { %2044 = vmatpush1.bf16.msra.mxu1 %v4636_v7  ;;  %v6117_v7 = vld [vmem:[#allocation100_spill] sm:$0xff] }
 0x3e5   :  { %2045 = vmatprep.subr.bf16.mxu1 %v4643_v19 }
 0x3e8   :  { %2046 = vmatpush1.bf16.msra.mxu1 %v4665_v13 }
 0x3e9   :  { %2047 = vmatprep.subr.bf16.mxu1 %v4674_v16  ;;  %v6116_v16 = vld [vmem:[#allocation99_spill] sm:$0xff] }
 0x3ec   :  { %2048 = vmatpush1.bf16.msra.mxu1 %v4680_v15 }
 0x3ed   :  { %2049 = vmatprep.subr.bf16.mxu1 %v4683_v11  ;;  %v6115_v11 = vld [vmem:[#allocation98_spill] sm:$0xff] }
 0x3f0   :  { %2050 = vmatpush1.bf16.msra.mxu1 %v4686_v3  ;;  %v6114_v3 = vld [vmem:[#allocation97_spill] sm:$0xff] }
 0x3f1   :  { %2051 = vmatprep.subr.bf16.mxu1 %v4689_v9  ;;  %v6113_v9 = vld [vmem:[#allocation96_spill] sm:$0xff] }
 0x3f4   :  { %2052 = vmatpush1.bf16.msra.mxu1 %v4692_v52  ;;  %v6112_v52 = vld [vmem:[#allocation37_spill] sm:$0xff] }
 0x3f5   :  { %2053 = vmatprep.subr.bf16.mxu1 %v4695_v6  ;;  %v6111_v6 = vld [vmem:[#allocation36_spill] sm:$0xff] }
 0x3f8   :  { %2054 = vmatpush1.bf16.msra.mxu1 %v4698_v12 }
 0x3f9   :  { %2055 = vmatprep.subr.bf16.mxu1 %v4701_v17  ;;  %v6110_v17 = vld [vmem:[#allocation35_spill] sm:$0xff] }
 0x3fc   :  { %2056 = vmatpush1.bf16.msra.mxu1 %v4704_v14 }
 0x3fd   :  { %2148 = vmatprep.subr.bf16.mxu1 %v4261_v18 }
 0x3ff   :  { %3071 = vmatmul.mubr.msk.bf16.vlgmr.msra.gmra.mrb[16].mxu1 %vm3070_vm10, %v6058_v51  ;;  %vm3080_vm10 = vmpackc.low %vm2135_vm4, %vm2135_vm4 }
 0x400   :  { %2149 = vmatpush1.bf16.msra.mxu1 %v4266_v21  ;;  %3077 = vmatprep.mubr.msk.bf16.mxu1 %vm3076_vm15, %v6058_v51 }
 0x401   :  { %2150 = vmatprep.subr.bf16.mxu1 %v4268_v22 }
 0x404   :  { %2151 = vmatpush1.bf16.msra.mxu1 %v4271_v23 }
 0x405   :  { %2152 = vmatprep.subr.bf16.mxu1 %v4274_v24  ;;  %v6095_v24 = vld [vmem:[#allocation20_spill] sm:$0xff] }
 0x408   :  { %2153 = vmatpush1.bf16.msra.mxu1 %v4277_v25  ;;  %v6096_v25 = vld [vmem:[#allocation21_spill] sm:$0xff] }
 0x409   :  { %2154 = vmatprep.subr.bf16.mxu1 %v4280_v26  ;;  %v6097_v26 = vld [vmem:[#allocation22_spill] sm:$0xff] }
 0x40c   :  { %2155 = vmatpush1.bf16.msra.mxu1 %v4283_v27  ;;  %v6098_v27 = vld [vmem:[#allocation24_spill] sm:$0xff] }
 0x40d   :  { %2156 = vmatprep.subr.bf16.mxu1 %v4286_v28 }
 0x410   :  { %2157 = vmatpush1.bf16.msra.mxu1 %v4289_v29  ;;  %v6100_v29 = vld [vmem:[#allocation25_spill] sm:$0xff] }
 0x411   :  { %2158 = vmatprep.subr.bf16.mxu1 %v4292_v30  ;;  %v6101_v30 = vld [vmem:[#allocation26_spill] sm:$0xff] }
 0x412   :  { %v3152_v18 = vpop.f32.mrb[4].mxu1 }
 0x413   :  { %v3153_v21 = vpop.f32.mrb[5].mxu1 }
 0x414   :  { %v4886_v61 = vadd.f32 %v3153_v21, %v3152_v18  ;;  %2159 = vmatpush1.bf16.msra.mxu1 %v4295_v31  ;;  %v3155_v22 = vpop.f32.mrb[6].mxu1  ;;  %v6102_v31 = vld [vmem:[#allocation27_spill] sm:$0xff]  ;;  %v6107_v18 = vld [vmem:[#allocation32_spill] sm:$0xff]  ;;  %v6108_v21 = vld [vmem:[#allocation33_spill] sm:$0xff] }
 0x415   :  { %v3156_v23 = vpop.f32.mrb[7].mxu1  ;;  %2160 = vmatprep.subr.bf16.mxu1 %v4298_v32  ;;  %v6103_v32 = vld [vmem:[#allocation28_spill] sm:$0xff]  ;;  %v6109_v22 = vld [vmem:[#allocation34_spill] sm:$0xff] }
 0x418   :  { %2161 = vmatpush1.bf16.msra.mxu1 %v4301_v33  ;;  %v6104_v33 = vld [vmem:[#allocation29_spill] sm:$0xff] }
 0x419   :  { %2162 = vmatprep.subr.bf16.mxu1 %v4304_v34  ;;  %v6105_v34 = vld [vmem:[#allocation30_spill] sm:$0xff] }
 0x41c   :  { %2163 = vmatpush1.bf16.msra.mxu1 %v4307_v35 }
 0x41d   :  { %2164 = vmatprep.subr.bf16.mxu1 %v4310_v36 }
 0x420   :  { %2165 = vmatpush1.bf16.msra.mxu1 %v4313_v37 }
 0x421   :  { %2166 = vmatprep.subr.bf16.mxu1 %v4316_v38 }
 0x424   :  { %2167 = vmatpush1.bf16.msra.mxu1 %v4319_v39 }
 0x425   :  { %2168 = vmatprep.subr.bf16.mxu1 %v4322_v40 }
 0x428   :  { %2169 = vmatpush1.bf16.msra.mxu1 %v4325_v41 }
 0x429   :  { %2170 = vmatprep.subr.bf16.mxu1 %v4328_v42 }
 0x42c   :  { %2171 = vmatpush1.bf16.msra.mxu1 %v4331_v43 }
 0x42d   :  { %2172 = vmatprep.subr.bf16.mxu1 %v4334_v44 }
 0x430   :  { %2173 = vmatpush1.bf16.msra.mxu1 %v4337_v45 }
 0x431   :  { %2174 = vmatprep.subr.bf16.mxu1 %v4340_v46 }
 0x434   :  { %2175 = vmatpush1.bf16.msra.mxu1 %v4343_v47 }
 0x435   :  { %2176 = vmatprep.subr.bf16.mxu1 %v4346_v48 }
 0x438   :  { %2177 = vmatpush1.bf16.msra.mxu1 %v6095_v24 }
 0x439   :  { %2178 = vmatprep.subr.bf16.mxu1 %v6096_v25 }
 0x43c   :  { %2179 = vmatpush1.bf16.msra.mxu1 %v6097_v26 }
 0x43d   :  { %3202 = vmatprep.subr.bf16.mxu1 %v6098_v27 }
 0x43f   :  { %3079 = vmatmul.mubr.msk.bf16.vlgmr.msra.gmra.mrb[20].mxu1 %vm3078_vm13, %v6058_v51 }
 0x440   :  { %3203 = vmatpush3.bf16.msra.mxu1 %v6100_v29 }
 0x441   :  { %3204 = vmatprep.subr.bf16.mxu1 %v6101_v30 }
 0x444   :  { %3205 = vmatpush3.bf16.msra.mxu1 %v6102_v31 }
 0x445   :  { %3206 = vmatprep.subr.bf16.mxu1 %v6103_v32 }
 0x448   :  { %3207 = vmatpush3.bf16.msra.mxu1 %v6104_v33 }
 0x449   :  { %3208 = vmatprep.subr.bf16.mxu1 %v6105_v34 }
 0x44c   :  { %3209 = vmatpush3.bf16.msra.mxu1 %v6106_v62 }
 0x44d   :  { %3210 = vmatprep.subr.bf16.mxu1 %v6107_v18 }
 0x450   :  { %3211 = vmatpush3.bf16.msra.mxu1 %v6108_v21 }
 0x451   :  { %3212 = vmatprep.subr.bf16.mxu1 %v6109_v22 }
 0x452   :  { %v1854_v23 = vpop.f32.mrb[8].mxu1 }
 0x453   :  { %v1856_v28 = vpop.f32.mrb[9].mxu1  ;;  %v1855_v15 = vadd.f32 %v1854_v23, %v6115_v11  ;;  %v4977_v23 = vld [vmem:[#allocation8 + $0x64] ss:$8 sps:$4 sm:$0xff]  }
 0x454   :  { %v1858_v14 = vpop.f32.mrb[10].mxu1  ;;  %3213 = vmatpush3.bf16.msra.mxu1 %v6110_v17  ;;  %v1857_v13 = vadd.f32 %v1856_v28, %v6116_v16  ;;  %v4980_v28 = vld [vmem:[#allocation8 + $0x60] ss:$8 sps:$4 sm:$0xff]  }
 0x455   :  { %v1859_v12 = vpop.f32.mrb[11].mxu1  ;;  %3214 = vmatprep.subr.bf16.mxu1 %v6111_v6  ;;  %v1902_v14 = vmul.f32 0.2, %v6117_v7  ;;  %v4965_v7 = vld [vmem:[#allocation8 + $0x44] ss:$8 sps:$4 sm:$0xff]  }
 0x456   :  { %v6118_v12 = vld [vmem:[#allocation101_spill] sm:$0xff] }
 0x457   :  { %v1903_v54 = vmul.f32 0.2, %v6118_v12 }
 0x458   :  { %3215 = vmatpush3.bf16.msra.mxu1 %v6112_v52 }
 0x459   :  { %3216 = vmatprep.subr.bf16.mxu1 %v6113_v9 }
 0x45c   :  { %3217 = vmatpush3.bf16.msra.mxu1 %v6114_v3 }
 0x45d   :  { %2353 = vmatprep.subr.bf16.mxu1 %v6070_v0 }
 0x492   :  { %v1895_v19 = vpop.f32.mrb[12].mxu1 }
 0x493   :  { %v1896_v63 = vadd.f32 %v1895_v19, %v1855_v15  ;;  %v1897_v53 = vpop.f32.mrb[13].mxu1  ;;  %v4971_v15 = vld [vmem:[#allocation8 + $0x54] ss:$8 sps:$4 sm:$0xff]  }
 0x494   :  { %v1898_v55 = vadd.f32 %v1897_v53, %v1857_v13  ;;  %v1899_v56 = vpop.f32.mrb[14].mxu1  ;;  %v4943_v53 = vld [vmem:[#allocation8] ss:$8 sps:$4 sm:$0xff]   ;;  %v4962_v13 = vld [vmem:[#allocation8 + $0x30] ss:$8 sps:$4 sm:$0xff]  }
 0x495   :  { %v1904_v57 = vadd.f32 %v1902_v14, %v1896_v63  ;;  %v1900_v58 = vpop.f32.mrb[15].mxu1  ;;  %v4953_v56 = vld [vmem:[#allocation8 + $0x24] ss:$8 sps:$4 sm:$0xff]   ;;  %v4974_v63 = vld [vmem:[#allocation8 + $0x50] ss:$8 sps:$4 sm:$0xff]  }
 0x496   :  { %v1905_v5 = vadd.f32 %v1903_v54, %v1898_v55  ;;  %v4947_v54 = vld [vmem:[#allocation8 + $0x14] ss:$8 sps:$4 sm:$0xff]   ;;  %v4950_v55 = vld [vmem:[#allocation8 + $0x10] ss:$8 sps:$4 sm:$0xff]  }
 0x497   :  { %vm1906_vm0 = vcmp.gt.f32.partialorder %v1904_v57, 0.5  ;;  %v4959_v58 = vld [vmem:[#allocation8 + $0x34] ss:$8 sps:$4 sm:$0xff]  }
 0x498   :  { %v4934_v1 = vsel %vm1906_vm0, 0.0, %v1904_v57  ;;  %vm1907_vm1 = vcmp.gt.f32.partialorder %v1905_v5, 0.5  ;;  %vm3062_vm6 = vmpackc.low %vm1906_vm0, %vm1906_vm0  ;;  %v4956_v57 = vld [vmem:[#allocation8 + $0x20] ss:$8 sps:$4 sm:$0xff]   ;;  %v4983_v14 = vld [vmem:[#allocation8 + $0x74] ss:$8 sps:$4 sm:$0xff]  }
 0x499   :  { %v4936_v0 = vsel %vm1907_vm1, 0.0, %v1905_v5  ;;  %vm3060_vm5 = vmpackc.low %vm1907_vm1, %vm1907_vm1  ;;  %v4968_v5 = vld [vmem:[#allocation8 + $0x40] ss:$8 sps:$4 sm:$0xff]  }
 0x49a   :  { %3061 = vmatprep.mubr.msk.bf16.mxu0 %vm3060_vm5, %v6058_v51  ;;  %v2067_v19 = vmul.f32 0.2, %v4936_v0  ;;  %v6125_v0 = vld [vmem:[#allocation57_spill] sm:$0xff] }
 0x49b   :  { %3063 = vmatmul.mubr.msk.bf16.vlgmr.msra.gmra.mrb[8].mxu0 %vm3062_vm6, %v6058_v51 }
 0x49c   :  { %1985 = vmatpush1.bf16.msra.mxu0 %v4943_v53  ;;  %3065 = vmatprep.mubr.msk.bf16.mxu0 %vm3064_vm3, %v6058_v51 }
 0x49d   :  { %1986 = vmatprep.subr.bf16.mxu0 %v4947_v54 }
 0x4a0   :  { %1987 = vmatpush1.bf16.msra.mxu0 %v4950_v55 }
 0x4a1   :  { %1988 = vmatprep.subr.bf16.mxu0 %v4953_v56 }
 0x4a4   :  { %1989 = vmatpush1.bf16.msra.mxu0 %v4956_v57 }
 0x4a5   :  { %1990 = vmatprep.subr.bf16.mxu0 %v4959_v58 }
 0x4a8   :  { %1991 = vmatpush1.bf16.msra.mxu0 %v4962_v13 }
 0x4a9   :  { %1992 = vmatprep.subr.bf16.mxu0 %v4965_v7 }
 0x4ac   :  { %1993 = vmatpush1.bf16.msra.mxu0 %v4968_v5 }
 0x4ad   :  { %1994 = vmatprep.subr.bf16.mxu0 %v4971_v15 }
 0x4b0   :  { %1995 = vmatpush1.bf16.msra.mxu0 %v4974_v63 }
 0x4b1   :  { %1996 = vmatprep.subr.bf16.mxu0 %v4977_v23 }
 0x4b4   :  { %1997 = vmatpush1.bf16.msra.mxu0 %v4980_v28 }
 0x4b5   :  { %1998 = vmatprep.subr.bf16.mxu0 %v4983_v14 }
 0x4b8   :  { %1999 = vmatpush1.bf16.msra.mxu0 %v4307_v35 }
 0x4b9   :  { %2000 = vmatprep.subr.bf16.mxu0 %v4310_v36 }
 0x4bc   :  { %2001 = vmatpush1.bf16.msra.mxu0 %v4313_v37 }
 0x4bd   :  { %2002 = vmatprep.subr.bf16.mxu0 %v4316_v38 }
 0x4c0   :  { %2003 = vmatpush1.bf16.msra.mxu0 %v4319_v39 }
 0x4c1   :  { %2004 = vmatprep.subr.bf16.mxu0 %v4322_v40  ;;  %v5023_v40 = vld [vmem:[#allocation8 + $0x104] ss:$8 sps:$4 sm:$0xff]  }
 0x4c2   :  { %6121 = vst [vmem:[#allocation23_spill] sm:$0xff] %v5023_v40 }
 0x4c4   :  { %2005 = vmatpush1.bf16.msra.mxu0 %v4325_v41 }
 0x4c5   :  { %2006 = vmatprep.subr.bf16.mxu0 %v4328_v42 }
 0x4c8   :  { %2007 = vmatpush1.bf16.msra.mxu0 %v4331_v43 }
 0x4c9   :  { %2008 = vmatprep.subr.bf16.mxu0 %v4334_v44 }
 0x4cc   :  { %2009 = vmatpush1.bf16.msra.mxu0 %v4337_v45  ;;  %v5030_v45 = vld [vmem:[#allocation13] ss:$0 sm:$0xff] }
 0x4cd   :  { %2010 = vmatprep.subr.bf16.mxu0 %v4340_v46  ;;  %6122 = vst [vmem:[#allocation40_spill] sm:$0xff] %v5030_v45  ;;  %v1786_v46 = vadd.f32 %v4886_v61, %v5030_v45 }
 0x4cf   :  { %vm1792_vm12 = vcmp.gt.f32.partialorder %v1786_v46, 0.5 }
 0x4d0   :  { %2011 = vmatpush1.bf16.msra.mxu0 %v4343_v47 }
 0x4d1   :  { %2012 = vmatprep.subr.bf16.mxu0 %v4346_v48  ;;  %v1794_v48 = vsel %vm1792_vm12, 0.0, %v1786_v46  ;;  %v6137_v46 = vld [vmem:[#allocation85_spill] sm:$0xff] }
 0x4d2   :  { %v2059_v35 = vpop.f32.mrb[16].mxu1 }
 0x4d3   :  { %v2061_v36 = vpop.f32.mrb[17].mxu1 }
 0x4d4   :  { %2013 = vmatpush1.bf16.msra.mxu0 %v6095_v24  ;;  %v2063_v37 = vpop.f32.mrb[18].mxu1 }
 0x4d5   :  { %v2064_v38 = vpop.f32.mrb[19].mxu1  ;;  %2014 = vmatprep.subr.bf16.mxu0 %v6096_v25  ;;  %v1954_v25 = vmul.f32 0.2, %v1794_v48  ;;  %v6139_v48 = vld [vmem:[#allocation88_spill] sm:$0xff] }
 0x4d8   :  { %2015 = vmatpush1.bf16.msra.mxu0 %v6097_v26 }
 0x4d9   :  { %3180 = vmatprep.subr.bf16.mxu0 %v6098_v27 }
 0x4db   :  { %3067 = vmatmul.mubr.msk.bf16.vlgmr.msra.gmra.mrb[12].mxu0 %vm3066_vm14, %v6058_v51 }
 0x4dc   :  { %3181 = vmatpush3.bf16.msra.mxu0 %v6100_v29  ;;  %v6123_v29 = vmov 0.0  }
 0x4dd   :  { %3182 = vmatprep.subr.bf16.mxu0 %v6101_v30  ;;  %v1793_v30 = vsel %vm1792_vm12, 1.0, %v6123_v29 }
 0x4e0   :  { %3183 = vmatpush3.bf16.msra.mxu0 %v6102_v31 }
 0x4e1   :  { %3184 = vmatprep.subr.bf16.mxu0 %v6103_v32 }
 0x4e4   :  { %3185 = vmatpush3.bf16.msra.mxu0 %v6104_v33 }
 0x4e5   :  { %3186 = vmatprep.subr.bf16.mxu0 %v6105_v34 }
 0x4e8   :  { %3187 = vmatpush3.bf16.msra.mxu0 %v6106_v62 }
 0x4e9   :  { %3188 = vmatprep.subr.bf16.mxu0 %v6107_v18 }
 0x4ec   :  { %3189 = vmatpush3.bf16.msra.mxu0 %v6108_v21  ;;  %v2066_v21 = vmul.f32 0.2, %v4934_v1  ;;  %v5144_v1 = vld [vmem:[#allocation8 + $0xc0] ss:$8 sps:$4 sm:$0xff]  }
 0x4ed   :  { %3190 = vmatprep.subr.bf16.mxu0 %v6109_v22  ;;  %6160 = vst [vmem:[#allocation54_spill] sm:$0xff] %v5144_v1 }
 0x4f0   :  { %3191 = vmatpush3.bf16.msra.mxu0 %v6110_v17 }
 0x4f1   :  { %3192 = vmatprep.subr.bf16.mxu0 %v6111_v6 }
 0x4f4   :  { %3193 = vmatpush3.bf16.msra.mxu0 %v6112_v52 }
 0x4f5   :  { %3194 = vmatprep.subr.bf16.mxu0 %v6113_v9 }
 0x4f8   :  { %3195 = vmatpush3.bf16.msra.mxu0 %v6114_v3 }
 0x4f9   :  { %2189 = vmatprep.subr.bf16.mxu0 %v5023_v40 }
 0x512   :  { %v5026_v41 = vpop.f32.mrb[20].mxu1 }
 0x513   :  { %v5028_v42 = vpop.f32.mrb[21].mxu1 }
 0x514   :  { %v2186_v43 = vpop.f32.mrb[22].mxu1 }
 0x515   :  { %v2187_v44 = vpop.f32.mrb[23].mxu1 }
 0x56e   :  { %v3174_v47 = vpop.f32.mrb[8].mxu0 }
 0x56f   :  { %v3175_v52 = vpop.f32.mrb[9].mxu0 }
 0x570   :  { %v3176_v6 = vadd.f32 %v3175_v52, %v3174_v47  ;;  %v3177_v17 = vpop.f32.mrb[10].mxu0  ;;  %v6138_v47 = vld [vmem:[#allocation87_spill] sm:$0xff]  ;;  %v6140_v52 = vld [vmem:[#allocation89_spill] sm:$0xff] }
 0x571   :  { %v3178_v24 = vpop.f32.mrb[11].mxu0  ;;  %v6142_v17 = vld [vmem:[#allocation91_spill] sm:$0xff] }
 0x572   :  { %v1949_v26 = vadd.f32 %v3176_v6, %v5030_v45  ;;  %v6141_v6 = vld [vmem:[#allocation90_spill] sm:$0xff]  ;;  %v6143_v24 = vld [vmem:[#allocation92_spill] sm:$0xff] }
 0x574   :  { %v5035_v27 = vadd.f32 %v1954_v25, %v1949_v26  ;;  %v6144_v25 = vld [vmem:[#allocation93_spill] sm:$0xff]  ;;  %v6145_v26 = vld [vmem:[#allocation94_spill] sm:$0xff] }
 0x576   :  { %vm1956_vm7 = vcmp.gt.f32.partialorder %v5035_v27, 0.5 }
 0x577   :  { %v1957_v61 = vsel %vm1956_vm7, 1.0, %v6123_v29 }
 0x578   :  { %v5042_v31 = vadd.f32 %v1957_v61, %v1793_v30  ;;  %v6146_v30 = vld [vmem:[#allocation95_spill] sm:$0xff] }
 0x579   :  { %v5089_v61 = vld [vmem:[#allocation8 + $0x4] ss:$8 sps:$4 sm:$0xff]  }
 0x5ae   :  { %v2018_v32 = vpop.f32.mrb[12].mxu0 }
 0x5af   :  { %v2019_v33 = vadd.f32 %v2018_v32, %v6115_v11  ;;  %v2020_v34 = vpop.f32.mrb[13].mxu0  ;;  %v6147_v32 = vld [vmem:[#allocation56_spill] sm:$0xff] }
 0x5b0   :  { %v2021_v62 = vadd.f32 %v2020_v34, %v6116_v16  ;;  %v2022_v18 = vpop.f32.mrb[14].mxu0  ;;  %vm6148_vm4 = vcmp.gt.f32.partialorder %v6147_v32, 0.5  ;;  %v5114_v34 = vld [vmem:[#allocation8 + $0x70] ss:$8 sps:$4 sm:$0xff]  }
 0x5b1   :  { %v2060_v22 = vadd.f32 %v2059_v35, %v2019_v33  ;;  %v2023_v12 = vpop.f32.mrb[15].mxu0  ;;  %v6127_v35 = vld [vmem:[#allocation60_spill] sm:$0xff]  ;;  %vm3082_vm15 = vmpackc.low %vm6148_vm4, %vm6148_vm4  ;;  %v6149_v33 = vld [vmem:[#allocation62_spill] sm:$0xff] }
 0x5b2   :  { %v2062_v37 = vadd.f32 %v2061_v36, %v2021_v62  ;;  %v6136_v36 = vld [vmem:[#allocation82_spill] sm:$0xff]  ;;  %vm6150_vm13 = vcmp.gt.f32.partialorder %v6149_v33, 0.5  ;;  %v5117_v62 = vld [vmem:[#allocation8 + $0x84] ss:$8 sps:$4 sm:$0xff]  }
 0x5b3   :  { %v2068_v38 = vadd.f32 %v2066_v21, %v2060_v22  ;;  %vm3088_vm0 = vmpackc.low %vm6150_vm13, %vm6150_vm13  ;;  %6151 = vst [vmem:[#allocation44_spill] sm:$0xff] %v5117_v62  ;;  %v5120_v18 = vld [vmem:[#allocation8 + $0x80] ss:$8 sps:$4 sm:$0xff]   ;;  %v5123_v21 = vld [vmem:[#allocation8 + $0x94] ss:$8 sps:$4 sm:$0xff]  }
 0x5b4   :  { %v2069_v39 = vadd.f32 %v2067_v19, %v2062_v37  ;;  %6152 = vst [vmem:[#allocation38_spill] sm:$0xff] %v5120_v18  ;;  %6153 = vst [vmem:[#allocation39_spill] sm:$0xff] %v5123_v21  ;;  %v5126_v22 = vld [vmem:[#allocation8 + $0x90] ss:$8 sps:$4 sm:$0xff]   ;;  %v5129_v12 = vld [vmem:[#allocation8 + $0xa4] ss:$8 sps:$4 sm:$0xff]  }
 0x5b5   :  { %vm2070_vm9 = vcmp.gt.f32.partialorder %v2068_v38, 0.5  ;;  %6154 = vst [vmem:[#allocation41_spill] sm:$0xff] %v5126_v22  ;;  %6155 = vst [vmem:[#allocation43_spill] sm:$0xff] %v5129_v12  ;;  %v5132_v19 = vld [vmem:[#allocation8 + $0xa0] ss:$8 sps:$4 sm:$0xff]  }
 0x5b6   :  { %vm2071_vm2 = vcmp.gt.f32.partialorder %v2069_v39, 0.5  ;;  %v5048_v43 = vsel %vm2070_vm9, 0.0, %v2068_v38  ;;  %vm3074_vm11 = vmpackc.low %vm2070_vm9, %vm2070_vm9  ;;  %6156 = vst [vmem:[#allocation45_spill] sm:$0xff] %v5132_v19  ;;  %v5135_v37 = vld [vmem:[#allocation8 + $0xb4] ss:$8 sps:$4 sm:$0xff]   ;;  %v5175_v32 = vld [vmem:[#allocation11 + $0x48] sm:$0xff]  }
 0x5b7   :  { %vm3072_vm8 = vmpackc.low %vm2071_vm2, %vm2071_vm2  ;;  %v5050_v44 = vsel %vm2071_vm2, 0.0, %v2069_v39  ;;  %6157 = vst [vmem:[#allocation46_spill] sm:$0xff] %v5135_v37  ;;  %v5138_v38 = vld [vmem:[#allocation8 + $0xb0] ss:$8 sps:$4 sm:$0xff]   ;;  %v5141_v39 = vld [vmem:[#allocation8 + $0xc4] ss:$8 sps:$4 sm:$0xff]  }
 0x5b8   :  { %3073 = vmatprep.mubr.msk.bf16.mxu0 %vm3072_vm8, %v6058_v51  ;;  %6158 = vst [vmem:[#allocation50_spill] sm:$0xff] %v5138_v38  ;;  %6159 = vst [vmem:[#allocation52_spill] sm:$0xff] %v5141_v39  ;;  %v5178_v33 = vld [vmem:[#allocation11 + $0x8] sm:$0xff]  }
 0x5b9   :  { %3075 = vmatmul.mubr.msk.bf16.vlgmr.msra.gmra.mrb[16].mxu0 %vm3074_vm11, %v6058_v51  ;;  %6171 = vst [vmem:[#allocation53_spill] sm:$0xff] %v5175_v32  ;;  %6172 = vst [vmem:[#allocation25_spill] sm:$0xff] %v5178_v33 }
 0x5ba   :  { %2190 = vmatpush1.bf16.msra.mxu0 %v6073_v8  ;;  %3081 = vmatprep.mubr.msk.bf16.mxu0 %vm3080_vm10, %v6058_v51  ;;  %v6126_v8 = vld [vmem:[#allocation59_spill] sm:$0xff] }
 0x5bb   :  { %2191 = vmatprep.subr.bf16.mxu0 %v6074_v10  ;;  %v6128_v10 = vld [vmem:[#allocation64_spill] sm:$0xff] }
 0x5be   :  { %2192 = vmatpush1.bf16.msra.mxu0 %v6075_v50  ;;  %v6129_v50 = vld [vmem:[#allocation66_spill] sm:$0xff] }
 0x5bf   :  { %2193 = vmatprep.subr.bf16.mxu0 %v6076_v49  ;;  %v6130_v49 = vld [vmem:[#allocation68_spill] sm:$0xff] }
 0x5c2   :  { %2194 = vmatpush1.bf16.msra.mxu0 %v6077_v20  ;;  %v6131_v20 = vld [vmem:[#allocation71_spill] sm:$0xff] }
 0x5c3   :  { %2195 = vmatprep.subr.bf16.mxu0 %v6078_v2  ;;  %v6132_v2 = vld [vmem:[#allocation73_spill] sm:$0xff] }
 0x5c6   :  { %2196 = vmatpush1.bf16.msra.mxu0 %v6079_v59  ;;  %v6133_v59 = vld [vmem:[#allocation74_spill] sm:$0xff] }
 0x5c7   :  { %2197 = vmatprep.subr.bf16.mxu0 %v6080_v60  ;;  %v6134_v60 = vld [vmem:[#allocation78_spill] sm:$0xff] }
 0x5ca   :  { %2198 = vmatpush1.bf16.msra.mxu0 %v6081_v4  ;;  %v6135_v4 = vld [vmem:[#allocation80_spill] sm:$0xff] }
 0x5cb   :  { %2199 = vmatprep.subr.bf16.mxu0 %v6125_v0  ;;  %v5147_v0 = vld [vmem:[#allocation8 + $0xd4] ss:$8 sps:$4 sm:$0xff]  }
 0x5cc   :  { %6161 = vst [vmem:[#allocation42_spill] sm:$0xff] %v5147_v0 }
 0x5ce   :  { %2200 = vmatpush1.bf16.msra.mxu0 %v6126_v8  ;;  %v5150_v8 = vld [vmem:[#allocation8 + $0xd0] ss:$8 sps:$4 sm:$0xff]  }
 0x5cf   :  { %2201 = vmatprep.subr.bf16.mxu0 %v6127_v35  ;;  %6162 = vst [vmem:[#allocation51_spill] sm:$0xff] %v5150_v8  ;;  %v5153_v35 = vld [vmem:[#allocation8 + $0xe4] ss:$8 sps:$4 sm:$0xff]  }
 0x5d0   :  { %6163 = vst [vmem:[#allocation49_spill] sm:$0xff] %v5153_v35 }
 0x5d2   :  { %2202 = vmatpush1.bf16.msra.mxu0 %v6128_v10  ;;  %v5156_v10 = vld [vmem:[#allocation8 + $0xe0] ss:$8 sps:$4 sm:$0xff]  }
 0x5d3   :  { %2203 = vmatprep.subr.bf16.mxu0 %v6129_v50  ;;  %6164 = vst [vmem:[#allocation55_spill] sm:$0xff] %v5156_v10  ;;  %v5159_v50 = vld [vmem:[#allocation8 + $0xf4] ss:$8 sps:$4 sm:$0xff]  }
 0x5d4   :  { %6165 = vst [vmem:[#allocation20_spill] sm:$0xff] %v5159_v50 }
 0x5d6   :  { %2204 = vmatpush1.bf16.msra.mxu0 %v6130_v49  ;;  %v5162_v49 = vld [vmem:[#allocation8 + $0xf0] ss:$8 sps:$4 sm:$0xff]  }
 0x5d7   :  { %2205 = vmatprep.subr.bf16.mxu0 %v6131_v20  ;;  %6166 = vst [vmem:[#allocation21_spill] sm:$0xff] %v5162_v49  ;;  %v5165_v20 = vld [vmem:[#allocation11 + $0x40] sm:$0xff]  }
 0x5d8   :  { %6167 = vst [vmem:[#allocation22_spill] sm:$0xff] %v5165_v20 }
 0x5da   :  { %2206 = vmatpush1.bf16.msra.mxu0 %v6132_v2  ;;  %v6168_v2 = vld [vmem:[#allocation61_spill] sm:$0xff] }
 0x5db   :  { %2207 = vmatprep.subr.bf16.mxu0 %v6133_v59  ;;  %vm6169_vm1 = vcmp.gt.f32.partialorder %v6168_v2, 0.5  ;;  %v5172_v59 = vld [vmem:[#allocation11] sm:$0xff]   ;;  %v5184_v2 = vld [vmem:[#allocation11 + $0x10] sm:$0xff]  }
 0x5dc   :  { %vm3090_vm5 = vmpackc.low %vm6169_vm1, %vm6169_vm1  ;;  %6170 = vst [vmem:[#allocation24_spill] sm:$0xff] %v5172_v59 }
 0x5dd   :  { %6174 = vst [vmem:[#allocation27_spill] sm:$0xff] %v5184_v2 }
 0x5de   :  { %2208 = vmatpush1.bf16.msra.mxu0 %v6134_v60 }
 0x5df   :  { %2209 = vmatprep.subr.bf16.mxu0 %v6135_v4 }
 0x5e2   :  { %2210 = vmatpush1.bf16.msra.mxu0 %v6136_v36 }
 0x5e3   :  { %2211 = vmatprep.subr.bf16.mxu0 %v6137_v46 }
 0x5e6   :  { %2212 = vmatpush1.bf16.msra.mxu0 %v6138_v47 }
 0x5e7   :  { %2213 = vmatprep.subr.bf16.mxu0 %v6139_v48 }
 0x5ea   :  { %2214 = vmatpush1.bf16.msra.mxu0 %v6140_v52 }
 0x5eb   :  { %2215 = vmatprep.subr.bf16.mxu0 %v6141_v6 }
 0x5ee   :  { %2216 = vmatpush1.bf16.msra.mxu0 %v6142_v17 }
 0x5ef   :  { %2217 = vmatprep.subr.bf16.mxu0 %v6143_v24 }
 0x5f2   :  { %2218 = vmatpush1.bf16.msra.mxu0 %v6144_v25 }
 0x5f3   :  { %2219 = vmatprep.subr.bf16.mxu0 %v6145_v26 }
 0x5f6   :  { %2220 = vmatpush1.bf16.msra.mxu0 %v6146_v30 }
 0x5f7   :  { %2312 = vmatprep.subr.bf16.mxu0 %v5089_v61 }
 0x5f9   :  { %3083 = vmatmul.mubr.msk.bf16.vlgmr.msra.gmra.mrb[20].mxu0 %vm3082_vm15, %v6058_v51 }
 0x5fa   :  { %2313 = vmatpush1.bf16.msra.mxu0 %v4943_v53  ;;  %3089 = vmatprep.mubr.msk.bf16.mxu0 %vm3088_vm0, %v6058_v51 }
 0x5fb   :  { %2314 = vmatprep.subr.bf16.mxu0 %v4947_v54 }
 0x5fe   :  { %2315 = vmatpush1.bf16.msra.mxu0 %v4950_v55 }
 0x5ff   :  { %2316 = vmatprep.subr.bf16.mxu0 %v4953_v56 }
 0x602   :  { %2317 = vmatpush1.bf16.msra.mxu0 %v4956_v57 }
 0x603   :  { %2318 = vmatprep.subr.bf16.mxu0 %v4959_v58 }
 0x606   :  { %2319 = vmatpush1.bf16.msra.mxu0 %v4962_v13 }
 0x607   :  { %2320 = vmatprep.subr.bf16.mxu0 %v4965_v7 }
 0x60a   :  { %2321 = vmatpush1.bf16.msra.mxu0 %v4968_v5 }
 0x60b   :  { %2322 = vmatprep.subr.bf16.mxu0 %v4971_v15 }
 0x60e   :  { %2323 = vmatpush1.bf16.msra.mxu0 %v4974_v63 }
 0x60f   :  { %2324 = vmatprep.subr.bf16.mxu0 %v4977_v23 }
 0x612   :  { %2325 = vmatpush1.bf16.msra.mxu0 %v4980_v28 }
 0x613   :  { %2326 = vmatprep.subr.bf16.mxu0 %v4983_v14 }
 0x616   :  { %2327 = vmatpush1.bf16.msra.mxu0 %v5114_v34 }
 0x617   :  { %2328 = vmatprep.subr.bf16.mxu0 %v5117_v62 }
 0x61a   :  { %2329 = vmatpush1.bf16.msra.mxu0 %v5120_v18 }
 0x61b   :  { %2330 = vmatprep.subr.bf16.mxu0 %v5123_v21 }
 0x61e   :  { %2331 = vmatpush1.bf16.msra.mxu0 %v5126_v22 }
 0x61f   :  { %2332 = vmatprep.subr.bf16.mxu0 %v5129_v12 }
 0x622   :  { %2333 = vmatpush1.bf16.msra.mxu0 %v5132_v19 }
 0x623   :  { %2334 = vmatprep.subr.bf16.mxu0 %v5135_v37 }
 0x626   :  { %2335 = vmatpush1.bf16.msra.mxu0 %v5138_v38 }
 0x627   :  { %2336 = vmatprep.subr.bf16.mxu0 %v5141_v39 }
 0x62a   :  { %2337 = vmatpush1.bf16.msra.mxu0 %v5144_v1 }
 0x62b   :  { %2338 = vmatprep.subr.bf16.mxu0 %v5147_v0 }
 0x62e   :  { %2339 = vmatpush1.bf16.msra.mxu0 %v5150_v8 }
 0x62f   :  { %2340 = vmatprep.subr.bf16.mxu0 %v5153_v35 }
 0x632   :  { %2341 = vmatpush1.bf16.msra.mxu0 %v5156_v10 }
 0x633   :  { %2342 = vmatprep.subr.bf16.mxu0 %v5159_v50 }
 0x636   :  { %2343 = vmatpush1.bf16.msra.mxu0 %v5162_v49  ;;  %v5181_v49 = vld [vmem:[#allocation11 + $0x50] sm:$0xff]  }
 0x637   :  { %3224 = vmatprep.subr.bf16.mxu0 %v5165_v20  ;;  %6173 = vst [vmem:[#allocation26_spill] sm:$0xff] %v5181_v49  ;;  %v5187_v20 = vld [vmem:[#allocation11 + $0x58] sm:$0xff]  }
 0x638   :  { %6175 = vst [vmem:[#allocation28_spill] sm:$0xff] %v5187_v20 }
 0x639   :  { %3091 = vmatmul.mubr.msk.bf16.vlgmr.msra.gmra.mrb[24].mxu0 %vm3090_vm5, %v6058_v51 }
 0x63a   :  { %3225 = vmatpush3.bf16.msra.mxu0 %v5172_v59  ;;  %v5190_v59 = vld [vmem:[#allocation11 + $0x18] sm:$0xff]  }
 0x63b   :  { %3226 = vmatprep.subr.bf16.mxu0 %v5175_v32  ;;  %6176 = vst [vmem:[#allocation29_spill] sm:$0xff] %v5190_v59  ;;  %v5193_v32 = vld [vmem:[#allocation11 + $0x60] sm:$0xff]  }
 0x63c   :  { %6177 = vst [vmem:[#allocation30_spill] sm:$0xff] %v5193_v32 }
 0x63e   :  { %3227 = vmatpush3.bf16.msra.mxu0 %v5178_v33  ;;  %v5196_v33 = vld [vmem:[#allocation11 + $0x20] sm:$0xff]  }
 0x63f   :  { %3228 = vmatprep.subr.bf16.mxu0 %v5181_v49  ;;  %6178 = vst [vmem:[#allocation31_spill] sm:$0xff] %v5196_v33  ;;  %v5199_v49 = vld [vmem:[#allocation11 + $0x68] sm:$0xff]  }
 0x640   :  { %6179 = vst [vmem:[#allocation32_spill] sm:$0xff] %v5199_v49 }
 0x642   :  { %3229 = vmatpush3.bf16.msra.mxu0 %v5184_v2  ;;  %v5202_v2 = vld [vmem:[#allocation11 + $0x28] sm:$0xff]  }
 0x643   :  { %3230 = vmatprep.subr.bf16.mxu0 %v5187_v20  ;;  %6180 = vst [vmem:[#allocation33_spill] sm:$0xff] %v5202_v2  ;;  %v5205_v20 = vld [vmem:[#allocation11 + $0x70] sm:$0xff]  }
 0x644   :  { %6181 = vst [vmem:[#allocation34_spill] sm:$0xff] %v5205_v20 }
 0x646   :  { %3231 = vmatpush3.bf16.msra.mxu0 %v5190_v59  ;;  %v5208_v59 = vld [vmem:[#allocation11 + $0x30] sm:$0xff]  }
 0x647   :  { %3232 = vmatprep.subr.bf16.mxu0 %v5193_v32  ;;  %6182 = vst [vmem:[#allocation35_spill] sm:$0xff] %v5208_v59 }
 0x64a   :  { %3233 = vmatpush3.bf16.msra.mxu0 %v5196_v33 }
 0x64b   :  { %3234 = vmatprep.subr.bf16.mxu0 %v5199_v49  ;;  %v1958_v49 = vsel %vm1956_vm7, 0.0, %v5035_v27  ;;  %v2183_v27 = vadd.f32 %v5026_v41, %v6115_v11 }
 0x64c   :  { %v2118_v35 = vmul.f32 0.2, %v1958_v49 }
 0x64e   :  { %3235 = vmatpush3.bf16.msra.mxu0 %v5202_v2 }
 0x64f   :  { %3236 = vmatprep.subr.bf16.mxu0 %v5205_v20 }
 0x652   :  { %3237 = vmatpush3.bf16.msra.mxu0 %v5208_v59 }
 0x653   :  { %3238 = vmatprep.subr.bf16.mxu0 %v6113_v9 }
 0x656   :  { %3239 = vmatpush3.bf16.msra.mxu0 %v6114_v3 }
 0x657   :  { %2517 = vmatprep.subr.bf16.mxu0 %v5023_v40 }
 0x68c   :  { %v3196_v33 = vpop.f32.mrb[16].mxu0 }
 0x68d   :  { %v3197_v2 = vpop.f32.mrb[17].mxu0 }
 0x68e   :  { %v3198_v32 = vadd.f32 %v3197_v2, %v3196_v33  ;;  %v3199_v50 = vpop.f32.mrb[18].mxu0  ;;  %v2231_v33 = vmul.f32 0.2, %v5050_v44  ;;  %v5252_v44 = vld [vmem:[#allocation8 + $0x124] ss:$8 sps:$4 sm:$0xff]  }
 0x68f   :  { %v3200_v10 = vpop.f32.mrb[19].mxu0 }
 0x690   :  { %v2113_v20 = vadd.f32 %v3198_v32, %v5030_v45  ;;  %v2185_v10 = vadd.f32 %v5028_v42, %v6116_v16  ;;  %v6184_v42 = vld [vmem:[#allocation65_spill] sm:$0xff] }
 0x691   :  { %vm6185_vm9 = vcmp.gt.f32.partialorder %v6184_v42, 0.5  ;;  %v5288_v42 = vld [vmem:[#allocation8 + $0x184] ss:$8 sps:$4 sm:$0xff]  }
 0x692   :  { %v5218_v8 = vadd.f32 %v2118_v35, %v2113_v20  ;;  %v2230_v35 = vmul.f32 0.2, %v5048_v43  ;;  %vm3092_vm2 = vmpackc.low %vm6185_vm9, %vm6185_vm9  ;;  %v5242_v43 = vld [vmem:[#allocation8 + $0x100] ss:$8 sps:$4 sm:$0xff]  }
 0x694   :  { %6183 = vst [vmem:[#allocation36_spill] sm:$0xff] %v5218_v8  ;;  %vm2120_vm6 = vcmp.gt.f32.partialorder %v5218_v8, 0.5 }
 0x695   :  { %v2121_v3 = vsel %vm2120_vm6, 1.0, %v6123_v29 }
 0x696   :  { %v5225_v9 = vadd.f32 %v2121_v3, %v5042_v31  ;;  %v5258_v3 = vld [vmem:[#allocation8 + $0x134] ss:$8 sps:$4 sm:$0xff]  }
 0x6cc   :  { %v2223_v50 = vpop.f32.mrb[20].mxu0 }
 0x6cd   :  { %v2224_v32 = vadd.f32 %v2223_v50, %v2183_v27  ;;  %v2225_v49 = vpop.f32.mrb[21].mxu0  ;;  %v5261_v27 = vld [vmem:[#allocation8 + $0x130] ss:$8 sps:$4 sm:$0xff]   ;;  %v5267_v50 = vld [vmem:[#allocation8 + $0x140] ss:$8 sps:$4 sm:$0xff]  }
 0x6ce   :  { %v2226_v20 = vadd.f32 %v2225_v49, %v2185_v10  ;;  %v2227_v2 = vpop.f32.mrb[22].mxu0  ;;  %v5264_v10 = vld [vmem:[#allocation8 + $0x144] ss:$8 sps:$4 sm:$0xff]  }
 0x6cf   :  { %v2232_v45 = vadd.f32 %v2230_v35, %v2224_v32  ;;  %v2228_v29 = vpop.f32.mrb[23].mxu0  ;;  %v5270_v32 = vld [vmem:[#allocation8 + $0x154] ss:$8 sps:$4 sm:$0xff]   ;;  %v5273_v35 = vld [vmem:[#allocation8 + $0x150] ss:$8 sps:$4 sm:$0xff]  }
 0x6d0   :  { %v2233_v8 = vadd.f32 %v2231_v33, %v2226_v20  ;;  %v5249_v29 = vld [vmem:[#allocation8 + $0x110] ss:$8 sps:$4 sm:$0xff]   ;;  %6186 = vst [vmem:[#allocation37_spill] sm:$0xff] %v5273_v35  ;;  %v5276_v49 = vld [vmem:[#allocation8 + $0x164] ss:$8 sps:$4 sm:$0xff]  }
 0x6d1   :  { %vm2234_vm3 = vcmp.gt.f32.partialorder %v2232_v45, 0.5  ;;  %6187 = vst [vmem:[#allocation96_spill] sm:$0xff] %v5276_v49  ;;  %v5279_v20 = vld [vmem:[#allocation8 + $0x160] ss:$8 sps:$4 sm:$0xff]   ;;  %v5282_v33 = vld [vmem:[#allocation8 + $0x174] ss:$8 sps:$4 sm:$0xff]  }
 0x6d2   :  { %v5233_v31 = vsel %vm2234_vm3, 0.0, %v2232_v45  ;;  %vm2235_vm14 = vcmp.gt.f32.partialorder %v2233_v8, 0.5  ;;  %vm3086_vm7 = vmpackc.low %vm2234_vm3, %vm2234_vm3  ;;  %v5246_v45 = vld [vmem:[#allocation8 + $0x114] ss:$8 sps:$4 sm:$0xff]   ;;  %v5285_v2 = vld [vmem:[#allocation8 + $0x170] ss:$8 sps:$4 sm:$0xff]  }
 0x6d3   :  { %v5235_v41 = vsel %vm2235_vm14, 0.0, %v2233_v8  ;;  %vm3084_vm12 = vmpackc.low %vm2235_vm14, %vm2235_vm14  ;;  %v5255_v8 = vld [vmem:[#allocation8 + $0x120] ss:$8 sps:$4 sm:$0xff]  }
 0x6d4   :  { %3085 = vmatprep.mubr.msk.bf16.mxu1 %vm3084_vm12, %v6058_v51 }
 0x6d5   :  { %3087 = vmatmul.mubr.msk.bf16.vlgmr.msra.gmra.mrb[24].mxu1 %vm3086_vm7, %v6058_v51 }
 0x6d6   :  { %2354 = vmatpush1.bf16.msra.mxu1 %v5242_v43  ;;  %3093 = vmatprep.mubr.msk.bf16.mxu1 %vm3092_vm2, %v6058_v51 }
 0x6d7   :  { %2355 = vmatprep.subr.bf16.mxu1 %v5246_v45 }
 0x6da   :  { %2356 = vmatpush1.bf16.msra.mxu1 %v5249_v29 }
 0x6db   :  { %2357 = vmatprep.subr.bf16.mxu1 %v5252_v44 }
 0x6de   :  { %2358 = vmatpush1.bf16.msra.mxu1 %v5255_v8 }
 0x6df   :  { %2359 = vmatprep.subr.bf16.mxu1 %v5258_v3 }
 0x6e2   :  { %2360 = vmatpush1.bf16.msra.mxu1 %v5261_v27 }
 0x6e3   :  { %2361 = vmatprep.subr.bf16.mxu1 %v5264_v10 }
 0x6e6   :  { %2362 = vmatpush1.bf16.msra.mxu1 %v5267_v50 }
 0x6e7   :  { %2363 = vmatprep.subr.bf16.mxu1 %v5270_v32 }
 0x6ea   :  { %2364 = vmatpush1.bf16.msra.mxu1 %v5273_v35  ;;  %v5291_v35 = vld [vmem:[#allocation8 + $0x180] ss:$8 sps:$4 sm:$0xff]  }
 0x6eb   :  { %2365 = vmatprep.subr.bf16.mxu1 %v5276_v49  ;;  %v5294_v49 = vld [vmem:[#allocation8 + $0x194] ss:$8 sps:$4 sm:$0xff]  }
 0x6ec   :  { %6188 = vst [vmem:[#allocation97_spill] sm:$0xff] %v5294_v49 }
 0x6ee   :  { %2366 = vmatpush1.bf16.msra.mxu1 %v5279_v20 }
 0x6ef   :  { %2367 = vmatprep.subr.bf16.mxu1 %v5282_v33 }
 0x6f2   :  { %2368 = vmatpush1.bf16.msra.mxu1 %v5285_v2 }
 0x6f3   :  { %2369 = vmatprep.subr.bf16.mxu1 %v5288_v42 }
 0x6f6   :  { %2370 = vmatpush1.bf16.msra.mxu1 %v5291_v35 }
 0x6f7   :  { %2371 = vmatprep.subr.bf16.mxu1 %v5294_v49 }
 0x6fa   :  { %2372 = vmatpush1.bf16.msra.mxu1 %v6134_v60 }
 0x6fb   :  { %2373 = vmatprep.subr.bf16.mxu1 %v6135_v4 }
 0x6fe   :  { %2374 = vmatpush1.bf16.msra.mxu1 %v6136_v36 }
 0x6ff   :  { %2375 = vmatprep.subr.bf16.mxu1 %v6137_v46  ;;  %v6189_v46 = vld [vmem:[#allocation63_spill] sm:$0xff] }
 0x700   :  { %vm6190_vm8 = vcmp.gt.f32.partialorder %v6189_v46, 0.5  ;;  %v6204_v46 = vld [vmem:[#allocation26_spill] sm:$0xff] }
 0x701   :  { %vm3094_vm11 = vmpackc.low %vm6190_vm8, %vm6190_vm8 }
 0x702   :  { %2376 = vmatpush1.bf16.msra.mxu1 %v6138_v47  ;;  %v6191_v47 = vld [vmem:[#allocation69_spill] sm:$0xff] }
 0x703   :  { %2377 = vmatprep.subr.bf16.mxu1 %v6139_v48  ;;  %vm6192_vm10 = vcmp.gt.f32.partialorder %v6191_v47, 0.5  ;;  %v6193_v48 = vld [vmem:[#allocation51_spill] sm:$0xff] }
 0x704   :  { %vm3100_vm4 = vmpackc.low %vm6192_vm10, %vm6192_vm10  ;;  %v6205_v47 = vld [vmem:[#allocation27_spill] sm:$0xff] }
 0x706   :  { %2378 = vmatpush1.bf16.msra.mxu1 %v6140_v52  ;;  %v6194_v52 = vld [vmem:[#allocation49_spill] sm:$0xff] }
 0x707   :  { %2379 = vmatprep.subr.bf16.mxu1 %v6141_v6  ;;  %v6195_v6 = vld [vmem:[#allocation55_spill] sm:$0xff] }
 0x70a   :  { %2380 = vmatpush1.bf16.msra.mxu1 %v6142_v17  ;;  %v6196_v17 = vld [vmem:[#allocation20_spill] sm:$0xff] }
 0x70b   :  { %2381 = vmatprep.subr.bf16.mxu1 %v6143_v24  ;;  %v6197_v24 = vld [vmem:[#allocation21_spill] sm:$0xff] }
 0x70c   :  { %v5307_v49 = vpop.f32.mrb[24].mxu0 }
 0x70d   :  { %v5309_v60 = vpop.f32.mrb[25].mxu0 }
 0x70e   :  { %2382 = vmatpush1.bf16.msra.mxu1 %v6144_v25  ;;  %v2350_v4 = vpop.f32.mrb[26].mxu0  ;;  %v6198_v25 = vld [vmem:[#allocation22_spill] sm:$0xff] }
 0x70f   :  { %v2351_v36 = vpop.f32.mrb[27].mxu0  ;;  %2383 = vmatprep.subr.bf16.mxu1 %v6145_v26  ;;  %v6199_v26 = vld [vmem:[#allocation67_spill] sm:$0xff]  ;;  %v6202_v4 = vld [vmem:[#allocation53_spill] sm:$0xff] }
 0x710   :  { %vm6200_vm15 = vcmp.gt.f32.partialorder %v6199_v26, 0.5  ;;  %v6203_v36 = vld [vmem:[#allocation25_spill] sm:$0xff]  ;;  %v6209_v26 = vld [vmem:[#allocation31_spill] sm:$0xff] }
 0x711   :  { %vm3102_vm13 = vmpackc.low %vm6200_vm15, %vm6200_vm15 }
 0x712   :  { %2384 = vmatpush1.bf16.msra.mxu1 %v6146_v30  ;;  %v6201_v30 = vld [vmem:[#allocation24_spill] sm:$0xff] }
 0x713   :  { %2476 = vmatprep.subr.bf16.mxu1 %v5089_v61 }
 0x715   :  { %3095 = vmatmul.mubr.msk.bf16.vlgmr.msra.gmra.mrb[28].mxu1 %vm3094_vm11, %v6058_v51 }
 0x716   :  { %2477 = vmatpush1.bf16.msra.mxu1 %v4943_v53  ;;  %3101 = vmatprep.mubr.msk.bf16.mxu1 %vm3100_vm4, %v6058_v51 }
 0x717   :  { %2478 = vmatprep.subr.bf16.mxu1 %v4947_v54 }
 0x71a   :  { %2479 = vmatpush1.bf16.msra.mxu1 %v4950_v55 }
 0x71b   :  { %2480 = vmatprep.subr.bf16.mxu1 %v4953_v56 }
 0x71e   :  { %2481 = vmatpush1.bf16.msra.mxu1 %v4956_v57 }
 0x71f   :  { %2482 = vmatprep.subr.bf16.mxu1 %v4959_v58 }
 0x722   :  { %2483 = vmatpush1.bf16.msra.mxu1 %v4962_v13 }
 0x723   :  { %2484 = vmatprep.subr.bf16.mxu1 %v4965_v7 }
 0x726   :  { %2485 = vmatpush1.bf16.msra.mxu1 %v4968_v5 }
 0x727   :  { %2486 = vmatprep.subr.bf16.mxu1 %v4971_v15 }
 0x72a   :  { %2487 = vmatpush1.bf16.msra.mxu1 %v4974_v63 }
 0x72b   :  { %2488 = vmatprep.subr.bf16.mxu1 %v4977_v23 }
 0x72e   :  { %2489 = vmatpush1.bf16.msra.mxu1 %v4980_v28 }
 0x72f   :  { %2490 = vmatprep.subr.bf16.mxu1 %v4983_v14 }
 0x732   :  { %2491 = vmatpush1.bf16.msra.mxu1 %v5114_v34 }
 0x733   :  { %2492 = vmatprep.subr.bf16.mxu1 %v5117_v62 }
 0x736   :  { %2493 = vmatpush1.bf16.msra.mxu1 %v5120_v18 }
 0x737   :  { %2494 = vmatprep.subr.bf16.mxu1 %v5123_v21 }
 0x73a   :  { %2495 = vmatpush1.bf16.msra.mxu1 %v5126_v22 }
 0x73b   :  { %2496 = vmatprep.subr.bf16.mxu1 %v5129_v12 }
 0x73e   :  { %2497 = vmatpush1.bf16.msra.mxu1 %v5132_v19 }
 0x73f   :  { %2498 = vmatprep.subr.bf16.mxu1 %v5135_v37 }
 0x742   :  { %2499 = vmatpush1.bf16.msra.mxu1 %v5138_v38 }
 0x743   :  { %2500 = vmatprep.subr.bf16.mxu1 %v5141_v39 }
 0x746   :  { %2501 = vmatpush1.bf16.msra.mxu1 %v5144_v1 }
 0x747   :  { %2502 = vmatprep.subr.bf16.mxu1 %v5147_v0 }
 0x74a   :  { %2503 = vmatpush1.bf16.msra.mxu1 %v6193_v48 }
 0x74b   :  { %2504 = vmatprep.subr.bf16.mxu1 %v6194_v52  ;;  %v6211_v52 = vld [vmem:[#allocation33_spill] sm:$0xff] }
 0x74e   :  { %2505 = vmatpush1.bf16.msra.mxu1 %v6195_v6  ;;  %v6210_v6 = vld [vmem:[#allocation32_spill] sm:$0xff] }
 0x74f   :  { %2506 = vmatprep.subr.bf16.mxu1 %v6196_v17  ;;  %v6206_v17 = vld [vmem:[#allocation28_spill] sm:$0xff] }
 0x752   :  { %2507 = vmatpush1.bf16.msra.mxu1 %v6197_v24  ;;  %v6207_v24 = vld [vmem:[#allocation29_spill] sm:$0xff] }
 0x753   :  { %3246 = vmatprep.subr.bf16.mxu1 %v6198_v25  ;;  %v6208_v25 = vld [vmem:[#allocation30_spill] sm:$0xff] }
 0x755   :  { %3103 = vmatmul.mubr.msk.bf16.vlgmr.msra.gmra.mrb[32].mxu1 %vm3102_vm13, %v6058_v51 }
 0x756   :  { %3247 = vmatpush3.bf16.msra.mxu1 %v6201_v30  ;;  %v6212_v30 = vld [vmem:[#allocation34_spill] sm:$0xff] }
 0x757   :  { %3248 = vmatprep.subr.bf16.mxu1 %v6202_v4 }
 0x75a   :  { %3249 = vmatpush3.bf16.msra.mxu1 %v6203_v36  ;;  %v5372_v36 = vld [vmem:[#allocation11 + $0x78] sm:$0xff]  }
 0x75b   :  { %3250 = vmatprep.subr.bf16.mxu1 %v6204_v46  ;;  %6213 = vst [vmem:[#allocation98_spill] sm:$0xff] %v5372_v36 }
 0x75e   :  { %3251 = vmatpush3.bf16.msra.mxu1 %v6205_v47  ;;  %v5375_v47 = vld [vmem:[#allocation11 + $0x38] sm:$0xff]  }
 0x75f   :  { %3252 = vmatprep.subr.bf16.mxu1 %v6206_v17  ;;  %6214 = vst [vmem:[#allocation99_spill] sm:$0xff] %v5375_v47 }
 0x762   :  { %3253 = vmatpush3.bf16.msra.mxu1 %v6207_v24 }
 0x763   :  { %3254 = vmatprep.subr.bf16.mxu1 %v6208_v25 }
 0x766   :  { %3255 = vmatpush3.bf16.msra.mxu1 %v6209_v26  ;;  %v6215_v26 = vld [vmem:[#allocation36_spill] sm:$0xff] }
 0x767   :  { %3256 = vmatprep.subr.bf16.mxu1 %v6210_v6  ;;  %v2122_v6 = vsel %vm2120_vm6, 0.0, %v6215_v26  ;;  %v2347_v26 = vadd.f32 %v5307_v49, %v6115_v11  ;;  %v6223_v49 = vld [vmem:[#allocation97_spill] sm:$0xff] }
 0x768   :  { %v2282_v4 = vmul.f32 0.2, %v2122_v6  ;;  %v2394_v6 = vmul.f32 0.2, %v5233_v31  ;;  %v6219_v31 = vld [vmem:[#allocation72_spill] sm:$0xff] }
 0x769   :  { %vm6220_vm14 = vcmp.gt.f32.partialorder %v6219_v31, 0.5  ;;  %v5460_v31 = vld [vmem:[#allocation8 + $0x1e0] ss:$8 sps:$4 sm:$0xff]  }
 0x76a   :  { %3257 = vmatpush3.bf16.msra.mxu1 %v6211_v52  ;;  %vm3104_vm12 = vmpackc.low %vm6220_vm14, %vm6220_vm14 }
 0x76b   :  { %3258 = vmatprep.subr.bf16.mxu1 %v6212_v30 }
 0x76e   :  { %3259 = vmatpush3.bf16.msra.mxu1 %v5208_v59  ;;  %v6216_v59 = vld [vmem:[#allocation40_spill] sm:$0xff] }
 0x76f   :  { %3260 = vmatprep.subr.bf16.mxu1 %v5372_v36  ;;  %v6218_v36 = vmov 0.0  }
 0x772   :  { %3261 = vmatpush3.bf16.msra.mxu1 %v5375_v47 }
 0x773   :  { %2681 = vmatprep.subr.bf16.mxu1 %v5023_v40 }
 0x7a8   :  { %v3218_v25 = vpop.f32.mrb[24].mxu1 }
 0x7a9   :  { %v3219_v52 = vpop.f32.mrb[25].mxu1 }
 0x7aa   :  { %v3220_v24 = vadd.f32 %v3219_v52, %v3218_v25  ;;  %v3221_v30 = vpop.f32.mrb[26].mxu1  ;;  %v2349_v52 = vadd.f32 %v5309_v60, %v6116_v16  ;;  %v5426_v60 = vld [vmem:[#allocation8 + $0x190] ss:$8 sps:$4 sm:$0xff]  }
 0x7ab   :  { %v3222_v17 = vpop.f32.mrb[27].mxu1 }
 0x7ac   :  { %v2277_v46 = vadd.f32 %v3220_v24, %v6216_v59 }
 0x7ae   :  { %v5383_v48 = vadd.f32 %v2282_v4, %v2277_v46  ;;  %v2395_v4 = vmul.f32 0.2, %v5235_v41  ;;  %v6222_v41 = vld [vmem:[#allocation96_spill] sm:$0xff] }
 0x7b0   :  { %6217 = vst [vmem:[#allocation100_spill] sm:$0xff] %v5383_v48  ;;  %vm2284_vm0 = vcmp.gt.f32.partialorder %v5383_v48, 0.5 }
 0x7b1   :  { %v2285_v40 = vsel %vm2284_vm0, 1.0, %v6218_v36 }
 0x7b2   :  { %v5390_v47 = vadd.f32 %v2285_v40, %v5225_v9 }
 0x7e8   :  { %v2387_v17 = vpop.f32.mrb[28].mxu1 }
 0x7e9   :  { %v2388_v24 = vadd.f32 %v2387_v17, %v2347_v26  ;;  %v2389_v25 = vpop.f32.mrb[29].mxu1  ;;  %v5435_v26 = vld [vmem:[#allocation8 + $0x1b4] ss:$8 sps:$4 sm:$0xff]   ;;  %v5441_v17 = vld [vmem:[#allocation8 + $0x1c4] ss:$8 sps:$4 sm:$0xff]  }
 0x7ea   :  { %v2390_v30 = vadd.f32 %v2389_v25, %v2349_v52  ;;  %v2391_v46 = vpop.f32.mrb[30].mxu1  ;;  %v5438_v52 = vld [vmem:[#allocation8 + $0x1b0] ss:$8 sps:$4 sm:$0xff]   ;;  %6225 = vst [vmem:[#allocation48_spill] sm:$0xff] %v5441_v17 }
 0x7eb   :  { %v2396_v59 = vadd.f32 %v2394_v6, %v2388_v24  ;;  %v2392_v36 = vpop.f32.mrb[31].mxu1  ;;  %6224 = vst [vmem:[#allocation101_spill] sm:$0xff] %v5438_v52  ;;  %v5444_v24 = vld [vmem:[#allocation8 + $0x1c0] ss:$8 sps:$4 sm:$0xff]   ;;  %v5447_v6 = vld [vmem:[#allocation8 + $0x1d4] ss:$8 sps:$4 sm:$0xff]  }
 0x7ec   :  { %v2397_v48 = vadd.f32 %v2395_v4, %v2390_v30  ;;  %v5432_v36 = vld [vmem:[#allocation8 + $0x1a0] ss:$8 sps:$4 sm:$0xff]   ;;  %6226 = vst [vmem:[#allocation47_spill] sm:$0xff] %v5444_v24  ;;  %6227 = vst [vmem:[#allocation58_spill] sm:$0xff] %v5447_v6  ;;  %v5450_v25 = vld [vmem:[#allocation8 + $0x1d0] ss:$8 sps:$4 sm:$0xff]  }
 0x7ed   :  { %vm2398_vm1 = vcmp.gt.f32.partialorder %v2396_v59, 0.5  ;;  %6228 = vst [vmem:[#allocation57_spill] sm:$0xff] %v5450_v25  ;;  %v5453_v30 = vld [vmem:[#allocation8 + $0x1e4] ss:$8 sps:$4 sm:$0xff]  }
 0x7ee   :  { %v5398_v40 = vsel %vm2398_vm1, 0.0, %v2396_v59  ;;  %vm2399_vm5 = vcmp.gt.f32.partialorder %v2397_v48, 0.5  ;;  %vm3098_vm3 = vmpackc.low %vm2398_vm1, %vm2398_vm1  ;;  %v6221_v59 = vld [vmem:[#allocation37_spill] sm:$0xff]  ;;  %6229 = vst [vmem:[#allocation59_spill] sm:$0xff] %v5453_v30 }
 0x7ef   :  { %v5400_v9 = vsel %vm2399_vm5, 0.0, %v2397_v48  ;;  %vm3096_vm6 = vmpackc.low %vm2399_vm5, %vm2399_vm5  ;;  %v5429_v48 = vld [vmem:[#allocation8 + $0x1a4] ss:$8 sps:$4 sm:$0xff]  }
 0x7f0   :  { %3097 = vmatprep.mubr.msk.bf16.mxu0 %vm3096_vm6, %v6058_v51 }
 0x7f1   :  { %3099 = vmatmul.mubr.msk.bf16.vlgmr.msra.gmra.mrb[28].mxu0 %vm3098_vm3, %v6058_v51 }
 0x7f2   :  { %2518 = vmatpush1.bf16.msra.mxu0 %v5242_v43  ;;  %3105 = vmatprep.mubr.msk.bf16.mxu0 %vm3104_vm12, %v6058_v51 }
 0x7f3   :  { %2519 = vmatprep.subr.bf16.mxu0 %v5246_v45 }
 0x7f6   :  { %2520 = vmatpush1.bf16.msra.mxu0 %v5249_v29 }
 0x7f7   :  { %2521 = vmatprep.subr.bf16.mxu0 %v5252_v44 }
 0x7fa   :  { %2522 = vmatpush1.bf16.msra.mxu0 %v5255_v8 }
 0x7fb   :  { %2523 = vmatprep.subr.bf16.mxu0 %v5258_v3 }
 0x7fe   :  { %2524 = vmatpush1.bf16.msra.mxu0 %v5261_v27 }
 0x7ff   :  { %2525 = vmatprep.subr.bf16.mxu0 %v5264_v10 }
 0x802   :  { %2526 = vmatpush1.bf16.msra.mxu0 %v5267_v50 }
 0x803   :  { %2527 = vmatprep.subr.bf16.mxu0 %v5270_v32 }
 0x806   :  { %2528 = vmatpush1.bf16.msra.mxu0 %v6221_v59 }
 0x807   :  { %2529 = vmatprep.subr.bf16.mxu0 %v6222_v41 }
 0x80a   :  { %2530 = vmatpush1.bf16.msra.mxu0 %v5279_v20 }
 0x80b   :  { %2531 = vmatprep.subr.bf16.mxu0 %v5282_v33 }
 0x80e   :  { %2532 = vmatpush1.bf16.msra.mxu0 %v5285_v2 }
 0x80f   :  { %2533 = vmatprep.subr.bf16.mxu0 %v5288_v42 }
 0x812   :  { %2534 = vmatpush1.bf16.msra.mxu0 %v5291_v35 }
 0x813   :  { %2535 = vmatprep.subr.bf16.mxu0 %v6223_v49 }
 0x816   :  { %2536 = vmatpush1.bf16.msra.mxu0 %v5426_v60 }
 0x817   :  { %2537 = vmatprep.subr.bf16.mxu0 %v5429_v48 }
 0x81a   :  { %2538 = vmatpush1.bf16.msra.mxu0 %v5432_v36 }
 0x81b   :  { %2539 = vmatprep.subr.bf16.mxu0 %v5435_v26 }
 0x81e   :  { %2540 = vmatpush1.bf16.msra.mxu0 %v5438_v52  ;;  %v5463_v52 = vld [vmem:[#allocation8 + $0x1f4] ss:$8 sps:$4 sm:$0xff]  }
 0x81f   :  { %2541 = vmatprep.subr.bf16.mxu0 %v5441_v17 }
 0x822   :  { %2542 = vmatpush1.bf16.msra.mxu0 %v5444_v24 }
 0x823   :  { %2543 = vmatprep.subr.bf16.mxu0 %v5447_v6  ;;  %v5466_v6 = vld [vmem:[#allocation8 + $0x1f0] ss:$8 sps:$4 sm:$0xff]  }
 0x826   :  { %2544 = vmatpush1.bf16.msra.mxu0 %v5450_v25  ;;  %v6232_v25 = vld [vmem:[#allocation76_spill] sm:$0xff] }
 0x827   :  { %2545 = vmatprep.subr.bf16.mxu0 %v5453_v30  ;;  %v6230_v30 = vld [vmem:[#allocation70_spill] sm:$0xff]  ;;  %vm6233_vm2 = vcmp.gt.f32.partialorder %v6232_v25, 0.5  ;;  %v6236_v25 = vld [vmem:[#allocation55_spill] sm:$0xff] }
 0x828   :  { %v5456_v4 = vpop.f32.mrb[32].mxu1  ;;  %vm6231_vm7 = vcmp.gt.f32.partialorder %v6230_v30, 0.5  ;;  %vm3112_vm8 = vmpackc.low %vm6233_vm2, %vm6233_vm2  ;;  %v6237_v30 = vld [vmem:[#allocation20_spill] sm:$0xff] }
 0x829   :  { %v5458_v46 = vpop.f32.mrb[33].mxu1  ;;  %vm3106_vm9 = vmpackc.low %vm6231_vm7, %vm6231_vm7 }
 0x82a   :  { %2546 = vmatpush1.bf16.msra.mxu0 %v5460_v31  ;;  %v2514_v24 = vpop.f32.mrb[34].mxu1 }
 0x82b   :  { %v2515_v17 = vpop.f32.mrb[35].mxu1  ;;  %2547 = vmatprep.subr.bf16.mxu0 %v5463_v52  ;;  %v6235_v24 = vld [vmem:[#allocation49_spill] sm:$0xff] }
 0x82c   :  { %v6234_v17 = vld [vmem:[#allocation51_spill] sm:$0xff] }
 0x82e   :  { %2548 = vmatpush1.bf16.msra.mxu0 %v5466_v6 }
 0x82f   :  { %2640 = vmatprep.subr.bf16.mxu0 %v5089_v61 }
 0x831   :  { %3107 = vmatmul.mubr.msk.bf16.vlgmr.msra.gmra.mrb[32].mxu0 %vm3106_vm9, %v6058_v51 }
 0x832   :  { %2641 = vmatpush1.bf16.msra.mxu0 %v4943_v53  ;;  %3113 = vmatprep.mubr.msk.bf16.mxu0 %vm3112_vm8, %v6058_v51 }
 0x833   :  { %2642 = vmatprep.subr.bf16.mxu0 %v4947_v54 }
 0x836   :  { %2643 = vmatpush1.bf16.msra.mxu0 %v4950_v55 }
 0x837   :  { %2644 = vmatprep.subr.bf16.mxu0 %v4953_v56 }
 0x83a   :  { %2645 = vmatpush1.bf16.msra.mxu0 %v4956_v57 }
 0x83b   :  { %2646 = vmatprep.subr.bf16.mxu0 %v4959_v58 }
 0x83e   :  { %2647 = vmatpush1.bf16.msra.mxu0 %v4962_v13 }
 0x83f   :  { %2648 = vmatprep.subr.bf16.mxu0 %v4965_v7 }
 0x842   :  { %2649 = vmatpush1.bf16.msra.mxu0 %v4968_v5 }
 0x843   :  { %2650 = vmatprep.subr.bf16.mxu0 %v4971_v15 }
 0x846   :  { %2651 = vmatpush1.bf16.msra.mxu0 %v4974_v63 }
 0x847   :  { %2652 = vmatprep.subr.bf16.mxu0 %v4977_v23 }
 0x84a   :  { %2653 = vmatpush1.bf16.msra.mxu0 %v4980_v28 }
 0x84b   :  { %2654 = vmatprep.subr.bf16.mxu0 %v4983_v14 }
 0x84e   :  { %2655 = vmatpush1.bf16.msra.mxu0 %v5114_v34 }
 0x84f   :  { %2656 = vmatprep.subr.bf16.mxu0 %v5117_v62 }
 0x852   :  { %2657 = vmatpush1.bf16.msra.mxu0 %v5120_v18 }
 0x853   :  { %2658 = vmatprep.subr.bf16.mxu0 %v5123_v21 }
 0x856   :  { %2659 = vmatpush1.bf16.msra.mxu0 %v5126_v22 }
 0x857   :  { %2660 = vmatprep.subr.bf16.mxu0 %v5129_v12  ;;  %v6238_v12 = vld [vmem:[#allocation21_spill] sm:$0xff] }
 0x85a   :  { %2661 = vmatpush1.bf16.msra.mxu0 %v5132_v19  ;;  %v6239_v19 = vld [vmem:[#allocation22_spill] sm:$0xff] }
 0x85b   :  { %2662 = vmatprep.subr.bf16.mxu0 %v5135_v37  ;;  %v6240_v37 = vld [vmem:[#allocation75_spill] sm:$0xff] }
 0x85c   :  { %vm6241_vm11 = vcmp.gt.f32.partialorder %v6240_v37, 0.5  ;;  %v6250_v37 = vld [vmem:[#allocation31_spill] sm:$0xff] }
 0x85d   :  { %vm3114_vm10 = vmpackc.low %vm6241_vm11, %vm6241_vm11 }
 0x85e   :  { %2663 = vmatpush1.bf16.msra.mxu0 %v5138_v38  ;;  %v6252_v38 = vld [vmem:[#allocation33_spill] sm:$0xff] }
 0x85f   :  { %2664 = vmatprep.subr.bf16.mxu0 %v5141_v39  ;;  %v6251_v39 = vld [vmem:[#allocation32_spill] sm:$0xff] }
 0x862   :  { %2665 = vmatpush1.bf16.msra.mxu0 %v5144_v1  ;;  %v6242_v1 = vld [vmem:[#allocation24_spill] sm:$0xff] }
 0x863   :  { %2666 = vmatprep.subr.bf16.mxu0 %v5147_v0  ;;  %v6243_v0 = vld [vmem:[#allocation53_spill] sm:$0xff] }
 0x866   :  { %2667 = vmatpush1.bf16.msra.mxu0 %v6234_v17  ;;  %v6244_v17 = vld [vmem:[#allocation25_spill] sm:$0xff] }
 0x867   :  { %2668 = vmatprep.subr.bf16.mxu0 %v6235_v24  ;;  %v6245_v24 = vld [vmem:[#allocation26_spill] sm:$0xff] }
 0x86a   :  { %2669 = vmatpush1.bf16.msra.mxu0 %v6236_v25  ;;  %v6246_v25 = vld [vmem:[#allocation27_spill] sm:$0xff] }
 0x86b   :  { %2670 = vmatprep.subr.bf16.mxu0 %v6237_v30  ;;  %v6247_v30 = vld [vmem:[#allocation28_spill] sm:$0xff] }
 0x86e   :  { %2671 = vmatpush1.bf16.msra.mxu0 %v6238_v12  ;;  %v6248_v12 = vld [vmem:[#allocation29_spill] sm:$0xff] }
 0x86f   :  { %3268 = vmatprep.subr.bf16.mxu0 %v6239_v19  ;;  %v6249_v19 = vld [vmem:[#allocation30_spill] sm:$0xff] }
 0x871   :  { %3115 = vmatmul.mubr.msk.bf16.vlgmr.msra.gmra.mrb[36].mxu0 %vm3114_vm10, %v6058_v51 }
 0x872   :  { %3269 = vmatpush3.bf16.msra.mxu0 %v6242_v1  ;;  %v6253_v1 = vld [vmem:[#allocation34_spill] sm:$0xff] }
 0x873   :  { %3270 = vmatprep.subr.bf16.mxu0 %v6243_v0  ;;  %v6254_v0 = vld [vmem:[#allocation35_spill] sm:$0xff] }
 0x876   :  { %3271 = vmatpush3.bf16.msra.mxu0 %v6244_v17  ;;  %v6255_v17 = vld [vmem:[#allocation98_spill] sm:$0xff] }
 0x877   :  { %3272 = vmatprep.subr.bf16.mxu0 %v6245_v24  ;;  %v6256_v24 = vld [vmem:[#allocation99_spill] sm:$0xff] }
 0x87a   :  { %3273 = vmatpush3.bf16.msra.mxu0 %v6246_v25  ;;  %v6257_v25 = vld [vmem:[#allocation23_spill] sm:$0xff] }
 0x87b   :  { %3274 = vmatprep.subr.bf16.mxu0 %v6247_v30 }
 0x87e   :  { %3275 = vmatpush3.bf16.msra.mxu0 %v6248_v12  ;;  %v6258_v12 = vld [vmem:[#allocation100_spill] sm:$0xff] }
 0x87f   :  { %3276 = vmatprep.subr.bf16.mxu0 %v6249_v19  ;;  %v2286_v19 = vsel %vm2284_vm0, 0.0, %v6258_v12  ;;  %v2511_v12 = vadd.f32 %v5456_v4, %v6115_v11 }
 0x882   :  { %3277 = vmatpush3.bf16.msra.mxu0 %v6250_v37 }
 0x883   :  { %3278 = vmatprep.subr.bf16.mxu0 %v6251_v39 }
 0x886   :  { %3279 = vmatpush3.bf16.msra.mxu0 %v6252_v38  ;;  %v6259_v38 = vld [vmem:[#allocation40_spill] sm:$0xff] }
 0x887   :  { %3280 = vmatprep.subr.bf16.mxu0 %v6253_v1  ;;  %v2446_v1 = vmul.f32 0.2, %v2286_v19 }
 0x88a   :  { %3281 = vmatpush3.bf16.msra.mxu0 %v6254_v0 }
 0x88b   :  { %3282 = vmatprep.subr.bf16.mxu0 %v6255_v17  ;;  %v6261_v17 = vmov 0.0  }
 0x88e   :  { %3283 = vmatpush3.bf16.msra.mxu0 %v6256_v24 }
 0x88f   :  { %2841 = vmatprep.subr.bf16.mxu0 %v6257_v25 }
 0x8c4   :  { %v3240_v30 = vpop.f32.mrb[28].mxu0 }
 0x8c5   :  { %v3241_v37 = vpop.f32.mrb[29].mxu0 }
 0x8c6   :  { %v3242_v22 = vadd.f32 %v3241_v37, %v3240_v30  ;;  %v3243_v39 = vpop.f32.mrb[30].mxu0  ;;  %v2559_v30 = vmul.f32 0.2, %v5400_v9  ;;  %v6266_v9 = vld [vmem:[#allocation47_spill] sm:$0xff] }
 0x8c7   :  { %v3244_v21 = vpop.f32.mrb[31].mxu0 }
 0x8c8   :  { %v2441_v18 = vadd.f32 %v3242_v22, %v6259_v38  ;;  %v2513_v21 = vadd.f32 %v5458_v46, %v6116_v16  ;;  %v6267_v46 = vld [vmem:[#allocation58_spill] sm:$0xff] }
 0x8ca   :  { %v5534_v62 = vadd.f32 %v2446_v1, %v2441_v18  ;;  %v2558_v18 = vmul.f32 0.2, %v5398_v40  ;;  %v6262_v40 = vld [vmem:[#allocation79_spill] sm:$0xff] }
 0x8cb   :  { %vm6263_vm5 = vcmp.gt.f32.partialorder %v6262_v40, 0.5  ;;  %v6292_v40 = vld [vmem:[#allocation53_spill] sm:$0xff] }
 0x8cc   :  { %6260 = vst [vmem:[#allocation60_spill] sm:$0xff] %v5534_v62  ;;  %vm2448_vm4 = vcmp.gt.f32.partialorder %v5534_v62, 0.5  ;;  %vm3116_vm6 = vmpackc.low %vm6263_vm5, %vm6263_vm5 }
 0x8cd   :  { %v2449_v25 = vsel %vm2448_vm4, 1.0, %v6261_v17 }
 0x8ce   :  { %v5541_v24 = vadd.f32 %v2449_v25, %v5390_v47  ;;  %v6269_v25 = vld [vmem:[#allocation59_spill] sm:$0xff] }
 0x904   :  { %v2551_v39 = vpop.f32.mrb[32].mxu0 }
 0x905   :  { %v2552_v22 = vadd.f32 %v2551_v39, %v2511_v12  ;;  %v2553_v19 = vpop.f32.mrb[33].mxu0 }
 0x906   :  { %v2554_v1 = vadd.f32 %v2553_v19, %v2513_v21  ;;  %v2555_v37 = vpop.f32.mrb[34].mxu0  ;;  %v6271_v19 = vld [vmem:[#allocation77_spill] sm:$0xff] }
 0x907   :  { %v2560_v38 = vadd.f32 %v2558_v18, %v2552_v22  ;;  %v2556_v17 = vpop.f32.mrb[35].mxu0  ;;  %v6270_v18 = vld [vmem:[#allocation83_spill] sm:$0xff]  ;;  %vm6272_vm14 = vcmp.gt.f32.partialorder %v6271_v19, 0.5  ;;  %v6291_v37 = vld [vmem:[#allocation24_spill] sm:$0xff] }
 0x908   :  { %v2561_v62 = vadd.f32 %v2559_v30, %v2554_v1  ;;  %v6268_v17 = vld [vmem:[#allocation57_spill] sm:$0xff]  ;;  %vm2789_vm3 = vcmp.gt.f32.partialorder %v6270_v18, 0.5  ;;  %vm3118_vm12 = vmpackc.low %vm6272_vm14, %vm6272_vm14  ;;  %v6290_v30 = vld [vmem:[#allocation22_spill] sm:$0xff] }
 0x909   :  { %vm2562_vm15 = vcmp.gt.f32.partialorder %v2560_v38, 0.5  ;;  %vm3124_vm7 = vmpackc.low %vm2789_vm3, %vm2789_vm3  ;;  %v6289_v1 = vld [vmem:[#allocation21_spill] sm:$0xff]  ;;  %v6295_v18 = vld [vmem:[#allocation27_spill] sm:$0xff] }
 0x90a   :  { %v5549_v47 = vsel %vm2562_vm15, 0.0, %v2560_v38  ;;  %vm2563_vm13 = vcmp.gt.f32.partialorder %v2561_v62, 0.5  ;;  %vm3110_vm1 = vmpackc.low %vm2562_vm15, %vm2562_vm15  ;;  %v6265_v38 = vld [vmem:[#allocation48_spill] sm:$0xff] }
 0x90b   :  { %v5551_v4 = vsel %vm2563_vm13, 0.0, %v2561_v62  ;;  %vm3108_vm0 = vmpackc.low %vm2563_vm13, %vm2563_vm13  ;;  %v6264_v62 = vld [vmem:[#allocation101_spill] sm:$0xff]  ;;  %v6296_v19 = vld [vmem:[#allocation28_spill] sm:$0xff] }
 0x90c   :  { %3109 = vmatprep.mubr.msk.bf16.mxu1 %vm3108_vm0, %v6058_v51 }
 0x90d   :  { %3111 = vmatmul.mubr.msk.bf16.vlgmr.msra.gmra.mrb[36].mxu1 %vm3110_vm1, %v6058_v51 }
 0x90e   :  { %2682 = vmatpush1.bf16.msra.mxu1 %v5242_v43  ;;  %3117 = vmatprep.mubr.msk.bf16.mxu1 %vm3116_vm6, %v6058_v51 }
 0x90f   :  { %2683 = vmatprep.subr.bf16.mxu1 %v5246_v45 }
 0x912   :  { %2684 = vmatpush1.bf16.msra.mxu1 %v5249_v29 }
 0x913   :  { %2685 = vmatprep.subr.bf16.mxu1 %v5252_v44 }
 0x916   :  { %2686 = vmatpush1.bf16.msra.mxu1 %v5255_v8 }
 0x917   :  { %2687 = vmatprep.subr.bf16.mxu1 %v5258_v3 }
 0x91a   :  { %2688 = vmatpush1.bf16.msra.mxu1 %v5261_v27 }
 0x91b   :  { %2689 = vmatprep.subr.bf16.mxu1 %v5264_v10 }
 0x91e   :  { %2690 = vmatpush1.bf16.msra.mxu1 %v5267_v50 }
 0x91f   :  { %2691 = vmatprep.subr.bf16.mxu1 %v5270_v32 }
 0x922   :  { %2692 = vmatpush1.bf16.msra.mxu1 %v6221_v59 }
 0x923   :  { %2693 = vmatprep.subr.bf16.mxu1 %v6222_v41 }
 0x926   :  { %2694 = vmatpush1.bf16.msra.mxu1 %v5279_v20 }
 0x927   :  { %2695 = vmatprep.subr.bf16.mxu1 %v5282_v33 }
 0x92a   :  { %2696 = vmatpush1.bf16.msra.mxu1 %v5285_v2 }
 0x92b   :  { %2697 = vmatprep.subr.bf16.mxu1 %v5288_v42 }
 0x92e   :  { %2698 = vmatpush1.bf16.msra.mxu1 %v5291_v35 }
 0x92f   :  { %2699 = vmatprep.subr.bf16.mxu1 %v6223_v49 }
 0x932   :  { %2700 = vmatpush1.bf16.msra.mxu1 %v5426_v60 }
 0x933   :  { %2701 = vmatprep.subr.bf16.mxu1 %v5429_v48 }
 0x936   :  { %2702 = vmatpush1.bf16.msra.mxu1 %v5432_v36 }
 0x937   :  { %2703 = vmatprep.subr.bf16.mxu1 %v5435_v26 }
 0x93a   :  { %2704 = vmatpush1.bf16.msra.mxu1 %v6264_v62 }
 0x93b   :  { %2705 = vmatprep.subr.bf16.mxu1 %v6265_v38 }
 0x93e   :  { %2706 = vmatpush1.bf16.msra.mxu1 %v6266_v9 }
 0x93f   :  { %2707 = vmatprep.subr.bf16.mxu1 %v6267_v46 }
 0x942   :  { %2708 = vmatpush1.bf16.msra.mxu1 %v6268_v17 }
 0x943   :  { %2709 = vmatprep.subr.bf16.mxu1 %v6269_v25 }
 0x944   :  { %v5587_v12 = vpop.f32.mrb[36].mxu0 }
 0x945   :  { %v5589_v21 = vpop.f32.mrb[37].mxu0 }
 0x946   :  { %2710 = vmatpush1.bf16.msra.mxu1 %v5460_v31  ;;  %v2678_v39 = vpop.f32.mrb[38].mxu0 }
 0x947   :  { %v2679_v22 = vpop.f32.mrb[39].mxu0  ;;  %2711 = vmatprep.subr.bf16.mxu1 %v5463_v52  ;;  %v6293_v39 = vld [vmem:[#allocation25_spill] sm:$0xff] }
 0x948   :  { %v6294_v22 = vld [vmem:[#allocation26_spill] sm:$0xff] }
 0x94a   :  { %2712 = vmatpush1.bf16.msra.mxu1 %v5466_v6 }
 0x94b   :  { %2800 = vmatprep.subr.bf16.mxu1 %v5089_v61  ;;  %v6287_v61 = vld [vmem:[#allocation20_spill] sm:$0xff] }
 0x94d   :  { %3119 = vmatmul.mubr.msk.bf16.vlgmr.msra.gmra.mrb[40].mxu1 %vm3118_vm12, %v6058_v51 }
 0x94e   :  { %2801 = vmatpush1.bf16.msra.mxu1 %v4943_v53  ;;  %3125 = vmatprep.mubr.msk.bf16.mxu1 %vm3124_vm7, %v6058_v51  ;;  %v6273_v53 = vld [vmem:[#allocation44_spill] sm:$0xff] }
 0x94f   :  { %2802 = vmatprep.subr.bf16.mxu1 %v4947_v54  ;;  %v6274_v54 = vld [vmem:[#allocation38_spill] sm:$0xff] }
 0x952   :  { %2803 = vmatpush1.bf16.msra.mxu1 %v4950_v55  ;;  %v6275_v55 = vld [vmem:[#allocation39_spill] sm:$0xff] }
 0x953   :  { %2804 = vmatprep.subr.bf16.mxu1 %v4953_v56  ;;  %v6276_v56 = vld [vmem:[#allocation41_spill] sm:$0xff] }
 0x956   :  { %2805 = vmatpush1.bf16.msra.mxu1 %v4956_v57  ;;  %v6277_v57 = vld [vmem:[#allocation43_spill] sm:$0xff] }
 0x957   :  { %2806 = vmatprep.subr.bf16.mxu1 %v4959_v58  ;;  %v6278_v58 = vld [vmem:[#allocation45_spill] sm:$0xff] }
 0x95a   :  { %2807 = vmatpush1.bf16.msra.mxu1 %v4962_v13  ;;  %v6279_v13 = vld [vmem:[#allocation46_spill] sm:$0xff] }
 0x95b   :  { %2808 = vmatprep.subr.bf16.mxu1 %v4965_v7  ;;  %v6280_v7 = vld [vmem:[#allocation50_spill] sm:$0xff] }
 0x95e   :  { %2809 = vmatpush1.bf16.msra.mxu1 %v4968_v5  ;;  %v6281_v5 = vld [vmem:[#allocation52_spill] sm:$0xff] }
 0x95f   :  { %2810 = vmatprep.subr.bf16.mxu1 %v4971_v15  ;;  %v6282_v15 = vld [vmem:[#allocation54_spill] sm:$0xff] }
 0x962   :  { %2811 = vmatpush1.bf16.msra.mxu1 %v4974_v63  ;;  %v6283_v63 = vld [vmem:[#allocation42_spill] sm:$0xff] }
 0x963   :  { %2812 = vmatprep.subr.bf16.mxu1 %v4977_v23  ;;  %v6284_v23 = vld [vmem:[#allocation51_spill] sm:$0xff] }
 0x966   :  { %2813 = vmatpush1.bf16.msra.mxu1 %v4980_v28  ;;  %v6285_v28 = vld [vmem:[#allocation49_spill] sm:$0xff] }
 0x967   :  { %2814 = vmatprep.subr.bf16.mxu1 %v4983_v14  ;;  %v6286_v14 = vld [vmem:[#allocation55_spill] sm:$0xff] }
 0x96a   :  { %2815 = vmatpush1.bf16.msra.mxu1 %v5114_v34  ;;  %v6288_v34 = vld [vmem:[#allocation81_spill] sm:$0xff] }
 0x96b   :  { %2816 = vmatprep.subr.bf16.mxu1 %v6273_v53  ;;  %vm2788_vm9 = vcmp.gt.f32.partialorder %v6288_v34, 0.5  ;;  %v6297_v53 = vld [vmem:[#allocation29_spill] sm:$0xff]  ;;  %v6306_v34 = vld [vmem:[#allocation40_spill] sm:$0xff] }
 0x96c   :  { %vm3126_vm2 = vmpackc.low %vm2788_vm9, %vm2788_vm9 }
 0x96e   :  { %2817 = vmatpush1.bf16.msra.mxu1 %v6274_v54  ;;  %v6298_v54 = vld [vmem:[#allocation30_spill] sm:$0xff] }
 0x96f   :  { %2818 = vmatprep.subr.bf16.mxu1 %v6275_v55  ;;  %v6299_v55 = vld [vmem:[#allocation31_spill] sm:$0xff] }
 0x972   :  { %2819 = vmatpush1.bf16.msra.mxu1 %v6276_v56  ;;  %v6300_v56 = vld [vmem:[#allocation32_spill] sm:$0xff] }
 0x973   :  { %2820 = vmatprep.subr.bf16.mxu1 %v6277_v57  ;;  %v6301_v57 = vld [vmem:[#allocation33_spill] sm:$0xff] }
 0x976   :  { %2821 = vmatpush1.bf16.msra.mxu1 %v6278_v58  ;;  %v6302_v58 = vld [vmem:[#allocation34_spill] sm:$0xff] }
 0x977   :  { %2822 = vmatprep.subr.bf16.mxu1 %v6279_v13  ;;  %v6303_v13 = vld [vmem:[#allocation98_spill] sm:$0xff] }
 0x97a   :  { %2823 = vmatpush1.bf16.msra.mxu1 %v6280_v7  ;;  %v6304_v7 = vld [vmem:[#allocation99_spill] sm:$0xff] }
 0x97b   :  { %2824 = vmatprep.subr.bf16.mxu1 %v6281_v5 }
 0x97e   :  { %2825 = vmatpush1.bf16.msra.mxu1 %v6282_v15  ;;  %v6305_v15 = vld [vmem:[#allocation60_spill] sm:$0xff] }
 0x97f   :  { %2826 = vmatprep.subr.bf16.mxu1 %v6283_v63  ;;  %v2450_v63 = vsel %vm2448_vm4, 0.0, %v6305_v15 }
 0x982   :  { %2827 = vmatpush1.bf16.msra.mxu1 %v6284_v23 }
 0x983   :  { %2828 = vmatprep.subr.bf16.mxu1 %v6285_v28 }
 0x986   :  { %2829 = vmatpush1.bf16.msra.mxu1 %v6286_v14 }
 0x987   :  { %2830 = vmatprep.subr.bf16.mxu1 %v6287_v61 }
 0x98a   :  { %2831 = vmatpush1.bf16.msra.mxu1 %v6289_v1 }
 0x98b   :  { %3290 = vmatprep.subr.bf16.mxu1 %v6290_v30  ;;  %v2610_v30 = vmul.f32 0.2, %v2450_v63 }
 0x98d   :  { %3127 = vmatmul.mubr.msk.bf16.vlgmr.msra.gmra.mrb[44].mxu1 %vm3126_vm2, %v6058_v51 }
 0x98e   :  { %3291 = vmatpush3.bf16.msra.mxu1 %v6291_v37 }
 0x98f   :  { %3292 = vmatprep.subr.bf16.mxu1 %v6292_v40 }
 0x992   :  { %3293 = vmatpush3.bf16.msra.mxu1 %v6293_v39 }
 0x993   :  { %3294 = vmatprep.subr.bf16.mxu1 %v6294_v22  ;;  %v2675_v22 = vadd.f32 %v5587_v12, %v6115_v11  ;;  %v6308_v12 = vld [vmem:[#allocation86_spill] sm:$0xff] }
 0x994   :  { %vm2791_vm4 = vcmp.gt.f32.partialorder %v6308_v12, 0.5 }
 0x995   :  { %vm3128_vm0 = vmpackc.low %vm2791_vm4, %vm2791_vm4 }
 0x996   :  { %3295 = vmatpush3.bf16.msra.mxu1 %v6295_v18  ;;  %v2677_v18 = vadd.f32 %v5589_v21, %v6116_v16 }
 0x997   :  { %3296 = vmatprep.subr.bf16.mxu1 %v6296_v19 }
 0x99a   :  { %3297 = vmatpush3.bf16.msra.mxu1 %v6297_v53 }
 0x99b   :  { %3298 = vmatprep.subr.bf16.mxu1 %v6298_v54  ;;  %v2722_v54 = vmul.f32 0.2, %v5549_v47 }
 0x99e   :  { %3299 = vmatpush3.bf16.msra.mxu1 %v6299_v55 }
 0x99f   :  { %3300 = vmatprep.subr.bf16.mxu1 %v6300_v56 }
 0x9a2   :  { %3301 = vmatpush3.bf16.msra.mxu1 %v6301_v57  ;;  %v2723_v57 = vmul.f32 0.2, %v5551_v4 }
 0x9a3   :  { %3302 = vmatprep.subr.bf16.mxu1 %v6302_v58 }
 0x9a6   :  { %3303 = vmatpush3.bf16.msra.mxu1 %v6254_v0  ;;  %v6307_v0 = vmov 0.0  }
 0x9a7   :  { %3304 = vmatprep.subr.bf16.mxu1 %v6303_v13 }
 0x9aa   :  { %3305 = vmatpush3.bf16.msra.mxu1 %v6304_v7 }
 0x9e0   :  { %v3262_v5 = vpop.f32.mrb[36].mxu1 }
 0x9e1   :  { %v3263_v23 = vpop.f32.mrb[37].mxu1 }
 0x9e2   :  { %v3264_v28 = vadd.f32 %v3263_v23, %v3262_v5  ;;  %v3265_v14 = vpop.f32.mrb[38].mxu1 }
 0x9e3   :  { %v3266_v61 = vpop.f32.mrb[39].mxu1 }
 0x9e4   :  { %v2605_v1 = vadd.f32 %v3264_v28, %v6306_v34 }
 0x9e6   :  { %v5654_v37 = vadd.f32 %v2610_v30, %v2605_v1 }
 0x9e8   :  { %vm2612_vm8 = vcmp.gt.f32.partialorder %v5654_v37, 0.5 }
 0x9e9   :  { %v2613_v40 = vsel %vm2612_vm8, 1.0, %v6307_v0 }
 0x9ea   :  { %v5661_v39 = vadd.f32 %v2613_v40, %v5541_v24 }
 0xa20   :  { %v2715_v19 = vpop.f32.mrb[40].mxu1 }
 0xa21   :  { %v2716_v53 = vadd.f32 %v2715_v19, %v2675_v22  ;;  %v2717_v55 = vpop.f32.mrb[41].mxu1 }
 0xa22   :  { %v2718_v56 = vadd.f32 %v2717_v55, %v2677_v18  ;;  %v2719_v58 = vpop.f32.mrb[42].mxu1 }
 0xa23   :  { %v2724_v13 = vadd.f32 %v2722_v54, %v2716_v53  ;;  %v2720_v7 = vpop.f32.mrb[43].mxu1 }
 0xa24   :  { %v2725_v5 = vadd.f32 %v2723_v57, %v2718_v56 }
 0xa25   :  { %vm2726_vm11 = vcmp.gt.f32.partialorder %v2724_v13, 0.5 }
 0xa26   :  { %v5669_v24 = vsel %vm2726_vm11, 0.0, %v2724_v13  ;;  %vm2727_vm10 = vcmp.gt.f32.partialorder %v2725_v5, 0.5  ;;  %vm3122_vm13 = vmpackc.low %vm2726_vm11, %vm2726_vm11 }
 0xa27   :  { %v5672_v15 = vsel %vm2727_vm10, 0.0, %v2725_v5  ;;  %vm3120_vm15 = vmpackc.low %vm2727_vm10, %vm2727_vm10 }
 0xa28   :  { %3121 = vmatprep.mubr.msk.bf16.mxu0 %vm3120_vm15, %v6058_v51 }
 0xa29   :  { %3123 = vmatmul.mubr.msk.bf16.vlgmr.msra.gmra.mrb[40].mxu0 %vm3122_vm13, %v6058_v51 }
 0xa2a   :  { %2842 = vmatpush1.bf16.msra.mxu0 %v5242_v43  ;;  %3129 = vmatprep.mubr.msk.bf16.mxu0 %vm3128_vm0, %v6058_v51 }
 0xa2b   :  { %2843 = vmatprep.subr.bf16.mxu0 %v5246_v45 }
 0xa2e   :  { %2844 = vmatpush1.bf16.msra.mxu0 %v5249_v29 }
 0xa2f   :  { %2845 = vmatprep.subr.bf16.mxu0 %v5252_v44 }
 0xa32   :  { %2846 = vmatpush1.bf16.msra.mxu0 %v5255_v8  ;;  %v6309_v8 = vld [vmem:[#allocation84_spill] sm:$0xff] }
 0xa33   :  { %2847 = vmatprep.subr.bf16.mxu0 %v5258_v3  ;;  %vm2790_vm1 = vcmp.gt.f32.partialorder %v6309_v8, 0.5 }
 0xa34   :  { %vm3130_vm5 = vmpackc.low %vm2790_vm1, %vm2790_vm1 }
 0xa36   :  { %2848 = vmatpush1.bf16.msra.mxu0 %v5261_v27  ;;  %v2614_v27 = vsel %vm2612_vm8, 0.0, %v5654_v37 }
 0xa37   :  { %2849 = vmatprep.subr.bf16.mxu0 %v5264_v10 }
 0xa3a   :  { %2850 = vmatpush1.bf16.msra.mxu0 %v5267_v50 }
 0xa3b   :  { %2851 = vmatprep.subr.bf16.mxu0 %v5270_v32 }
 0xa3e   :  { %2852 = vmatpush1.bf16.msra.mxu0 %v6221_v59 }
 0xa3f   :  { %2853 = vmatprep.subr.bf16.mxu0 %v6222_v41 }
 0xa42   :  { %2854 = vmatpush1.bf16.msra.mxu0 %v5279_v20  ;;  %v3934_v20 = vld [vmem:[#allocation13] ss:$0 sm:$0xff] }
 0xa43   :  { %2855 = vmatprep.subr.bf16.mxu0 %v5282_v33 }
 0xa46   :  { %2856 = vmatpush1.bf16.msra.mxu0 %v5285_v2  ;;  %v2774_v2 = vmul.f32 0.2, %v2614_v27 }
 0xa47   :  { %2857 = vmatprep.subr.bf16.mxu0 %v5288_v42 }
 0xa4a   :  { %2858 = vmatpush1.bf16.msra.mxu0 %v5291_v35 }
 0xa4b   :  { %2859 = vmatprep.subr.bf16.mxu0 %v6223_v49 }
 0xa4e   :  { %2860 = vmatpush1.bf16.msra.mxu0 %v5426_v60 }
 0xa4f   :  { %2861 = vmatprep.subr.bf16.mxu0 %v5429_v48 }
 0xa52   :  { %2862 = vmatpush1.bf16.msra.mxu0 %v5432_v36 }
 0xa53   :  { %2863 = vmatprep.subr.bf16.mxu0 %v5435_v26  ;;  %v2882_v26 = vmul.f32 0.2, %v5669_v24 }
 0xa56   :  { %2864 = vmatpush1.bf16.msra.mxu0 %v6264_v62 }
 0xa57   :  { %2865 = vmatprep.subr.bf16.mxu0 %v6265_v38 }
 0xa5a   :  { %2866 = vmatpush1.bf16.msra.mxu0 %v6266_v9 }
 0xa5b   :  { %2867 = vmatprep.subr.bf16.mxu0 %v6267_v46 }
 0xa5e   :  { %2868 = vmatpush1.bf16.msra.mxu0 %v6268_v17 }
 0xa5f   :  { %2869 = vmatprep.subr.bf16.mxu0 %v6269_v25 }
 0xa60   :  { %v2834_v43 = vpop.f32.mrb[44].mxu1 }
 0xa61   :  { %v2836_v45 = vpop.f32.mrb[45].mxu1  ;;  %v2835_v49 = vadd.f32 %v2834_v43, %v6115_v11 }
 0xa62   :  { %2870 = vmatpush1.bf16.msra.mxu0 %v5460_v31  ;;  %v2838_v29 = vpop.f32.mrb[46].mxu1  ;;  %v2837_v60 = vadd.f32 %v2836_v45, %v6116_v16  ;;  %v2883_v31 = vmul.f32 0.2, %v5672_v15 }
 0xa63   :  { %v2839_v44 = vpop.f32.mrb[47].mxu1  ;;  %2871 = vmatprep.subr.bf16.mxu0 %v5463_v52 }
 0xa66   :  { %2872 = vmatpush1.bf16.msra.mxu0 %v5466_v6 }
 0xa69   :  { %3131 = vmatmul.mubr.msk.bf16.vlgmr.msra.gmra.mrb[44].mxu0 %vm3130_vm5, %v6058_v51 }
 0xafc   :  { %v3284_v3 = vpop.f32.mrb[40].mxu0 }
 0xafd   :  { %v3285_v10 = vpop.f32.mrb[41].mxu0 }
 0xafe   :  { %v3286_v50 = vadd.f32 %v3285_v10, %v3284_v3  ;;  %v3287_v32 = vpop.f32.mrb[42].mxu0 }
 0xaff   :  { %v3288_v35 = vpop.f32.mrb[43].mxu0 }
 0xb00   :  { %v2769_v33 = vadd.f32 %v3934_v20, %v3286_v50 }
 0xb02   :  { %v2775_v42 = vadd.f32 %v2774_v2, %v2769_v33 }
 0xb04   :  { %vm2776_vm6 = vcmp.gt.f32.partialorder %v2775_v42, 0.5 }
 0xb05   :  { %v2777_v59 = vsel %vm2776_vm6, 1.0, %v6307_v0  ;;  %v2778_v11 = vsel %vm2776_vm6, 0.0, %v2775_v42 }
 0xb06   :  { %v2779_v41 = vadd.f32 %v2777_v59, %v5661_v39  ;;  %v2932_v63 = vmul.f32 0.2, %v2778_v11 }
 0xb3c   :  { %v2875_v48 = vpop.f32.mrb[44].mxu0 }
 0xb3d   :  { %v2876_v36 = vadd.f32 %v2875_v48, %v2835_v49  ;;  %v2877_v52 = vpop.f32.mrb[45].mxu0 }
 0xb3e   :  { %v2878_v6 = vadd.f32 %v2877_v52, %v2837_v60  ;;  %v2879_v47 = vpop.f32.mrb[46].mxu0 }
 0xb3f   :  { %v2884_v4 = vadd.f32 %v2882_v26, %v2876_v36  ;;  %v2880_v62 = vpop.f32.mrb[47].mxu0 }
 0xb40   :  { %v2885_v38 = vadd.f32 %v2883_v31, %v2878_v6 }
 0xb41   :  { %vm2886_vm3 = vcmp.gt.f32.partialorder %v2884_v4, 0.5 }
 0xb42   :  { %vm2887_vm14 = vcmp.gt.f32.partialorder %v2885_v38, 0.5  ;;  %vm3134_vm7 = vmpackc.low %vm2886_vm3, %vm2886_vm3 }
 0xb43   :  { %vm3132_vm12 = vmpackc.low %vm2887_vm14, %vm2887_vm14 }
 0xb44   :  { %3133 = vmatprep.mubr.msk.bf16.mxu1 %vm3132_vm12, %v6058_v51 }
 0xb45   :  { %3135 = vmatmul.mubr.msk.bf16.vlgmr.msra.gmra.mrb[48].mxu1 %vm3134_vm7, %v6058_v51 }
 0xc18   :  { %v3306_v16 = vpop.f32.mrb[48].mxu1 }
 0xc19   :  { %v3307_v9 = vpop.f32.mrb[49].mxu1 }
 0xc1a   :  { %v3308_v46 = vadd.f32 %v3307_v9, %v3306_v16  ;;  %v3309_v17 = vpop.f32.mrb[50].mxu1 }
 0xc1b   :  { %v3310_v25 = vpop.f32.mrb[51].mxu1 }
 0xc1c   :  { %v2927_v21 = vadd.f32 %v3934_v20, %v3308_v46 }
 0xc1e   :  { %v2933_v23 = vadd.f32 %v2932_v63, %v2927_v21 }
 0xc20   :  { %vm2934_vm9 = vcmp.gt.f32.partialorder %v2933_v23, 0.5 }
 0xc21   :  { %v2935_v28 = vsel %vm2934_vm9, 1.0, %v6307_v0 }
 0xc22   :  { %v2936_v14 = vadd.f32 %v2935_v28, %v2779_v41 }
 0xc24   :  { %v2937_v61 = vmul.f32 0.125, %v2936_v14 }
 0xc26   :  { %2938 = vst [vmem:[#allocation14] sm:$0xff] %v2937_v61 }
 0xc27   :  { %4100 = shalt.err (!%p4097_p4)
}
 0xc28   :  { %s4101_s15 = scalar_lea.hbm %s5743_s7, 128 }
 0xc29   :  { %p4102_p5 = scmp.ne.s32.totalorder %s5743_s7, %s4101_s15  ;;  %p4105_p6 = scmp.lt.u32.totalorder %s4101_s15, %s5743_s7 }
 0xc2b   :  { %p4107_p7 = pnand %p4105_p6, %p4102_p5 }
 0xc2d   :  { %4110 = shalt.err (!%p4107_p7)
}
 0xc2e   :  { %2948 = dma.vmem_to_hbm [thread:$0]  %s2946_s13, 128, %s5743_s7, [#allocation4]  }
 0xc2f   :  { %4119 = dma.done.wait [#allocation4], 128  }
 0xc30   :  { %4120 = vsyncadd [#allocation4], 4294967168 }
 0xc31   :  { %2952 = vsyncpa [#allocation3], 1 }
 0xc32   :  { %2953 = vsyncpa [#allocation6], 1 }
 0xc33   :  { %2954 = vsyncpa [#allocation9], 1 }
 0xc34   :  { %2955 = vsyncpa [#allocation12], 1 }
 0xc35   :  { %2956 = vsyncpa [#allocation4], 1 }

</bundles_post_ra>
